<compile_context>
chip_gen: v7x
topology: tpu7x:2x2x1
jax: 0.10.0
libtpu: 0.0.40
codegen_flags: <defaults>
</compile_context>

<pallas_src>
import jax
import jax.numpy as jnp
from jax import lax
from jax.experimental import pallas as pl
from jax.experimental.pallas import tpu as pltpu
import numpy as np


_MASK_NEG = -1e30   # finite "-inf": identical softmax for any row with >= 1 real token


def _tpu_vmem_capacity_bytes():
    """Physical per-core VMEM, with a conservative fallback (v7x = 64 MiB)."""
    try:
        info = pltpu.get_tpu_info()
        for name in ("vmem_capacity_bytes", "vmem_size_bytes"):
            cap = getattr(info, name, None)
            if cap:
                return int(cap)
    except Exception:
        pass
    return 64 * 1024 * 1024


def _vmem_limit_bytes():
    return int(_tpu_vmem_capacity_bytes() * 3 // 4)


def _choose_block_batch(B, L, H, itemsize):
    """Sequences per grid step, sized against the generation's VMEM."""
    budget = int(_tpu_vmem_capacity_bytes() * 0.55)
    # Per-sequence VMEM: double-buffered x block + ~2 f32 elementwise
    # temporaries (x*w and alpha*x inside the body) + small score/out rows.
    per_seq = (2 * itemsize + 8) * L * H + 64 * (L + H) + 4096
    tb = max(1, budget // per_seq)
    return int(min(tb, B))


def _linear_seq_attn_kernel(x_ref, mask_ref, w_ref, out_ref):
    # x_ref   : (TB, L, H) VMEM — slab of TB sequences, native dtype
    # mask_ref: (TB, L)    VMEM — int32 mask, nonzero = padding
    # w_ref   : (1, H)     VMEM — f32 Linear(H, 1) weight, resident across grid
    # out_ref : (TB, H)    VMEM — per-sequence attention-pooled vectors
    tb, l, h = x_ref.shape
    x = x_ref[...]                                 # native dtype
    w = w_ref[...].reshape(1, 1, h)                # (1, 1, H) f32, free reshape

    # scores[b, l] = <w, x[b, l, :]>  — VPU multiply + XLU lane reduction,
    # dense (TB, L) layout.  (Linear bias omitted: softmax(z + c) == softmax(z).)
    scores = jnp.sum(x * w, axis=-1)               # (TB, L) f32 (promoted)
    scores = jnp.where(mask_ref[...] != 0, jnp.float32(_MASK_NEG), scores)

    # Numerically stable softmax over the sequence (lane) axis.
    m = jnp.max(scores, axis=-1, keepdims=True)    # (TB, 1)
    e = jnp.exp(scores - m)                        # (TB, L) f32
    s = jnp.sum(e, axis=-1, keepdims=True)         # (TB, 1)
    r = pl.reciprocal(s, approx=True)              # EUP vrcp
    inv = r * (2.0 - s * r)                        # one Newton step -> full f32 accuracy

    # out[b, h] = sum_l e[b, l] * x[b, l, h]  — VPU broadcast-multiply + XLU
    # sublane reduction; the 1/sum is folded into the tiny (TB, H) result.
    weighted = jnp.sum(x * e[:, :, None], axis=1)  # (TB, H) f32
    out_ref[...] = (weighted * inv).astype(out_ref.dtype)


def linear_seq_attn(x, x_mask, weight, bias=None, *, block_batch=None):
    """
    Args:
        x          : (B, L, H) float32 / bfloat16
        x_mask     : (B, L) int/bool, nonzero = padding
        weight     : (1, H) float32  (nn.Linear(H, 1).weight)
        bias       : (1,)   float32  (nn.Linear(H, 1).bias) — accepted but has
                     no effect on the output (softmax is shift-invariant).
        block_batch: optional override for sequences-per-grid-step.
    Returns:
        (B, H) in x.dtype
    """
    del bias  # provably a no-op for this module's output
    B, L, H = x.shape

    mask = x_mask.astype(jnp.int32)                    # (B, L); tiny vs. x traffic
    w = weight.reshape(1, H).astype(jnp.float32)

    if block_batch is None:
        tb = _choose_block_batch(B, L, H, x.dtype.itemsize)
    else:
        tb = int(block_batch)
    tb = max(1, min(tb, B))
    if tb != B:
        # Keep the (TB, L) mask and (TB, H) output blocks sublane-aligned.
        tb = min(B, max(8, (tb // 8) * 8))
    num_blocks = pl.cdiv(B, tb)                        # ragged tail handled by Pallas

    out = pl.pallas_call(
        _linear_seq_attn_kernel,
        out_shape=jax.ShapeDtypeStruct((B, H), x.dtype),
        grid_spec=pltpu.PrefetchScalarGridSpec(
            num_scalar_prefetch=0,
            grid=(num_blocks,),
            in_specs=[
                pl.BlockSpec((tb, L, H), lambda i: (i, 0, 0)),  # x slab
                pl.BlockSpec((tb, L), lambda i: (i, 0)),        # int mask slab
                pl.BlockSpec((1, H), lambda i: (0, 0)),         # weight (resident)
            ],
            out_specs=pl.BlockSpec((tb, H), lambda i: (i, 0)),
        ),
        compiler_params=pltpu.CompilerParams(
            # On v7x, CORE_PARALLEL / core_map would shard this axis across the
            # two TensorCores; plain "parallel" is the safe cross-generation choice.
            dimension_semantics=("parallel",),
            vmem_limit_bytes=_vmem_limit_bytes(),
        ),
    )(x, mask, w)
    return out


def _reference(x, x_mask, weight, bias):
    # Pure-JAX reference matching the PyTorch forward (f32-accurate matmuls).
    scores = jnp.einsum("blh,oh->blo", x, weight,
                        precision=lax.Precision.HIGHEST)[..., 0] + bias[0]
    scores = jnp.where(x_mask.astype(bool), -jnp.inf, scores)
    alpha = jax.nn.softmax(scores, axis=-1)                      # (B, L)
    return jnp.einsum("bl,blh->bh", alpha, x,
                      precision=lax.Precision.HIGHEST)           # (B, H)


if __name__ == "__main__":
    key = jax.random.PRNGKey(0)
    B, L, H = 24, 64, 128   # small, but exercises single-block, multi-block and ragged paths

    kx, kw, kb, kl = jax.random.split(key, 4)
    x = jax.random.normal(kx, (B, L, H), dtype=jnp.float32)
    # nn.Linear(H, 1): weight (1, H), bias (1,); deterministic synthetic init.
    weight = jax.random.normal(kw, (1, H), dtype=jnp.float32) * (1.0 / jnp.sqrt(H))
    bias = jax.random.normal(kb, (1,), dtype=jnp.float32) * 0.1

    # x_mask: 1 for padding, 0 for true tokens; every sequence has >= 1 real token.
    lengths = jax.random.randint(kl, (B,), 1, L + 1)
    positions = jnp.arange(L, dtype=jnp.int32)[None, :]
    x_mask = (positions >= lengths[:, None]).astype(jnp.int32)   # (B, L)

    ref = _reference(x, x_mask, weight, bias)

    # Auto-tiled path (whole batch fits in one block on all generations).
    out = jax.block_until_ready(linear_seq_attn(x, x_mask, weight, bias))
    np.testing.assert_allclose(np.asarray(out), np.asarray(ref), rtol=1e-4, atol=1e-5)

    # Even-division multi-block path (TB=8, grid=3).
    out8 = jax.block_until_ready(linear_seq_attn(x, x_mask, weight, bias, block_batch=8))
    np.testing.assert_allclose(np.asarray(out8), np.asarray(ref), rtol=1e-4, atol=1e-5)

    # Ragged-tail path (TB=16, grid=2; last block half out-of-bounds, no jnp.pad of x).
    out16 = jax.block_until_ready(linear_seq_attn(x, x_mask, weight, bias, block_batch=16))
    np.testing.assert_allclose(np.asarray(out16), np.asarray(ref), rtol=1e-4, atol=1e-5)

    print("KERNEL_OK")
</pallas_src>

<mosaic_0001>
module attributes {stable_mosaic.version = 11 : i64} {
  func.func @_linear_seq_attn_kernel(%arg0: i32, %arg1: memref<24x64x128xf32, #tpu.memory_space<vmem>>, %arg2: memref<24x64xi32, #tpu.memory_space<vmem>>, %arg3: memref<1x128xf32, #tpu.memory_space<vmem>>, %arg4: memref<24x128xf32, #tpu.memory_space<vmem>>) attributes {dimension_semantics = [#tpu.dimension_semantics<parallel>], iteration_bounds = array<i64: 1>, scalar_prefetch = 0 : i64, scratch_operands = 0 : i64, tpu.core_type = #tpu.core_type<tc>, window_params = [{transform_indices = @transform_0, window_bounds = array<i64: 24, 64, 128>}, {transform_indices = @transform_1, window_bounds = array<i64: 24, 64>}, {pipeline_mode = #tpu.pipeline_mode<synchronous>, transform_indices = @transform_2, window_bounds = array<i64: 1, 128>}, {transform_indices = @transform_3, window_bounds = array<i64: 24, 128>}]} {
    %c0 = arith.constant 0 : index
    %c0_0 = arith.constant 0 : index
    %c0_1 = arith.constant 0 : index
    %0 = vector.load %arg1[%c0, %c0_0, %c0_1] : memref<24x64x128xf32, #tpu.memory_space<vmem>>, vector<24x64x128xf32>
    %c0_2 = arith.constant 0 : index
    %c0_3 = arith.constant 0 : index
    %1 = vector.load %arg3[%c0_2, %c0_3] : memref<1x128xf32, #tpu.memory_space<vmem>>, vector<1x128xf32>
    %2 = vector.shape_cast %1 : vector<1x128xf32> to vector<1x1x128xf32>
    %3 = vector.broadcast %2 : vector<1x1x128xf32> to vector<24x64x128xf32>
    %4 = arith.mulf %0, %3 : vector<24x64x128xf32>
    %cst = arith.constant dense<0.000000e+00> : vector<24x64xf32>
    %5 = vector.multi_reduction <add>, %4, %cst [2] : vector<24x64x128xf32> to vector<24x64xf32>
    %c0_4 = arith.constant 0 : index
    %c0_5 = arith.constant 0 : index
    %6 = vector.load %arg2[%c0_4, %c0_5] : memref<24x64xi32, #tpu.memory_space<vmem>>, vector<24x64xi32>
    %c0_i32 = arith.constant 0 : i32
    %7 = vector.broadcast %c0_i32 : i32 to vector<24x64xi32>
    %8 = arith.cmpi ne, %6, %7 : vector<24x64xi32>
    %cst_6 = arith.constant -1.000000e+30 : f32
    %9 = vector.broadcast %cst_6 : f32 to vector<24x64xf32>
    %10 = arith.select %8, %9, %5 : vector<24x64xi1>, vector<24x64xf32>
    %cst_7 = arith.constant dense<0xFF800000> : vector<24xf32>
    %11 = vector.multi_reduction <maximumf>, %10, %cst_7 [1] : vector<24x64xf32> to vector<24xf32>
    %12 = vector.shape_cast %11 : vector<24xf32> to vector<24x1xf32>
    %13 = vector.broadcast %12 : vector<24x1xf32> to vector<24x64xf32>
    %14 = arith.subf %10, %13 : vector<24x64xf32>
    %15 = math.exp %14 : vector<24x64xf32>
    %cst_8 = arith.constant dense<0.000000e+00> : vector<24xf32>
    %16 = vector.multi_reduction <add>, %15, %cst_8 [1] : vector<24x64xf32> to vector<24xf32>
    %17 = vector.shape_cast %16 : vector<24xf32> to vector<24x1xf32>
    %18 = tpu.reciprocal %17 {approx = true} : vector<24x1xf32> -> vector<24x1xf32>
    %19 = arith.mulf %17, %18 : vector<24x1xf32>
    %cst_9 = arith.constant 2.000000e+00 : f32
    %20 = vector.broadcast %cst_9 : f32 to vector<24x1xf32>
    %21 = arith.subf %20, %19 : vector<24x1xf32>
    %22 = arith.mulf %18, %21 : vector<24x1xf32>
    %23 = vector.shape_cast %15 : vector<24x64xf32> to vector<24x64x1xf32>
    %24 = vector.broadcast %23 : vector<24x64x1xf32> to vector<24x64x128xf32>
    %25 = arith.mulf %0, %24 : vector<24x64x128xf32>
    %cst_10 = arith.constant dense<0.000000e+00> : vector<24x128xf32>
    %26 = vector.multi_reduction <add>, %25, %cst_10 [1] : vector<24x64x128xf32> to vector<24x128xf32>
    %27 = vector.broadcast %22 : vector<24x1xf32> to vector<24x128xf32>
    %28 = arith.mulf %26, %27 : vector<24x128xf32>
    %c0_11 = arith.constant 0 : index
    %c0_12 = arith.constant 0 : index
    %29 = vector.load %arg4[%c0_11, %c0_12] : memref<24x128xf32, #tpu.memory_space<vmem>>, vector<24x128xf32>
    tpu.vector_store %arg4[%c0_11, %c0_12], %28 {strides = array<i32>} : memref<24x128xf32, #tpu.memory_space<vmem>>, vector<24x128xf32>,
    return
  }
  func.func @transform_0(%arg0: i32) -> (i32, i32, i32) {
    %c0_i32 = arith.constant 0 : i32
    %c0_i32_0 = arith.constant 0 : i32
    %c0_i32_1 = arith.constant 0 : i32
    return %arg0, %c0_i32, %c0_i32_0 : i32, i32, i32
  }
  func.func @transform_1(%arg0: i32) -> (i32, i32) {
    %c0_i32 = arith.constant 0 : i32
    %c0_i32_0 = arith.constant 0 : i32
    return %arg0, %c0_i32 : i32, i32
  }
  func.func @transform_2(%arg0: i32) -> (i32, i32) {
    %c0_i32 = arith.constant 0 : i32
    %c0_i32_0 = arith.constant 0 : i32
    %c0_i32_1 = arith.constant 0 : i32
    return %c0_i32, %c0_i32_0 : i32, i32
  }
  func.func @transform_3(%arg0: i32) -> (i32, i32) {
    %c0_i32 = arith.constant 0 : i32
    %c0_i32_0 = arith.constant 0 : i32
    return %arg0, %c0_i32 : i32, i32
  }
}

</mosaic_0001>

<bundles_post_ra>
// kernel: tpu_custom_call.1
= control target key start
LH: loop header
LB: loop body
LE: loop exit
PB: predicated region body
PF: predicated region fallthrough
CT: control target
= control target key end

     0   :  { %8 = vsyncpa [#allocation3], 0  ;;  %s5489_s0 = inlined_call_operand.hbm [shape: f32[24,64,128], index: 0, kind: input, shape index: {}]   ;;  %s5490_s1 = inlined_call_operand.hbm [shape: s32[24,64], index: 1, kind: input, shape index: {}]   ;;  %s5491_s2 = inlined_call_operand.vmem [shape: f32[1,128], index: 2, kind: input, shape index: {}]   ;;  %s5492_s3 = inlined_call_operand.hbm [shape: f32[24,128], index: 3, kind: output, shape index: {}]  }
   0x1   :  { %9 = vsyncpa [#allocation6], 0 }
   0x2   :  { %10 = vsyncpa [#allocation4], 0  ;;  %s3831_s12 = smov [#allocation2]   ;;  %s3759_s16 = scalar_lea.hbm %s5489_s0, 24576 }
   0x3   :  { %s16_s13 = sshll.u32 %s3831_s12, 4  ;;  %p3760_p0 = scmp.ne.s32.totalorder %s5489_s0, %s3759_s16  ;;  %s17_s13 = int_to_ptr.vmem [resolvable:$true] %s16_s13 }
   0x4   :  { %p3763_p1 = scmp.lt.u32.totalorder %s3759_s16, %s5489_s0 }
   0x6   :  { %p3765_p2 = pnand %p3763_p1, %p3760_p0 }
   0x8   :  { %3768 = shalt.err (!%p3765_p2)
}
   0x9   :  { %s3769_s21 = scalar_lea.vmem %s17_s13, 24576  ;;  %p3774_p4 = scmp.lt.s32.totalorder %s17_s13, %s17_s13 }
   0xa   :  { %p3770_p3 = scmp.ne.s32.totalorder %s17_s13, %s3769_s21  ;;  %p3775_p5 = scmp.lt.s32.totalorder %s3769_s21, %s3769_s21 }
   0xc   :  { %p3776_p6 = por %p3775_p5, %p3774_p4 }
   0xe   :  { %p3777_p7 = pnand %p3776_p6, %p3770_p3 }
  0x10   :  { %3780 = shalt.err (!%p3777_p7)
}
  0x11   :  { %s3832_s22 = smov 128   ;;  %s3833_s23 = smov 8  }
  0x12   :  { %22 = dma.hbm_to_vmem [thread:$0]  %s5489_s0, 24576, %s17_s13, [#allocation3], %s3832_s22, %s3832_s22, %s3833_s23  }
  0x13   :  { %s3834_s26 = smov [#allocation5]   ;;  %s3781_s30 = scalar_lea.hbm %s5490_s1, 384 }
  0x14   :  { %s28_s27 = sshll.u32 %s3834_s26, 4  ;;  %p3782_p8 = scmp.ne.s32.totalorder %s5490_s1, %s3781_s30  ;;  %s29_s27 = int_to_ptr.vmem [resolvable:$true] %s28_s27 }
  0x15   :  { %p3785_p9 = scmp.lt.u32.totalorder %s3781_s30, %s5490_s1 }
  0x17   :  { %p3787_p10 = pnand %p3785_p9, %p3782_p8 }
  0x19   :  { %3790 = shalt.err (!%p3787_p10)
}
  0x1a   :  { %s3791_s8 = scalar_lea.vmem %s29_s27, 384  ;;  %p3796_p12 = scmp.lt.s32.totalorder %s29_s27, %s29_s27 }
  0x1b   :  { %p3792_p11 = scmp.ne.s32.totalorder %s29_s27, %s3791_s8  ;;  %p3797_p13 = scmp.lt.s32.totalorder %s3791_s8, %s3791_s8 }
  0x1d   :  { %p3798_p0 = por %p3797_p13, %p3796_p12 }
  0x1f   :  { %p3799_p1 = pnand %p3798_p0, %p3792_p11 }
  0x21   :  { %3802 = shalt.err (!%p3799_p1)
}
  0x22   :  { %34 = dma.hbm_to_vmem [thread:$0]  %s5490_s1, 384, %s29_s27, [#allocation6], %s3832_s22, %s3832_s22, %s3833_s23  }
  0x23   :  { %3825 = dma.done.wait [#allocation3], 24576  }
  0x24   :  { %3826 = vsyncadd [#allocation3], 4294942720 }
  0x25   :  { %3827 = dma.done.wait [#allocation6], 384  }
  0x26   :  { %3828 = vsyncadd [#allocation6], 4294966912  ;;  %v45_v0 = vld [vmem:[#allocation2 + $0x10] sm:$0xff]  ;;  %v3889_v1 = vld [vmem:[%s5491_s2] ss:$0 sm:$0xff]  ;;  %vm1027_vm0 = vcmask 130112  }
  0x27   :  { %v43_v2 = vld [vmem:[#allocation2] sm:$0xff]  ;;  %v244_v3 = vmul.f32 %v3889_v1, %v45_v0  ;;  %v46_v5 = vld [vmem:[#allocation2 + $0x18] sm:$0xff]  ;;  %v44_v6 = vld [vmem:[#allocation2 + $0x8] sm:$0xff]  ;;  %vm1034_vm1 = vcmask 195712   ;;  %vm1041_vm2 = vcmask 261312   ;;  %vm1048_vm3 = vcmask 326912  }
  0x28   :  { %v242_v4 = vmul.f32 %v3889_v1, %v43_v2  ;;  %v245_v7 = vmul.f32 %v3889_v1, %v46_v5  ;;  %v243_v8 = vmul.f32 %v3889_v1, %v44_v6  ;;  %v48_v9 = vld [vmem:[#allocation2 + $0x28] sm:$0xff]  ;;  %v47_v10 = vld [vmem:[#allocation2 + $0x20] sm:$0xff]  ;;  %v50_v13 = vld [vmem:[#allocation2 + $0x38] sm:$0xff]  ;;  %vm1055_vm4 = vcmask 392512  }
  0x29   :  { %438 = vadd.xlane.f32.xlu1 %v244_v3  ;;  %v247_v11 = vmul.f32 %v3889_v1, %v48_v9  ;;  %v246_v12 = vmul.f32 %v3889_v1, %v47_v10  ;;  %v49_v14 = vld [vmem:[#allocation2 + $0x30] sm:$0xff]  ;;  %v249_v15 = vmul.f32 %v3889_v1, %v50_v13  ;;  %v52_v17 = vld [vmem:[#allocation2 + $0x48] sm:$0xff]  ;;  %v51_v18 = vld [vmem:[#allocation2 + $0x40] sm:$0xff]  ;;  %vm1062_vm5 = vcmask 458112  }
  0x2a   :  { %434 = vadd.xlane.f32.xlu0 %v242_v4  ;;  %v248_v16 = vmul.f32 %v3889_v1, %v49_v14  ;;  %v251_v19 = vmul.f32 %v3889_v1, %v52_v17  ;;  %v250_v20 = vmul.f32 %v3889_v1, %v51_v18  ;;  %v54_v21 = vld [vmem:[#allocation2 + $0x58] sm:$0xff]  ;;  %v53_v22 = vld [vmem:[#allocation2 + $0x50] sm:$0xff]  ;;  %v56_v25 = vld [vmem:[#allocation2 + $0x68] sm:$0xff]  ;;  %vm1069_vm6 = vcmask 523712  }
  0x2b   :  { %v253_v23 = vmul.f32 %v3889_v1, %v54_v21  ;;  %v252_v24 = vmul.f32 %v3889_v1, %v53_v22  ;;  %v55_v26 = vld [vmem:[#allocation2 + $0x60] sm:$0xff]  ;;  %v255_v27 = vmul.f32 %v3889_v1, %v56_v25  ;;  %v58_v29 = vld [vmem:[#allocation2 + $0x78] sm:$0xff]  ;;  %v57_v30 = vld [vmem:[#allocation2 + $0x70] sm:$0xff]  ;;  %vm1968_vm7 = vcmask 1041409  }
  0x2c   :  { %v254_v28 = vmul.f32 %v3889_v1, %v55_v26  ;;  %v257_v31 = vmul.f32 %v3889_v1, %v58_v29  ;;  %v256_v32 = vmul.f32 %v3889_v1, %v57_v30  ;;  %v60_v33 = vld [vmem:[#allocation2 + $0x88] sm:$0xff]  ;;  %v59_v34 = vld [vmem:[#allocation2 + $0x80] sm:$0xff]  ;;  %v62_v37 = vld [vmem:[#allocation2 + $0x98] sm:$0xff]  ;;  %vm1970_vm8 = vcmask 1042434  }
  0x2d   :  { %440 = vadd.xlane.f32.xlu1 %v245_v7  ;;  %v259_v35 = vmul.f32 %v3889_v1, %v60_v33  ;;  %v258_v36 = vmul.f32 %v3889_v1, %v59_v34  ;;  %v61_v38 = vld [vmem:[#allocation2 + $0x90] sm:$0xff]  ;;  %v261_v39 = vmul.f32 %v3889_v1, %v62_v37  ;;  %v64_v41 = vld [vmem:[#allocation2 + $0xa8] sm:$0xff]  ;;  %v63_v42 = vld [vmem:[#allocation2 + $0xa0] sm:$0xff]  ;;  %vm1972_vm9 = vcmask 1043459  }
  0x2e   :  { %436 = vadd.xlane.f32.xlu0 %v243_v8  ;;  %v260_v40 = vmul.f32 %v3889_v1, %v61_v38  ;;  %v263_v43 = vmul.f32 %v3889_v1, %v64_v41  ;;  %v262_v44 = vmul.f32 %v3889_v1, %v63_v42  ;;  %v66_v45 = vld [vmem:[#allocation2 + $0xb8] sm:$0xff]  ;;  %v65_v46 = vld [vmem:[#allocation2 + $0xb0] sm:$0xff]  ;;  %v68_v49 = vld [vmem:[#allocation2 + $0xc8] sm:$0xff]  ;;  %vm1974_vm10 = vcmask 1044484  }
  0x2f   :  { %v265_v47 = vmul.f32 %v3889_v1, %v66_v45  ;;  %v264_v48 = vmul.f32 %v3889_v1, %v65_v46  ;;  %v67_v50 = vld [vmem:[#allocation2 + $0xc0] sm:$0xff]  ;;  %v267_v51 = vmul.f32 %v3889_v1, %v68_v49  ;;  %v70_v53 = vld [vmem:[#allocation2 + $0xd8] sm:$0xff]  ;;  %v69_v54 = vld [vmem:[#allocation2 + $0xd0] sm:$0xff]  ;;  %vm1976_vm11 = vcmask 1045509  }
  0x30   :  { %v266_v52 = vmul.f32 %v3889_v1, %v67_v50  ;;  %v269_v55 = vmul.f32 %v3889_v1, %v70_v53  ;;  %v268_v56 = vmul.f32 %v3889_v1, %v69_v54  ;;  %v72_v57 = vld [vmem:[#allocation2 + $0xe8] sm:$0xff]  ;;  %v71_v58 = vld [vmem:[#allocation2 + $0xe0] sm:$0xff]  ;;  %v74_v61 = vld [vmem:[#allocation2 + $0xf8] sm:$0xff]  ;;  %vm1978_vm12 = vcmask 1046534  }
  0x31   :  { %444 = vadd.xlane.f32.xlu1 %v247_v11  ;;  %v271_v59 = vmul.f32 %v3889_v1, %v72_v57  ;;  %v270_v60 = vmul.f32 %v3889_v1, %v71_v58  ;;  %v73_v62 = vld [vmem:[#allocation2 + $0xf0] sm:$0xff]  ;;  %v273_v63 = vmul.f32 %v3889_v1, %v74_v61  ;;  %v76_v2 = vld [vmem:[#allocation2 + $0x108] sm:$0xff]  ;;  %v75_v3 = vld [vmem:[#allocation2 + $0x100] sm:$0xff]  ;;  %vm1980_vm13 = vcmask 1047559  }
  0x32   :  { %442 = vadd.xlane.f32.xlu0 %v246_v12  ;;  %v272_v0 = vmul.f32 %v3889_v1, %v73_v62  ;;  %v275_v4 = vmul.f32 %v3889_v1, %v76_v2  ;;  %v274_v5 = vmul.f32 %v3889_v1, %v75_v3  ;;  %v78_v6 = vld [vmem:[#allocation2 + $0x118] sm:$0xff]  ;;  %v77_v7 = vld [vmem:[#allocation2 + $0x110] sm:$0xff]  ;;  %v80_v10 = vld [vmem:[#allocation2 + $0x128] sm:$0xff]  ;;  %vm2002_vm15 = vcmask 523264  }
  0x33   :  { %v277_v8 = vmul.f32 %v3889_v1, %v78_v6  ;;  %v276_v9 = vmul.f32 %v3889_v1, %v77_v7  ;;  %v79_v11 = vld [vmem:[#allocation2 + $0x120] sm:$0xff]  ;;  %v279_v12 = vmul.f32 %v3889_v1, %v80_v10  ;;  %v82_v14 = vld [vmem:[#allocation2 + $0x138] sm:$0xff]  ;;  %v84_v18 = vld [vmem:[#allocation2 + $0x148] sm:$0xff] }
  0x34   :  { %v278_v13 = vmul.f32 %v3889_v1, %v79_v11  ;;  %v86_v22 = vld [vmem:[#allocation2 + $0x158] sm:$0xff]  ;;  %v88_v26 = vld [vmem:[#allocation2 + $0x168] sm:$0xff] }
  0x35   :  { %448 = vadd.xlane.f32.xlu1 %v249_v15  ;;  %v81_v15 = vld [vmem:[#allocation2 + $0x130] sm:$0xff]  ;;  %v90_v30 = vld [vmem:[#allocation2 + $0x178] sm:$0xff]  ;;  %v92_v34 = vld [vmem:[#allocation2 + $0x188] sm:$0xff] }
  0x36   :  { %446 = vadd.xlane.f32.xlu0 %v248_v16  ;;  %v281_v16 = vmul.f32 %v3889_v1, %v82_v14  ;;  %v280_v17 = vmul.f32 %v3889_v1, %v81_v15  ;;  %v94_v38 = vld [vmem:[#allocation2 + $0x198] sm:$0xff]  ;;  %v96_v42 = vld [vmem:[#allocation2 + $0x1a8] sm:$0xff] }
  0x37   :  { %v98_v46 = vld [vmem:[#allocation2 + $0x1b8] sm:$0xff]  ;;  %v100_v50 = vld [vmem:[#allocation2 + $0x1c8] sm:$0xff] }
  0x38   :  { %v102_v54 = vld [vmem:[#allocation2 + $0x1d8] sm:$0xff]  ;;  %v104_v58 = vld [vmem:[#allocation2 + $0x1e8] sm:$0xff] }
  0x39   :  { %452 = vadd.xlane.f32.xlu1 %v251_v19  ;;  %v83_v19 = vld [vmem:[#allocation2 + $0x140] sm:$0xff]  ;;  %v106_v62 = vld [vmem:[#allocation2 + $0x1f8] sm:$0xff]  ;;  %v108_v3 = vld [vmem:[#allocation2 + $0x208] sm:$0xff] }
  0x3a   :  { %450 = vadd.xlane.f32.xlu0 %v250_v20  ;;  %v283_v20 = vmul.f32 %v3889_v1, %v84_v18  ;;  %v282_v21 = vmul.f32 %v3889_v1, %v83_v19  ;;  %v110_v7 = vld [vmem:[#allocation2 + $0x218] sm:$0xff]  ;;  %v112_v11 = vld [vmem:[#allocation2 + $0x228] sm:$0xff] }
  0x3b   :  { %v311_v14 = vmul.f32 %v3889_v1, %v112_v11 }
  0x3d   :  { %456 = vadd.xlane.f32.xlu1 %v253_v23  ;;  %v85_v23 = vld [vmem:[#allocation2 + $0x150] sm:$0xff] }
  0x3e   :  { %454 = vadd.xlane.f32.xlu0 %v252_v24  ;;  %v285_v24 = vmul.f32 %v3889_v1, %v86_v22  ;;  %v284_v25 = vmul.f32 %v3889_v1, %v85_v23  ;;  %v115_v22 = vld [vmem:[#allocation2 + $0x240] sm:$0xff] }
  0x41   :  { %460 = vadd.xlane.f32.xlu1 %v255_v27  ;;  %v87_v27 = vld [vmem:[#allocation2 + $0x160] sm:$0xff] }
  0x42   :  { %458 = vadd.xlane.f32.xlu0 %v254_v28  ;;  %v287_v28 = vmul.f32 %v3889_v1, %v88_v26  ;;  %v286_v29 = vmul.f32 %v3889_v1, %v87_v27 }
  0x45   :  { %464 = vadd.xlane.f32.xlu1 %v257_v31  ;;  %v89_v31 = vld [vmem:[#allocation2 + $0x170] sm:$0xff] }
  0x46   :  { %462 = vadd.xlane.f32.xlu0 %v256_v32  ;;  %v289_v32 = vmul.f32 %v3889_v1, %v90_v30  ;;  %v288_v33 = vmul.f32 %v3889_v1, %v89_v31  ;;  %v118_v31 = vld [vmem:[#allocation2 + $0x258] sm:$0xff] }
  0x49   :  { %468 = vadd.xlane.f32.xlu1 %v259_v35  ;;  %v91_v35 = vld [vmem:[#allocation2 + $0x180] sm:$0xff] }
  0x4a   :  { %466 = vadd.xlane.f32.xlu0 %v258_v36  ;;  %v291_v36 = vmul.f32 %v3889_v1, %v92_v34  ;;  %v290_v37 = vmul.f32 %v3889_v1, %v91_v35 }
  0x4d   :  { %472 = vadd.xlane.f32.xlu1 %v261_v39  ;;  %v93_v39 = vld [vmem:[#allocation2 + $0x190] sm:$0xff] }
  0x4e   :  { %470 = vadd.xlane.f32.xlu0 %v260_v40  ;;  %v293_v40 = vmul.f32 %v3889_v1, %v94_v38  ;;  %v292_v41 = vmul.f32 %v3889_v1, %v93_v39  ;;  %v317_v39 = vmul.f32 %v3889_v1, %v118_v31 }
  0x51   :  { %476 = vadd.xlane.f32.xlu1 %v263_v43  ;;  %v95_v43 = vld [vmem:[#allocation2 + $0x1a0] sm:$0xff] }
  0x52   :  { %474 = vadd.xlane.f32.xlu0 %v262_v44  ;;  %v295_v44 = vmul.f32 %v3889_v1, %v96_v42  ;;  %v294_v45 = vmul.f32 %v3889_v1, %v95_v43 }
  0x55   :  { %480 = vadd.xlane.f32.xlu1 %v265_v47  ;;  %v97_v47 = vld [vmem:[#allocation2 + $0x1b0] sm:$0xff] }
  0x56   :  { %478 = vadd.xlane.f32.xlu0 %v264_v48  ;;  %v297_v48 = vmul.f32 %v3889_v1, %v98_v46  ;;  %v296_v49 = vmul.f32 %v3889_v1, %v97_v47  ;;  %v119_v46 = vld [vmem:[#allocation2 + $0x260] sm:$0xff] }
  0x59   :  { %484 = vadd.xlane.f32.xlu1 %v267_v51  ;;  %v99_v51 = vld [vmem:[#allocation2 + $0x1c0] sm:$0xff] }
  0x5a   :  { %482 = vadd.xlane.f32.xlu0 %v266_v52  ;;  %v299_v52 = vmul.f32 %v3889_v1, %v100_v50  ;;  %v298_v53 = vmul.f32 %v3889_v1, %v99_v51 }
  0x5d   :  { %488 = vadd.xlane.f32.xlu1 %v269_v55  ;;  %v101_v55 = vld [vmem:[#allocation2 + $0x1d0] sm:$0xff] }
  0x5e   :  { %486 = vadd.xlane.f32.xlu0 %v268_v56  ;;  %v301_v56 = vmul.f32 %v3889_v1, %v102_v54  ;;  %v300_v57 = vmul.f32 %v3889_v1, %v101_v55  ;;  %v318_v55 = vmul.f32 %v3889_v1, %v119_v46  ;;  %v129_v46 = vld [vmem:[#allocation2 + $0x2b0] sm:$0xff] }
  0x61   :  { %492 = vadd.xlane.f32.xlu1 %v271_v59  ;;  %v103_v59 = vld [vmem:[#allocation2 + $0x1e0] sm:$0xff] }
  0x62   :  { %490 = vadd.xlane.f32.xlu0 %v270_v60  ;;  %v303_v60 = vmul.f32 %v3889_v1, %v104_v58  ;;  %v302_v61 = vmul.f32 %v3889_v1, %v103_v59 }
  0x65   :  { %496 = vadd.xlane.f32.xlu1 %v273_v63  ;;  %v105_v63 = vld [vmem:[#allocation2 + $0x1f0] sm:$0xff] }
  0x66   :  { %494 = vadd.xlane.f32.xlu0 %v272_v0  ;;  %v305_v0 = vmul.f32 %v3889_v1, %v106_v62  ;;  %v304_v2 = vmul.f32 %v3889_v1, %v105_v63 }
  0x69   :  { %500 = vadd.xlane.f32.xlu1 %v275_v4  ;;  %v107_v4 = vld [vmem:[#allocation2 + $0x200] sm:$0xff] }
  0x6a   :  { %498 = vadd.xlane.f32.xlu0 %v274_v5  ;;  %v307_v5 = vmul.f32 %v3889_v1, %v108_v3  ;;  %v306_v6 = vmul.f32 %v3889_v1, %v107_v4 }
  0x6d   :  { %504 = vadd.xlane.f32.xlu1 %v277_v8  ;;  %v109_v8 = vld [vmem:[#allocation2 + $0x210] sm:$0xff] }
  0x6e   :  { %502 = vadd.xlane.f32.xlu0 %v276_v9  ;;  %v309_v9 = vmul.f32 %v3889_v1, %v110_v7  ;;  %v308_v10 = vmul.f32 %v3889_v1, %v109_v8 }
  0x71   :  { %508 = vadd.xlane.f32.xlu1 %v279_v12  ;;  %v111_v12 = vld [vmem:[#allocation2 + $0x220] sm:$0xff] }
  0x72   :  { %506 = vadd.xlane.f32.xlu0 %v278_v13  ;;  %v1016_v13 = vlaneseq  ;;  %v310_v15 = vmul.f32 %v3889_v1, %v111_v12 }
  0x74   :  { %v1017_v18 = vand.u32 127, %v1016_v13  ;;  %v3963_v23 = vshrl.u32 %v1016_v13, 7 }
  0x75   :  { %512 = vadd.xlane.f32.xlu1 %v281_v16  ;;  %v114_v16 = vld [vmem:[#allocation2 + $0x238] sm:$0xff] }
  0x76   :  { %510 = vadd.xlane.f32.xlu0 %v280_v17  ;;  %v113_v17 = vld [vmem:[#allocation2 + $0x230] sm:$0xff]  ;;  %v313_v19 = vmul.f32 %v3889_v1, %v114_v16  ;;  %5511 = vst [vmem:[#allocation11_spill] sm:$0xff] %v3963_v23  ;;  %v1029_v26 = vadd.s32 4294967280, %v1017_v18  ;;  %v1043_v34 = vadd.s32 4294967264, %v1017_v18  ;;  %v3968_v35 = vsub.s32 %v1017_v18, %v3963_v23 }
  0x77   :  { %v1064_v47 = vadd.s32 4294967240, %v1017_v18  ;;  %v1057_v51 = vadd.s32 4294967248, %v1017_v18 }
  0x78   :  { %v3977_v38 = vsub.s32 %v1029_v26, %v3963_v23 }
  0x79   :  { %516 = vadd.xlane.f32.xlu1 %v283_v20  ;;  %v312_v20 = vmul.f32 %v3889_v1, %v113_v17  ;;  %v3996_v59 = vsub.s32 %v1064_v47, %v3963_v23 }
  0x7a   :  { %514 = vadd.xlane.f32.xlu0 %v282_v21  ;;  %v116_v21 = vld [vmem:[#allocation2 + $0x248] sm:$0xff] }
  0x7b   :  { %v315_v27 = vmul.f32 %v3889_v1, %v116_v21 }
  0x7d   :  { %520 = vadd.xlane.f32.xlu1 %v285_v24  ;;  %v1036_v24 = vadd.s32 4294967272, %v1017_v18 }
  0x7e   :  { %518 = vadd.xlane.f32.xlu0 %v284_v25  ;;  %v1022_v25 = vadd.s32 4294967288, %v1017_v18 }
  0x81   :  { %524 = vadd.xlane.f32.xlu1 %v287_v28  ;;  %v314_v28 = vmul.f32 %v3889_v1, %v115_v22 }
  0x82   :  { %522 = vadd.xlane.f32.xlu0 %v286_v29 }
  0x85   :  { %528 = vadd.xlane.f32.xlu1 %v289_v32  ;;  %v117_v32 = vld [vmem:[#allocation2 + $0x250] sm:$0xff] }
  0x86   :  { %526 = vadd.xlane.f32.xlu0 %v288_v33  ;;  %v1050_v33 = vadd.s32 4294967256, %v1017_v18 }
  0x88   :  { %v3982_v43 = vsub.s32 %v1050_v33, %v3963_v23 }
  0x89   :  { %532 = vadd.xlane.f32.xlu1 %v291_v36  ;;  %v3971_v36 = vsub.s32 %v1036_v24, %v3963_v23 }
  0x8a   :  { %530 = vadd.xlane.f32.xlu0 %v290_v37  ;;  %v3974_v37 = vsub.s32 %v1022_v25, %v3963_v23 }
  0x8d   :  { %536 = vadd.xlane.f32.xlu1 %v293_v40  ;;  %v316_v40 = vmul.f32 %v3889_v1, %v117_v32 }
  0x8e   :  { %534 = vadd.xlane.f32.xlu0 %v292_v41 }
  0x91   :  { %540 = vadd.xlane.f32.xlu1 %v295_v44  ;;  %v3985_v44 = vsub.s32 %v1043_v34, %v3963_v23 }
  0x92   :  { %538 = vadd.xlane.f32.xlu0 %v294_v45  ;;  %v120_v45 = vld [vmem:[#allocation2 + $0x268] sm:$0xff] }
  0x93   :  { %v319_v54 = vmul.f32 %v3889_v1, %v120_v45  ;;  %v130_v45 = vld [vmem:[#allocation2 + $0x2b8] sm:$0xff] }
  0x95   :  { %544 = vadd.xlane.f32.xlu1 %v297_v48 }
  0x96   :  { %542 = vadd.xlane.f32.xlu0 %v296_v49 }
  0x99   :  { %548 = vadd.xlane.f32.xlu1 %v299_v52 }
  0x9a   :  { %546 = vadd.xlane.f32.xlu0 %v298_v53 }
  0x9d   :  { %552 = vadd.xlane.f32.xlu1 %v301_v56 }
  0x9e   :  { %550 = vadd.xlane.f32.xlu0 %v300_v57 }
  0xa1   :  { %556 = vadd.xlane.f32.xlu1 %v303_v60  ;;  %v122_v60 = vld [vmem:[#allocation2 + $0x278] sm:$0xff] }
  0xa2   :  { %554 = vadd.xlane.f32.xlu0 %v302_v61  ;;  %v121_v61 = vld [vmem:[#allocation2 + $0x270] sm:$0xff]  ;;  %v321_v4 = vmul.f32 %v3889_v1, %v122_v60 }
  0xa5   :  { %560 = vadd.xlane.f32.xlu1 %v305_v0 }
  0xa6   :  { %558 = vadd.xlane.f32.xlu0 %v304_v2  ;;  %v4002_v2 = vsub.s32 %v1057_v51, %v3963_v23  ;;  %v328_v51 = vmul.f32 %v3889_v1, %v129_v46 }
  0xa9   :  { %564 = vadd.xlane.f32.xlu1 %v307_v5  ;;  %v320_v5 = vmul.f32 %v3889_v1, %v121_v61 }
  0xaa   :  { %562 = vadd.xlane.f32.xlu0 %v306_v6 }
  0xad   :  { %568 = vadd.xlane.f32.xlu1 %v309_v9  ;;  %v124_v9 = vld [vmem:[#allocation2 + $0x288] sm:$0xff] }
  0xae   :  { %566 = vadd.xlane.f32.xlu0 %v308_v10  ;;  %v123_v10 = vld [vmem:[#allocation2 + $0x280] sm:$0xff] }
  0xb1   :  { %572 = vadd.xlane.f32.xlu1 %v311_v14  ;;  %v323_v14 = vmul.f32 %v3889_v1, %v124_v9 }
  0xb2   :  { %570 = vadd.xlane.f32.xlu0 %v310_v15  ;;  %v322_v15 = vmul.f32 %v3889_v1, %v123_v10 }
  0xb5   :  { %576 = vadd.xlane.f32.xlu1 %v313_v19  ;;  %v126_v19 = vld [vmem:[#allocation2 + $0x298] sm:$0xff] }
  0xb6   :  { %574 = vadd.xlane.f32.xlu0 %v312_v20  ;;  %v439_v29 = vpop.xlane.xlu1 %438  ;;  %v125_v20 = vld [vmem:[#allocation2 + $0x290] sm:$0xff]  ;;  %v325_v25 = vmul.f32 %v3889_v1, %v126_v19 }
  0xb7   :  { %v435_v30 = vpop.xlane.xlu0 %434  ;;  %v1033_v52 = vrot.slane %v439_v29, %v3977_v38  ;;  %v324_v26 = vmul.f32 %v3889_v1, %v125_v20  ;;  %v128_v29 = vld [vmem:[#allocation2 + $0x2a8] sm:$0xff] }
  0xb8   :  { %v1021_v48 = vrot.slane %v435_v30, %v3968_v35  ;;  %v127_v30 = vld [vmem:[#allocation2 + $0x2a0] sm:$0xff]  ;;  %v327_v34 = vmul.f32 %v3889_v1, %v128_v29 }
  0xb9   :  { %580 = vadd.xlane.f32.xlu1 %v315_v27 }
  0xba   :  { %578 = vadd.xlane.f32.xlu0 %v314_v28  ;;  %v441_v41 = vpop.xlane.xlu1 %440 }
  0xbb   :  { %v437_v42 = vpop.xlane.xlu0 %436  ;;  %v1040_v49 = vrot.slane %v441_v41, %v3971_v36 }
  0xbc   :  { %v1026_v50 = vrot.slane %v437_v42, %v3974_v37 }
  0xbd   :  { %584 = vadd.xlane.f32.xlu1 %v317_v39  ;;  %v326_v39 = vmul.f32 %v3889_v1, %v127_v30 }
  0xbe   :  { %v1028_v53 = vsel %vm1027_vm0, %v1026_v50, %v1021_v48  ;;  %582 = vadd.xlane.f32.xlu0 %v316_v40  ;;  %v445_v57 = vpop.xlane.xlu1 %444  ;;  %v329_v50 = vmul.f32 %v3889_v1, %v130_v45 }
  0xbf   :  { %v1035_v56 = vsel %vm1034_vm1, %v1033_v52, %v1028_v53  ;;  %v443_v58 = vpop.xlane.xlu0 %442  ;;  %v1054_v62 = vrot.slane %v445_v57, %v3982_v43 }
  0xc0   :  { %v1042_v63 = vsel %vm1041_vm2, %v1040_v49, %v1035_v56  ;;  %v1047_v0 = vrot.slane %v443_v58, %v3985_v44  ;;  %v131_v56 = vld [vmem:[#allocation2 + $0x2c0] sm:$0xff] }
  0xc1   :  { %588 = vadd.xlane.f32.xlu1 %v319_v54 }
  0xc2   :  { %v1049_v3 = vsel %vm1048_vm3, %v1047_v0, %v1042_v63  ;;  %586 = vadd.xlane.f32.xlu0 %v318_v55  ;;  %v449_v6 = vpop.xlane.xlu1 %448  ;;  %v132_v55 = vld [vmem:[#allocation2 + $0x2c8] sm:$0xff] }
  0xc3   :  { %v1056_v7 = vsel %vm1055_vm4, %v1054_v62, %v1049_v3  ;;  %v447_v8 = vpop.xlane.xlu0 %446  ;;  %v1068_v11 = vrot.slane %v449_v6, %v3996_v59  ;;  %v331_v61 = vmul.f32 %v3889_v1, %v132_v55  ;;  %v330_v62 = vmul.f32 %v3889_v1, %v131_v56 }
  0xc4   :  { %v1061_v12 = vrot.slane %v447_v8, %v4002_v2 }
  0xc5   :  { %592 = vadd.xlane.f32.xlu1 %v321_v4  ;;  %v134_v4 = vld [vmem:[#allocation2 + $0x2d8] sm:$0xff] }
  0xc6   :  { %v1063_v13 = vsel %vm1062_vm5, %v1061_v12, %v1056_v7  ;;  %590 = vadd.xlane.f32.xlu0 %v320_v5  ;;  %v453_v17 = vpop.xlane.xlu1 %452  ;;  %v133_v5 = vld [vmem:[#allocation2 + $0x2d0] sm:$0xff]  ;;  %v333_v10 = vmul.f32 %v3889_v1, %v134_v4 }
  0xc7   :  { %v1070_v16 = vsel %vm1069_vm6, %v1068_v11, %v1063_v13  ;;  %v451_v18 = vpop.xlane.xlu0 %450  ;;  %v1078_v21 = vrot.slane %v453_v17, %v3974_v37  ;;  %v332_v11 = vmul.f32 %v3889_v1, %v133_v5 }
  0xc8   :  { %v1074_v22 = vrot.slane %v451_v18, %v3968_v35 }
  0xc9   :  { %596 = vadd.xlane.f32.xlu1 %v323_v14  ;;  %v136_v14 = vld [vmem:[#allocation2 + $0x2e8] sm:$0xff] }
  0xca   :  { %v1079_v24 = vsel %vm1027_vm0, %v1078_v21, %v1074_v22  ;;  %594 = vadd.xlane.f32.xlu0 %v322_v15  ;;  %v457_v27 = vpop.xlane.xlu1 %456  ;;  %v135_v15 = vld [vmem:[#allocation2 + $0x2e0] sm:$0xff]  ;;  %v335_v19 = vmul.f32 %v3889_v1, %v136_v14 }
  0xcb   :  { %v455_v28 = vpop.xlane.xlu0 %454  ;;  %v1088_v31 = vrot.slane %v457_v27, %v3971_v36  ;;  %v334_v20 = vmul.f32 %v3889_v1, %v135_v15 }
  0xcc   :  { %v1083_v32 = vrot.slane %v455_v28, %v3977_v38 }
  0xcd   :  { %600 = vadd.xlane.f32.xlu1 %v325_v25  ;;  %v138_v25 = vld [vmem:[#allocation2 + $0x2f8] sm:$0xff] }
  0xce   :  { %v1084_v33 = vsel %vm1034_vm1, %v1083_v32, %v1079_v24  ;;  %598 = vadd.xlane.f32.xlu0 %v324_v26  ;;  %v461_v40 = vpop.xlane.xlu1 %460  ;;  %v137_v26 = vld [vmem:[#allocation2 + $0x2f0] sm:$0xff]  ;;  %v337_v30 = vmul.f32 %v3889_v1, %v138_v25 }
  0xcf   :  { %v1089_v41 = vsel %vm1041_vm2, %v1088_v31, %v1084_v33  ;;  %v459_v42 = vpop.xlane.xlu0 %458  ;;  %v1098_v47 = vrot.slane %v461_v40, %v3982_v43  ;;  %v336_v31 = vmul.f32 %v3889_v1, %v137_v26  ;;  %v139_v40 = vld [vmem:[#allocation2 + $0x300] sm:$0xff] }
  0xd0   :  { %v1093_v48 = vrot.slane %v459_v42, %v3985_v44 }
  0xd1   :  { %604 = vadd.xlane.f32.xlu1 %v327_v34 }
  0xd2   :  { %v1094_v49 = vsel %vm1048_vm3, %v1093_v48, %v1089_v41  ;;  %602 = vadd.xlane.f32.xlu0 %v326_v39  ;;  %v465_v52 = vpop.xlane.xlu1 %464  ;;  %v140_v39 = vld [vmem:[#allocation2 + $0x308] sm:$0xff] }
  0xd3   :  { %v1099_v53 = vsel %vm1055_vm4, %v1098_v47, %v1094_v49  ;;  %v463_v54 = vpop.xlane.xlu0 %462  ;;  %v1108_v57 = vrot.slane %v465_v52, %v3996_v59  ;;  %v339_v46 = vmul.f32 %v3889_v1, %v140_v39  ;;  %v338_v47 = vmul.f32 %v3889_v1, %v139_v40  ;;  %v141_v52 = vld [vmem:[#allocation2 + $0x310] sm:$0xff] }
  0xd4   :  { %v1103_v58 = vrot.slane %v463_v54, %v4002_v2 }
  0xd5   :  { %608 = vadd.xlane.f32.xlu1 %v329_v50 }
  0xd6   :  { %v1104_v60 = vsel %vm1062_vm5, %v1103_v58, %v1099_v53  ;;  %606 = vadd.xlane.f32.xlu0 %v328_v51  ;;  %v469_v0 = vpop.xlane.xlu1 %468  ;;  %v142_v51 = vld [vmem:[#allocation2 + $0x318] sm:$0xff]  ;;  %v340_v58 = vmul.f32 %v3889_v1, %v141_v52 }
  0xd7   :  { %v1109_v63 = vsel %vm1069_vm6, %v1108_v57, %v1104_v60  ;;  %v467_v3 = vpop.xlane.xlu0 %466  ;;  %v1117_v7 = vrot.slane %v469_v0, %v3974_v37  ;;  %v341_v57 = vmul.f32 %v3889_v1, %v142_v51 }
  0xd8   :  { %v1969_v6 = vsel %vm1968_vm7, %v1109_v63, %v1070_v16  ;;  %v1113_v8 = vrot.slane %v467_v3, %v3968_v35  ;;  %v143_v63 = vld [vmem:[#allocation2 + $0x320] sm:$0xff] }
  0xd9   :  { %612 = vadd.xlane.f32.xlu1 %v331_v61 }
  0xda   :  { %v1118_v9 = vsel %vm1027_vm0, %v1117_v7, %v1113_v8  ;;  %610 = vadd.xlane.f32.xlu0 %v330_v62  ;;  %v473_v12 = vpop.xlane.xlu1 %472  ;;  %v144_v62 = vld [vmem:[#allocation2 + $0x328] sm:$0xff] }
  0xdb   :  { %v471_v13 = vpop.xlane.xlu0 %470  ;;  %v1127_v17 = vrot.slane %v473_v12, %v3971_v36  ;;  %v343_v5 = vmul.f32 %v3889_v1, %v144_v62 }
  0xdc   :  { %v1122_v16 = vrot.slane %v471_v13, %v3977_v38 }
  0xdd   :  { %616 = vadd.xlane.f32.xlu1 %v333_v10  ;;  %v146_v10 = vld [vmem:[#allocation2 + $0x338] sm:$0xff] }
  0xde   :  { %v1123_v18 = vsel %vm1034_vm1, %v1122_v16, %v1118_v9  ;;  %614 = vadd.xlane.f32.xlu0 %v332_v11  ;;  %v477_v21 = vpop.xlane.xlu1 %476  ;;  %v145_v11 = vld [vmem:[#allocation2 + $0x330] sm:$0xff]  ;;  %v345_v15 = vmul.f32 %v3889_v1, %v146_v10 }
  0xdf   :  { %v1128_v22 = vsel %vm1041_vm2, %v1127_v17, %v1123_v18  ;;  %v475_v24 = vpop.xlane.xlu0 %474  ;;  %v1137_v27 = vrot.slane %v477_v21, %v3982_v43  ;;  %v344_v17 = vmul.f32 %v3889_v1, %v145_v11  ;;  %v147_v21 = vld [vmem:[#allocation2 + $0x340] sm:$0xff] }
  0xe0   :  { %v1132_v28 = vrot.slane %v475_v24, %v3985_v44 }
  0xe1   :  { %620 = vadd.xlane.f32.xlu1 %v335_v19 }
  0xe2   :  { %v1133_v29 = vsel %vm1048_vm3, %v1132_v28, %v1128_v22  ;;  %618 = vadd.xlane.f32.xlu0 %v334_v20  ;;  %v481_v32 = vpop.xlane.xlu1 %480  ;;  %v148_v20 = vld [vmem:[#allocation2 + $0x348] sm:$0xff] }
  0xe3   :  { %v1138_v33 = vsel %vm1055_vm4, %v1137_v27, %v1133_v29  ;;  %v479_v34 = vpop.xlane.xlu0 %478  ;;  %v1147_v41 = vrot.slane %v481_v32, %v3996_v59  ;;  %v347_v26 = vmul.f32 %v3889_v1, %v148_v20  ;;  %v346_v27 = vmul.f32 %v3889_v1, %v147_v21  ;;  %v149_v32 = vld [vmem:[#allocation2 + $0x350] sm:$0xff] }
  0xe4   :  { %v1142_v42 = vrot.slane %v479_v34, %v4002_v2 }
  0xe5   :  { %624 = vadd.xlane.f32.xlu1 %v337_v30 }
  0xe6   :  { %v1143_v45 = vsel %vm1062_vm5, %v1142_v42, %v1138_v33  ;;  %622 = vadd.xlane.f32.xlu0 %v336_v31  ;;  %v485_v49 = vpop.xlane.xlu1 %484  ;;  %v150_v31 = vld [vmem:[#allocation2 + $0x358] sm:$0xff]  ;;  %v348_v42 = vmul.f32 %v3889_v1, %v149_v32 }
  0xe7   :  { %v1148_v48 = vsel %vm1069_vm6, %v1147_v41, %v1143_v45  ;;  %v483_v50 = vpop.xlane.xlu0 %482  ;;  %v1156_v54 = vrot.slane %v485_v49, %v3974_v37  ;;  %v349_v41 = vmul.f32 %v3889_v1, %v150_v31 }
  0xe8   :  { %v1971_v53 = vsel %vm1970_vm8, %v1148_v48, %v1969_v6  ;;  %v1152_v55 = vrot.slane %v483_v50, %v3968_v35  ;;  %v342_v6 = vmul.f32 %v3889_v1, %v143_v63  ;;  %v151_v48 = vld [vmem:[#allocation2 + $0x360] sm:$0xff] }
  0xe9   :  { %628 = vadd.xlane.f32.xlu1 %v339_v46 }
  0xea   :  { %v1157_v56 = vsel %vm1027_vm0, %v1156_v54, %v1152_v55  ;;  %626 = vadd.xlane.f32.xlu0 %v338_v47  ;;  %v489_v60 = vpop.xlane.xlu1 %488  ;;  %v152_v47 = vld [vmem:[#allocation2 + $0x368] sm:$0xff] }
  0xeb   :  { %v487_v61 = vpop.xlane.xlu0 %486  ;;  %v1166_v0 = vrot.slane %v489_v60, %v3971_v36  ;;  %v351_v52 = vmul.f32 %v3889_v1, %v152_v47 }
  0xec   :  { %v1161_v3 = vrot.slane %v487_v61, %v3977_v38 }
  0xed   :  { %632 = vadd.xlane.f32.xlu1 %v341_v57  ;;  %v154_v57 = vld [vmem:[#allocation2 + $0x378] sm:$0xff] }
  0xee   :  { %v1162_v4 = vsel %vm1034_vm1, %v1161_v3, %v1157_v56  ;;  %630 = vadd.xlane.f32.xlu0 %v340_v58  ;;  %v493_v7 = vpop.xlane.xlu1 %492  ;;  %v153_v58 = vld [vmem:[#allocation2 + $0x370] sm:$0xff]  ;;  %v353_v63 = vmul.f32 %v3889_v1, %v154_v57 }
  0xef   :  { %v1167_v8 = vsel %vm1041_vm2, %v1166_v0, %v1162_v4  ;;  %v491_v9 = vpop.xlane.xlu0 %490  ;;  %v1176_v12 = vrot.slane %v493_v7, %v3982_v43  ;;  %v352_v0 = vmul.f32 %v3889_v1, %v153_v58  ;;  %v155_v7 = vld [vmem:[#allocation2 + $0x380] sm:$0xff] }
  0xf0   :  { %v1171_v13 = vrot.slane %v491_v9, %v3985_v44 }
  0xf1   :  { %636 = vadd.xlane.f32.xlu1 %v343_v5 }
  0xf2   :  { %v1172_v14 = vsel %vm1048_vm3, %v1171_v13, %v1167_v8  ;;  %634 = vadd.xlane.f32.xlu0 %v342_v6  ;;  %v497_v16 = vpop.xlane.xlu1 %496  ;;  %v156_v6 = vld [vmem:[#allocation2 + $0x388] sm:$0xff] }
  0xf3   :  { %v1177_v18 = vsel %vm1055_vm4, %v1176_v12, %v1172_v14  ;;  %v495_v19 = vpop.xlane.xlu0 %494  ;;  %v1186_v22 = vrot.slane %v497_v16, %v3996_v59  ;;  %v355_v11 = vmul.f32 %v3889_v1, %v156_v6  ;;  %v354_v12 = vmul.f32 %v3889_v1, %v155_v7  ;;  %v157_v16 = vld [vmem:[#allocation2 + $0x390] sm:$0xff] }
  0xf4   :  { %v1181_v24 = vrot.slane %v495_v19, %v4002_v2 }
  0xf5   :  { %640 = vadd.xlane.f32.xlu1 %v345_v15 }
  0xf6   :  { %v1182_v25 = vsel %vm1062_vm5, %v1181_v24, %v1177_v18  ;;  %638 = vadd.xlane.f32.xlu0 %v344_v17  ;;  %v501_v29 = vpop.xlane.xlu1 %500  ;;  %v158_v17 = vld [vmem:[#allocation2 + $0x398] sm:$0xff]  ;;  %v356_v24 = vmul.f32 %v3889_v1, %v157_v16 }
  0xf7   :  { %v1187_v28 = vsel %vm1069_vm6, %v1186_v22, %v1182_v25  ;;  %v499_v30 = vpop.xlane.xlu0 %498  ;;  %v1195_v34 = vrot.slane %v501_v29, %v3974_v37  ;;  %v357_v22 = vmul.f32 %v3889_v1, %v158_v17 }
  0xf8   :  { %v1973_v33 = vsel %vm1972_vm9, %v1187_v28, %v1971_v53  ;;  %v1191_v39 = vrot.slane %v499_v30, %v3968_v35  ;;  %v350_v53 = vmul.f32 %v3889_v1, %v151_v48  ;;  %v159_v28 = vld [vmem:[#allocation2 + $0x3a0] sm:$0xff] }
  0xf9   :  { %644 = vadd.xlane.f32.xlu1 %v347_v26  ;;  %v4127_v48 = vld [vmem:[%s5491_s2] ss:$0 sm:$0xff]  ;;  %s3835_s2 = smov [#allocation7]  }
  0xfa   :  { %v1196_v40 = vsel %vm1027_vm0, %v1195_v34, %v1191_v39  ;;  %642 = vadd.xlane.f32.xlu0 %v346_v27  ;;  %v505_v45 = vpop.xlane.xlu1 %504  ;;  %v160_v27 = vld [vmem:[#allocation2 + $0x3a8] sm:$0xff]  ;;  %s3535_s13 = sshll.u32 %s3835_s2, 4  ;;  %s3536_s13 = int_to_ptr.vmem [resolvable:$true] %s3535_s13 }
  0xfb   :  { %v503_v46 = vpop.xlane.xlu0 %502  ;;  %v1205_v49 = vrot.slane %v505_v45, %v3971_v36  ;;  %v359_v32 = vmul.f32 %v3889_v1, %v160_v27  ;;  %s3803_s14 = scalar_lea.vmem %s3536_s13, 384  ;;  %p3808_p3 = scmp.lt.s32.totalorder %s3536_s13, %s3536_s13 }
  0xfc   :  { %v1200_v50 = vrot.slane %v503_v46, %v3977_v38  ;;  %p3804_p2 = scmp.ne.s32.totalorder %s3536_s13, %s3803_s14  ;;  %p3809_p4 = scmp.lt.s32.totalorder %s3803_s14, %s3803_s14 }
  0xfd   :  { %648 = vadd.xlane.f32.xlu1 %v349_v41  ;;  %v162_v41 = vld [vmem:[#allocation2 + $0x3b8] sm:$0xff] }
  0xfe   :  { %v1201_v51 = vsel %vm1034_vm1, %v1200_v50, %v1196_v40  ;;  %646 = vadd.xlane.f32.xlu0 %v348_v42  ;;  %v509_v54 = vpop.xlane.xlu1 %508  ;;  %v161_v42 = vld [vmem:[#allocation2 + $0x3b0] sm:$0xff]  ;;  %p3810_p5 = por %p3809_p4, %p3808_p3 }
  0xff   :  { %v1206_v55 = vsel %vm1041_vm2, %v1205_v49, %v1201_v51  ;;  %v507_v56 = vpop.xlane.xlu0 %506  ;;  %v1215_v60 = vrot.slane %v509_v54, %v3982_v43  ;;  %v360_v49 = vmul.f32 %v4127_v48, %v161_v42  ;;  %v163_v54 = vld [vmem:[#allocation2 + $0x3c0] sm:$0xff] }
 0x100   :  { %v1210_v61 = vrot.slane %v507_v56, %v3985_v44  ;;  %p3811_p6 = pnand %p3810_p5, %p3804_p2 }
 0x101   :  { %652 = vadd.xlane.f32.xlu1 %v351_v52 }
 0x102   :  { %v1211_v62 = vsel %vm1048_vm3, %v1210_v61, %v1206_v55  ;;  %650 = vadd.xlane.f32.xlu0 %v350_v53  ;;  %v513_v3 = vpop.xlane.xlu1 %512  ;;  %v164_v53 = vld [vmem:[#allocation2 + $0x3c8] sm:$0xff] }
 0x103   :  { %v1216_v4 = vsel %vm1055_vm4, %v1215_v60, %v1211_v62  ;;  %v511_v5 = vpop.xlane.xlu0 %510  ;;  %v1225_v8 = vrot.slane %v513_v3, %v3996_v59  ;;  %v363_v58 = vmul.f32 %v4127_v48, %v164_v53  ;;  %v362_v60 = vmul.f32 %v4127_v48, %v163_v54  ;;  %v165_v3 = vld [vmem:[#allocation2 + $0x3d0] sm:$0xff] }
 0x104   :  { %v1220_v9 = vrot.slane %v511_v5, %v4002_v2 }
 0x105   :  { %656 = vadd.xlane.f32.xlu1 %v353_v63 }
 0x106   :  { %v1221_v10 = vsel %vm1062_vm5, %v1220_v9, %v1216_v4  ;;  %654 = vadd.xlane.f32.xlu0 %v352_v0  ;;  %v517_v14 = vpop.xlane.xlu1 %516  ;;  %v166_v0 = vld [vmem:[#allocation2 + $0x3d8] sm:$0xff]  ;;  %v364_v9 = vmul.f32 %v4127_v48, %v165_v3 }
 0x107   :  { %v1226_v13 = vsel %vm1069_vm6, %v1225_v8, %v1221_v10  ;;  %v515_v15 = vpop.xlane.xlu0 %514  ;;  %v1234_v18 = vrot.slane %v517_v14, %v3974_v37  ;;  %v365_v8 = vmul.f32 %v4127_v48, %v166_v0 }
 0x108   :  { %v1230_v19 = vrot.slane %v515_v15, %v3968_v35  ;;  %v1975_v20 = vsel %vm1974_vm10, %v1226_v13, %v1973_v33  ;;  %v358_v33 = vmul.f32 %v3889_v1, %v159_v28  ;;  %v361_v1 = vmul.f32 %v4127_v48, %v162_v41  ;;  %v167_v13 = vld [vmem:[#allocation2 + $0x3e0] sm:$0xff] }
 0x109   :  { %660 = vadd.xlane.f32.xlu1 %v355_v11 }
 0x10a   :  { %v1235_v21 = vsel %vm1027_vm0, %v1234_v18, %v1230_v19  ;;  %658 = vadd.xlane.f32.xlu0 %v354_v12  ;;  %v521_v25 = vpop.xlane.xlu1 %520  ;;  %v168_v12 = vld [vmem:[#allocation2 + $0x3e8] sm:$0xff]  ;;  %v366_v18 = vmul.f32 %v4127_v48, %v167_v13 }
 0x10b   :  { %v519_v26 = vpop.xlane.xlu0 %518  ;;  %v1244_v29 = vrot.slane %v521_v25, %v3971_v36  ;;  %v367_v16 = vmul.f32 %v4127_v48, %v168_v12 }
 0x10c   :  { %v1239_v30 = vrot.slane %v519_v26, %v3977_v38 }
 0x10d   :  { %664 = vadd.xlane.f32.xlu1 %v357_v22  ;;  %v170_v22 = vld [vmem:[#allocation2 + $0x3f8] sm:$0xff] }
 0x10e   :  { %v1240_v31 = vsel %vm1034_vm1, %v1239_v30, %v1235_v21  ;;  %662 = vadd.xlane.f32.xlu0 %v356_v24  ;;  %v525_v34 = vpop.xlane.xlu1 %524  ;;  %v169_v24 = vld [vmem:[#allocation2 + $0x3f0] sm:$0xff]  ;;  %v369_v28 = vmul.f32 %v4127_v48, %v170_v22 }
 0x10f   :  { %v1245_v39 = vsel %vm1041_vm2, %v1244_v29, %v1240_v31  ;;  %v523_v40 = vpop.xlane.xlu0 %522  ;;  %v1254_v45 = vrot.slane %v525_v34, %v3982_v43  ;;  %v368_v29 = vmul.f32 %v4127_v48, %v169_v24  ;;  %v171_v34 = vld [vmem:[#allocation2 + $0x400] sm:$0xff] }
 0x110   :  { %v1249_v46 = vrot.slane %v523_v40, %v3985_v44 }
 0x111   :  { %668 = vadd.xlane.f32.xlu1 %v359_v32 }
 0x112   :  { %v1250_v47 = vsel %vm1048_vm3, %v1249_v46, %v1245_v39  ;;  %666 = vadd.xlane.f32.xlu0 %v358_v33  ;;  %v529_v50 = vpop.xlane.xlu1 %528  ;;  %v172_v33 = vld [vmem:[#allocation2 + $0x408] sm:$0xff] }
 0x113   :  { %v1255_v51 = vsel %vm1055_vm4, %v1254_v45, %v1250_v47  ;;  %v527_v52 = vpop.xlane.xlu0 %526  ;;  %v1264_v55 = vrot.slane %v529_v50, %v3996_v59  ;;  %v371_v42 = vmul.f32 %v4127_v48, %v172_v33  ;;  %v370_v45 = vmul.f32 %v4127_v48, %v171_v34 }
 0x114   :  { %v1259_v56 = vrot.slane %v527_v52, %v4002_v2 }
 0x115   :  { %672 = vadd.xlane.f32.xlu1 %v361_v1  ;;  %v174_v1 = vld [vmem:[#allocation2 + $0x418] sm:$0xff] }
 0x116   :  { %v1260_v57 = vsel %vm1062_vm5, %v1259_v56, %v1255_v51  ;;  %670 = vadd.xlane.f32.xlu0 %v360_v49  ;;  %v533_v62 = vpop.xlane.xlu1 %532  ;;  %v173_v49 = vld [vmem:[#allocation2 + $0x410] sm:$0xff] }
 0x117   :  { %v1265_v61 = vsel %vm1069_vm6, %v1264_v55, %v1260_v57  ;;  %v531_v63 = vpop.xlane.xlu0 %530  ;;  %v1273_v4 = vrot.slane %v533_v62, %v3974_v37  ;;  %v373_v55 = vmul.f32 %v4127_v48, %v174_v1  ;;  %v372_v56 = vmul.f32 %v4127_v48, %v173_v49 }
 0x118   :  { %v1269_v5 = vrot.slane %v531_v63, %v3968_v35  ;;  %v1977_v6 = vsel %vm1976_vm11, %v1265_v61, %v1975_v20  ;;  %v175_v61 = vld [vmem:[#allocation2 + $0x420] sm:$0xff] }
 0x119   :  { %676 = vadd.xlane.f32.xlu1 %v363_v58 }
 0x11a   :  { %v1274_v7 = vsel %vm1027_vm0, %v1273_v4, %v1269_v5  ;;  %674 = vadd.xlane.f32.xlu0 %v362_v60  ;;  %v537_v10 = vpop.xlane.xlu1 %536  ;;  %v176_v60 = vld [vmem:[#allocation2 + $0x428] sm:$0xff]  ;;  %v374_v4 = vmul.f32 %v4127_v48, %v175_v61 }
 0x11b   :  { %v535_v11 = vpop.xlane.xlu0 %534  ;;  %v1283_v14 = vrot.slane %v537_v10, %v3971_v36  ;;  %v375_v3 = vmul.f32 %v4127_v48, %v176_v60 }
 0x11c   :  { %v1278_v15 = vrot.slane %v535_v11, %v3977_v38 }
 0x11d   :  { %680 = vadd.xlane.f32.xlu1 %v365_v8  ;;  %v178_v8 = vld [vmem:[#allocation2 + $0x438] sm:$0xff] }
 0x11e   :  { %v1279_v17 = vsel %vm1034_vm1, %v1278_v15, %v1274_v7  ;;  %678 = vadd.xlane.f32.xlu0 %v364_v9  ;;  %v541_v19 = vpop.xlane.xlu1 %540  ;;  %v177_v9 = vld [vmem:[#allocation2 + $0x430] sm:$0xff]  ;;  %v377_v13 = vmul.f32 %v4127_v48, %v178_v8 }
 0x11f   :  { %v1284_v20 = vsel %vm1041_vm2, %v1283_v14, %v1279_v17  ;;  %v539_v21 = vpop.xlane.xlu0 %538  ;;  %v1293_v25 = vrot.slane %v541_v19, %v3982_v43  ;;  %v376_v14 = vmul.f32 %v4127_v48, %v177_v9  ;;  %v179_v19 = vld [vmem:[#allocation2 + $0x440] sm:$0xff] }
 0x120   :  { %v1288_v26 = vrot.slane %v539_v21, %v3985_v44 }
 0x121   :  { %684 = vadd.xlane.f32.xlu1 %v367_v16 }
 0x122   :  { %v1289_v27 = vsel %vm1048_vm3, %v1288_v26, %v1284_v20  ;;  %682 = vadd.xlane.f32.xlu0 %v366_v18  ;;  %v545_v30 = vpop.xlane.xlu1 %544  ;;  %v180_v18 = vld [vmem:[#allocation2 + $0x448] sm:$0xff] }
 0x123   :  { %v1294_v31 = vsel %vm1055_vm4, %v1293_v25, %v1289_v27  ;;  %v543_v32 = vpop.xlane.xlu0 %542  ;;  %v1303_v39 = vrot.slane %v545_v30, %v3996_v59  ;;  %v379_v24 = vmul.f32 %v4127_v48, %v180_v18  ;;  %v378_v25 = vmul.f32 %v4127_v48, %v179_v19 }
 0x124   :  { %v1298_v40 = vrot.slane %v543_v32, %v4002_v2 }
 0x125   :  { %688 = vadd.xlane.f32.xlu1 %v369_v28  ;;  %v182_v28 = vld [vmem:[#allocation2 + $0x458] sm:$0xff] }
 0x126   :  { %v1299_v41 = vsel %vm1062_vm5, %v1298_v40, %v1294_v31  ;;  %686 = vadd.xlane.f32.xlu0 %v368_v29  ;;  %v549_v46 = vpop.xlane.xlu1 %548  ;;  %v181_v29 = vld [vmem:[#allocation2 + $0x450] sm:$0xff] }
 0x127   :  { %v547_v47 = vpop.xlane.xlu0 %546  ;;  %v1304_v50 = vsel %vm1069_vm6, %v1303_v39, %v1299_v41  ;;  %v1312_v51 = vrot.slane %v549_v46, %v3974_v37  ;;  %v381_v39 = vmul.f32 %v4127_v48, %v182_v28  ;;  %v380_v40 = vmul.f32 %v4127_v48, %v181_v29  ;;  %v183_v46 = vld [vmem:[#allocation2 + $0x460] sm:$0xff] }
 0x128   :  { %v1308_v52 = vrot.slane %v547_v47, %v3968_v35  ;;  %v1979_v53 = vsel %vm1978_vm12, %v1304_v50, %v1977_v6 }
 0x129   :  { %692 = vadd.xlane.f32.xlu1 %v371_v42 }
 0x12a   :  { %v1313_v54 = vsel %vm1027_vm0, %v1312_v51, %v1308_v52  ;;  %690 = vadd.xlane.f32.xlu0 %v370_v45  ;;  %v553_v57 = vpop.xlane.xlu1 %552  ;;  %v184_v45 = vld [vmem:[#allocation2 + $0x468] sm:$0xff]  ;;  %v382_v51 = vmul.f32 %v4127_v48, %v183_v46 }
 0x12b   :  { %v551_v58 = vpop.xlane.xlu0 %550  ;;  %v1322_v62 = vrot.slane %v553_v57, %v3971_v36  ;;  %v383_v50 = vmul.f32 %v4127_v48, %v184_v45 }
 0x12c   :  { %v1317_v63 = vrot.slane %v551_v58, %v3977_v38 }
 0x12d   :  { %696 = vadd.xlane.f32.xlu1 %v373_v55  ;;  %v186_v55 = vld [vmem:[#allocation2 + $0x478] sm:$0xff] }
 0x12e   :  { %v1318_v0 = vsel %vm1034_vm1, %v1317_v63, %v1313_v54  ;;  %694 = vadd.xlane.f32.xlu0 %v372_v56  ;;  %v557_v5 = vpop.xlane.xlu1 %556  ;;  %v185_v56 = vld [vmem:[#allocation2 + $0x470] sm:$0xff]  ;;  %v385_v61 = vmul.f32 %v4127_v48, %v186_v55 }
 0x12f   :  { %v1323_v6 = vsel %vm1041_vm2, %v1322_v62, %v1318_v0  ;;  %v555_v7 = vpop.xlane.xlu0 %554  ;;  %v1332_v10 = vrot.slane %v557_v5, %v3982_v43  ;;  %v384_v62 = vmul.f32 %v4127_v48, %v185_v56  ;;  %v187_v5 = vld [vmem:[#allocation2 + $0x480] sm:$0xff] }
 0x130   :  { %v1327_v11 = vrot.slane %v555_v7, %v3985_v44 }
 0x131   :  { %700 = vadd.xlane.f32.xlu1 %v375_v3 }
 0x132   :  { %v1328_v12 = vsel %vm1048_vm3, %v1327_v11, %v1323_v6  ;;  %698 = vadd.xlane.f32.xlu0 %v374_v4  ;;  %v561_v15 = vpop.xlane.xlu1 %560  ;;  %v188_v4 = vld [vmem:[#allocation2 + $0x488] sm:$0xff] }
 0x133   :  { %v1333_v17 = vsel %vm1055_vm4, %v1332_v10, %v1328_v12  ;;  %v559_v16 = vpop.xlane.xlu0 %558  ;;  %v1342_v20 = vrot.slane %v561_v15, %v3996_v59  ;;  %v387_v9 = vmul.f32 %v4127_v48, %v188_v4  ;;  %v386_v10 = vmul.f32 %v4127_v48, %v187_v5  ;;  %v189_v15 = vld [vmem:[#allocation2 + $0x490] sm:$0xff] }
 0x134   :  { %v1337_v21 = vrot.slane %v559_v16, %v4002_v2 }
 0x135   :  { %704 = vadd.xlane.f32.xlu1 %v377_v13 }
 0x136   :  { %v1338_v22 = vsel %vm1062_vm5, %v1337_v21, %v1333_v17  ;;  %702 = vadd.xlane.f32.xlu0 %v376_v14  ;;  %v565_v26 = vpop.xlane.xlu1 %564  ;;  %v190_v14 = vld [vmem:[#allocation2 + $0x498] sm:$0xff] }
 0x137   :  { %v563_v27 = vpop.xlane.xlu0 %562  ;;  %v1343_v30 = vsel %vm1069_vm6, %v1342_v20, %v1338_v22  ;;  %v1351_v31 = vrot.slane %v565_v26, %v3974_v37  ;;  %v389_v19 = vmul.f32 %v4127_v48, %v190_v14  ;;  %v388_v20 = vmul.f32 %v4127_v48, %v189_v15 }
 0x138   :  { %v1347_v32 = vrot.slane %v563_v27, %v3968_v35  ;;  %v4189_v33 = vsel %vm1980_vm13, %v1343_v30, %v1979_v53 }
 0x139   :  { %708 = vadd.xlane.f32.xlu1 %v379_v24  ;;  %v192_v24 = vld [vmem:[#allocation2 + $0x4a8] sm:$0xff] }
 0x13a   :  { %v1352_v34 = vsel %vm1027_vm0, %v1351_v31, %v1347_v32  ;;  %706 = vadd.xlane.f32.xlu0 %v378_v25  ;;  %v569_v41 = vpop.xlane.xlu1 %568  ;;  %v191_v25 = vld [vmem:[#allocation2 + $0x4a0] sm:$0xff]  ;;  %v391_v29 = vmul.f32 %v4127_v48, %v192_v24 }
 0x13b   :  { %v567_v42 = vpop.xlane.xlu0 %566  ;;  %v1361_v47 = vrot.slane %v569_v41, %v3971_v36  ;;  %v390_v30 = vmul.f32 %v4127_v48, %v191_v25 }
 0x13c   :  { %v1356_v1 = vrot.slane %v567_v42, %v3977_v38 }
 0x13d   :  { %712 = vadd.xlane.f32.xlu1 %v381_v39  ;;  %v194_v39 = vld [vmem:[#allocation2 + $0x4b8] sm:$0xff] }
 0x13e   :  { %v1357_v49 = vsel %vm1034_vm1, %v1356_v1, %v1352_v34  ;;  %710 = vadd.xlane.f32.xlu0 %v380_v40  ;;  %v573_v52 = vpop.xlane.xlu1 %572  ;;  %v193_v40 = vld [vmem:[#allocation2 + $0x4b0] sm:$0xff]  ;;  %v393_v46 = vmul.f32 %v4127_v48, %v194_v39 }
 0x13f   :  { %v1362_v53 = vsel %vm1041_vm2, %v1361_v47, %v1357_v49  ;;  %v571_v54 = vpop.xlane.xlu0 %570  ;;  %v1371_v57 = vrot.slane %v573_v52, %v3982_v43  ;;  %v392_v47 = vmul.f32 %v4127_v48, %v193_v40  ;;  %v195_v52 = vld [vmem:[#allocation2 + $0x4c0] sm:$0xff] }
 0x140   :  { %v1366_v58 = vrot.slane %v571_v54, %v3985_v44 }
 0x141   :  { %716 = vadd.xlane.f32.xlu1 %v383_v50 }
 0x142   :  { %v1367_v60 = vsel %vm1048_vm3, %v1366_v58, %v1362_v53  ;;  %714 = vadd.xlane.f32.xlu0 %v382_v51  ;;  %v577_v63 = vpop.xlane.xlu1 %576  ;;  %v196_v51 = vld [vmem:[#allocation2 + $0x4c8] sm:$0xff] }
 0x143   :  { %v1372_v0 = vsel %vm1055_vm4, %v1371_v57, %v1367_v60  ;;  %v575_v3 = vpop.xlane.xlu0 %574  ;;  %v1381_v6 = vrot.slane %v577_v63, %v3996_v59  ;;  %v395_v56 = vmul.f32 %v4127_v48, %v196_v51  ;;  %v394_v57 = vmul.f32 %v4127_v48, %v195_v52  ;;  %v197_v63 = vld [vmem:[#allocation2 + $0x4d0] sm:$0xff] }
 0x144   :  { %v1376_v7 = vrot.slane %v575_v3, %v4002_v2 }
 0x145   :  { %720 = vadd.xlane.f32.xlu1 %v385_v61 }
 0x146   :  { %v1377_v8 = vsel %vm1062_vm5, %v1376_v7, %v1372_v0  ;;  %718 = vadd.xlane.f32.xlu0 %v384_v62  ;;  %v581_v12 = vpop.xlane.xlu1 %580  ;;  %v198_v62 = vld [vmem:[#allocation2 + $0x4d8] sm:$0xff]  ;;  %v396_v7 = vmul.f32 %v4127_v48, %v197_v63 }
 0x147   :  { %v1382_v11 = vsel %vm1069_vm6, %v1381_v6, %v1377_v8  ;;  %v579_v13 = vpop.xlane.xlu0 %578  ;;  %v1390_v17 = vrot.slane %v581_v12, %v3974_v37  ;;  %v397_v6 = vmul.f32 %v4127_v48, %v198_v62  ;;  %v199_v12 = vld [vmem:[#allocation2 + $0x4e0] sm:$0xff] }
 0x148   :  { %v1386_v16 = vrot.slane %v579_v13, %v3968_v35 }
 0x149   :  { %724 = vadd.xlane.f32.xlu1 %v387_v9 }
 0x14a   :  { %v1391_v18 = vsel %vm1027_vm0, %v1390_v17, %v1386_v16  ;;  %722 = vadd.xlane.f32.xlu0 %v386_v10  ;;  %v585_v21 = vpop.xlane.xlu1 %584  ;;  %v200_v10 = vld [vmem:[#allocation2 + $0x4e8] sm:$0xff]  ;;  %v398_v17 = vmul.f32 %v4127_v48, %v199_v12 }
 0x14b   :  { %v583_v22 = vpop.xlane.xlu0 %582  ;;  %v1400_v26 = vrot.slane %v585_v21, %v3971_v36  ;;  %v399_v15 = vmul.f32 %v4127_v48, %v200_v10  ;;  %v201_v21 = vld [vmem:[#allocation2 + $0x4f0] sm:$0xff] }
 0x14c   :  { %v1395_v27 = vrot.slane %v583_v22, %v3977_v38 }
 0x14d   :  { %728 = vadd.xlane.f32.xlu1 %v389_v19 }
 0x14e   :  { %v1396_v28 = vsel %vm1034_vm1, %v1395_v27, %v1391_v18  ;;  %726 = vadd.xlane.f32.xlu0 %v388_v20  ;;  %v589_v31 = vpop.xlane.xlu1 %588  ;;  %v202_v20 = vld [vmem:[#allocation2 + $0x4f8] sm:$0xff]  ;;  %v400_v27 = vmul.f32 %v4127_v48, %v201_v21 }
 0x14f   :  { %v1401_v32 = vsel %vm1041_vm2, %v1400_v26, %v1396_v28  ;;  %v587_v34 = vpop.xlane.xlu0 %586  ;;  %v1410_v41 = vrot.slane %v589_v31, %v3982_v43  ;;  %v401_v26 = vmul.f32 %v4127_v48, %v202_v20  ;;  %v204_v31 = vld [vmem:[#allocation2 + $0x508] sm:$0xff] }
 0x150   :  { %v1405_v42 = vrot.slane %v587_v34, %v3985_v44 }
 0x151   :  { %732 = vadd.xlane.f32.xlu1 %v391_v29 }
 0x152   :  { %v1406_v45 = vsel %vm1048_vm3, %v1405_v42, %v1401_v32  ;;  %730 = vadd.xlane.f32.xlu0 %v390_v30  ;;  %v593_v1 = vpop.xlane.xlu1 %592  ;;  %v203_v32 = vld [vmem:[#allocation2 + $0x500] sm:$0xff] }
 0x153   :  { %v1411_v49 = vsel %vm1055_vm4, %v1410_v41, %v1406_v45  ;;  %v591_v50 = vpop.xlane.xlu0 %590  ;;  %v1420_v53 = vrot.slane %v593_v1, %v3996_v59  ;;  %v403_v41 = vmul.f32 %v4127_v48, %v204_v31  ;;  %v402_v42 = vmul.f32 %v4127_v48, %v203_v32  ;;  %v206_v1 = vld [vmem:[#allocation2 + $0x518] sm:$0xff] }
 0x154   :  { %v1415_v54 = vrot.slane %v591_v50, %v4002_v2 }
 0x155   :  { %736 = vadd.xlane.f32.xlu1 %v393_v46 }
 0x156   :  { %v1416_v55 = vsel %vm1062_vm5, %v1415_v54, %v1411_v49  ;;  %734 = vadd.xlane.f32.xlu0 %v392_v47  ;;  %v597_v60 = vpop.xlane.xlu1 %596  ;;  %v205_v49 = vld [vmem:[#allocation2 + $0x510] sm:$0xff]  ;;  %v405_v54 = vmul.f32 %v4127_v48, %v206_v1  ;;  %v218_v1 = vld [vmem:[#allocation2 + $0x578] sm:$0xff] }
 0x157   :  { %v1421_v58 = vsel %vm1069_vm6, %v1420_v53, %v1416_v55  ;;  %v595_v61 = vpop.xlane.xlu0 %594  ;;  %v1429_v3 = vrot.slane %v597_v60, %v3974_v37  ;;  %v404_v55 = vmul.f32 %v4127_v48, %v205_v49  ;;  %v207_v60 = vld [vmem:[#allocation2 + $0x520] sm:$0xff]  ;;  %v217_v49 = vld [vmem:[#allocation2 + $0x570] sm:$0xff] }
 0x158   :  { %v1982_v0 = vsel %vm1968_vm7, %v1421_v58, %v1382_v11  ;;  %v1425_v4 = vrot.slane %v595_v61, %v3968_v35  ;;  %v208_v58 = vld [vmem:[#allocation2 + $0x528] sm:$0xff] }
 0x159   :  { %740 = vadd.xlane.f32.xlu1 %v395_v56 }
 0x15a   :  { %v1430_v5 = vsel %vm1027_vm0, %v1429_v3, %v1425_v4  ;;  %738 = vadd.xlane.f32.xlu0 %v394_v57  ;;  %v601_v8 = vpop.xlane.xlu1 %600  ;;  %v406_v3 = vmul.f32 %v4127_v48, %v207_v60 }
 0x15b   :  { %v599_v9 = vpop.xlane.xlu0 %598  ;;  %v1439_v13 = vrot.slane %v601_v8, %v3971_v36  ;;  %v209_v8 = vld [vmem:[#allocation2 + $0x530] sm:$0xff] }
 0x15c   :  { %v1434_v11 = vrot.slane %v599_v9, %v3977_v38 }
 0x15d   :  { %744 = vadd.xlane.f32.xlu1 %v397_v6 }
 0x15e   :  { %v1435_v14 = vsel %vm1034_vm1, %v1434_v11, %v1430_v5  ;;  %742 = vadd.xlane.f32.xlu0 %v396_v7  ;;  %v605_v16 = vpop.xlane.xlu1 %604  ;;  %v210_v7 = vld [vmem:[#allocation2 + $0x538] sm:$0xff]  ;;  %v408_v11 = vmul.f32 %v4127_v48, %v209_v8 }
 0x15f   :  { %v1440_v18 = vsel %vm1041_vm2, %v1439_v13, %v1435_v14  ;;  %v603_v19 = vpop.xlane.xlu0 %602  ;;  %v1449_v22 = vrot.slane %v605_v16, %v3982_v43  ;;  %v409_v13 = vmul.f32 %v4127_v48, %v210_v7  ;;  %v211_v16 = vld [vmem:[#allocation2 + $0x540] sm:$0xff] }
 0x160   :  { %v1444_v24 = vrot.slane %v603_v19, %v3985_v44 }
 0x161   :  { %748 = vadd.xlane.f32.xlu1 %v399_v15 }
 0x162   :  { %v1445_v25 = vsel %vm1048_vm3, %v1444_v24, %v1440_v18  ;;  %746 = vadd.xlane.f32.xlu0 %v398_v17  ;;  %v609_v28 = vpop.xlane.xlu1 %608  ;;  %v212_v17 = vld [vmem:[#allocation2 + $0x548] sm:$0xff]  ;;  %v410_v24 = vmul.f32 %v4127_v48, %v211_v16 }
 0x163   :  { %v1450_v29 = vsel %vm1055_vm4, %v1449_v22, %v1445_v25  ;;  %v607_v30 = vpop.xlane.xlu0 %606  ;;  %v1459_v34 = vrot.slane %v609_v28, %v3996_v59  ;;  %v411_v22 = vmul.f32 %v4127_v48, %v212_v17  ;;  %v214_v28 = vld [vmem:[#allocation2 + $0x558] sm:$0xff]  ;;  %v228_v16 = vld [vmem:[#allocation2 + $0x5c8] sm:$0xff] }
 0x164   :  { %v1454_v39 = vrot.slane %v607_v30, %v4002_v2  ;;  %v413_v31 = vmul.f32 %v4127_v48, %v214_v28 }
 0x165   :  { %752 = vadd.xlane.f32.xlu1 %v401_v26 }
 0x166   :  { %v1455_v40 = vsel %vm1062_vm5, %v1454_v39, %v1450_v29  ;;  %750 = vadd.xlane.f32.xlu0 %v400_v27  ;;  %v613_v46 = vpop.xlane.xlu1 %612  ;;  %v213_v29 = vld [vmem:[#allocation2 + $0x550] sm:$0xff] }
 0x167   :  { %v1460_v45 = vsel %vm1069_vm6, %v1459_v34, %v1455_v40  ;;  %v611_v47 = vpop.xlane.xlu0 %610  ;;  %v1468_v51 = vrot.slane %v613_v46, %v3974_v37  ;;  %v412_v32 = vmul.f32 %v4127_v48, %v213_v29  ;;  %v216_v40 = vld [vmem:[#allocation2 + $0x568] sm:$0xff] }
 0x168   :  { %v1983_v50 = vsel %vm1970_vm8, %v1460_v45, %v1982_v0  ;;  %v1464_v52 = vrot.slane %v611_v47, %v3968_v35  ;;  %v407_v0 = vmul.f32 %v4127_v48, %v208_v58 }
 0x169   :  { %756 = vadd.xlane.f32.xlu1 %v403_v41  ;;  %v215_v41 = vld [vmem:[#allocation2 + $0x560] sm:$0xff] }
 0x16a   :  { %v1469_v53 = vsel %vm1027_vm0, %v1468_v51, %v1464_v52  ;;  %754 = vadd.xlane.f32.xlu0 %v402_v42  ;;  %v617_v56 = vpop.xlane.xlu1 %616  ;;  %v415_v42 = vmul.f32 %v4127_v48, %v216_v40  ;;  %v414_v45 = vmul.f32 %v4127_v48, %v215_v41  ;;  %v416_v51 = vmul.f32 %v4127_v48, %v217_v49  ;;  %v231_v40 = vld [vmem:[#allocation2 + $0x5e0] sm:$0xff]  ;;  %v232_v41 = vld [vmem:[#allocation2 + $0x5e8] sm:$0xff] }
 0x16b   :  { %v615_v57 = vpop.xlane.xlu0 %614  ;;  %v1478_v61 = vrot.slane %v617_v56, %v3971_v36 }
 0x16c   :  { %v1473_v62 = vrot.slane %v615_v57, %v3977_v38 }
 0x16d   :  { %760 = vadd.xlane.f32.xlu1 %v405_v54  ;;  %v220_v54 = vld [vmem:[#allocation2 + $0x588] sm:$0xff] }
 0x16e   :  { %v1474_v63 = vsel %vm1034_vm1, %v1473_v62, %v1469_v53  ;;  %758 = vadd.xlane.f32.xlu0 %v404_v55  ;;  %v621_v4 = vpop.xlane.xlu1 %620  ;;  %v219_v55 = vld [vmem:[#allocation2 + $0x580] sm:$0xff]  ;;  %v419_v56 = vmul.f32 %v4127_v48, %v220_v54  ;;  %v221_v62 = vld [vmem:[#allocation2 + $0x590] sm:$0xff] }
 0x16f   :  { %v1479_v5 = vsel %vm1041_vm2, %v1478_v61, %v1474_v63  ;;  %v619_v6 = vpop.xlane.xlu0 %618  ;;  %v1488_v10 = vrot.slane %v621_v4, %v3982_v43  ;;  %v418_v57 = vmul.f32 %v4127_v48, %v219_v55  ;;  %v222_v61 = vld [vmem:[#allocation2 + $0x598] sm:$0xff]  ;;  %v818_v54 = vld [vmem:[#allocation5] sm:$0xff] }
 0x170   :  { %v1483_v9 = vrot.slane %v619_v6, %v3985_v44  ;;  %v421_v63 = vmul.f32 %v4127_v48, %v222_v61  ;;  %v223_v6 = vld [vmem:[#allocation2 + $0x5a0] sm:$0xff]  ;;  %vm821_vm14 = vcmp.ne.s32.totalorder %v818_v54, 0 }
 0x171   :  { %764 = vadd.xlane.f32.xlu1 %v407_v0  ;;  %v420_v0 = vmul.f32 %v4127_v48, %v221_v62  ;;  %v422_v8 = vmul.f32 %v4127_v48, %v223_v6 }
 0x172   :  { %v1484_v12 = vsel %vm1048_vm3, %v1483_v9, %v1479_v5  ;;  %762 = vadd.xlane.f32.xlu0 %v406_v3  ;;  %v625_v14 = vpop.xlane.xlu1 %624  ;;  %v224_v5 = vld [vmem:[#allocation2 + $0x5a8] sm:$0xff] }
 0x173   :  { %v623_v15 = vpop.xlane.xlu0 %622  ;;  %v1498_v18 = vrot.slane %v625_v14, %v3996_v59  ;;  %v1489_v20 = vsel %vm1055_vm4, %v1488_v10, %v1484_v12  ;;  %v423_v7 = vmul.f32 %v4127_v48, %v224_v5  ;;  %v226_v12 = vld [vmem:[#allocation2 + $0x5b8] sm:$0xff] }
 0x174   :  { %v1493_v19 = vrot.slane %v623_v15, %v4002_v2 }
 0x175   :  { %768 = vadd.xlane.f32.xlu1 %v409_v13  ;;  %v225_v13 = vld [vmem:[#allocation2 + $0x5b0] sm:$0xff] }
 0x176   :  { %v1494_v21 = vsel %vm1062_vm5, %v1493_v19, %v1489_v20  ;;  %766 = vadd.xlane.f32.xlu0 %v408_v11  ;;  %v4283_v26 = vpop.xlane.xlu1 %628  ;;  %v425_v11 = vmul.f32 %v4127_v48, %v226_v12  ;;  %v424_v14 = vmul.f32 %v4127_v48, %v225_v13  ;;  %v427_v19 = vmul.f32 %v4127_v48, %v228_v16 }
 0x177   :  { %v1499_v25 = vsel %vm1069_vm6, %v1498_v18, %v1494_v21  ;;  %v4285_v27 = vpop.xlane.xlu0 %626  ;;  %v227_v18 = vld [vmem:[#allocation2 + $0x5c0] sm:$0xff]  ;;  %v1507_v55 = vrot.slane %v4283_v26, %v3974_v37 }
 0x178   :  { %v4288_v30 = vsel %vm1972_vm9, %v1499_v25, %v1983_v50  ;;  %v417_v50 = vmul.f32 %v4127_v48, %v218_v1  ;;  %v426_v20 = vmul.f32 %v4127_v48, %v227_v18  ;;  %v230_v25 = vld [vmem:[#allocation2 + $0x5d8] sm:$0xff]  ;;  %v233_v1 = vld [vmem:[#allocation2 + $0x5f0] sm:$0xff] }
 0x179   :  { %772 = vadd.xlane.f32.xlu1 %v411_v22  ;;  %v429_v29 = vmul.f32 %v4127_v48, %v230_v25 }
 0x17a   :  { %770 = vadd.xlane.f32.xlu0 %v410_v24  ;;  %v4292_v34 = vpop.xlane.xlu1 %632  ;;  %v229_v24 = vld [vmem:[#allocation2 + $0x5d0] sm:$0xff] }
 0x17b   :  { %v4294_v39 = vpop.xlane.xlu0 %630  ;;  %v428_v28 = vmul.f32 %v4127_v48, %v229_v24 }
 0x17d   :  { %776 = vadd.xlane.f32.xlu1 %v413_v31 }
 0x17e   :  { %774 = vadd.xlane.f32.xlu0 %v412_v32  ;;  %v4298_v46 = vpop.xlane.xlu1 %636 }
 0x17f   :  { %v4300_v47 = vpop.xlane.xlu0 %634 }
 0x180   :  { %v1522_v13 = vrot.slane %v4300_v47, %v3985_v44 }
 0x181   :  { %780 = vadd.xlane.f32.xlu1 %v415_v42  ;;  %v430_v42 = vmul.f32 %v4127_v48, %v231_v40 }
 0x182   :  { %778 = vadd.xlane.f32.xlu0 %v414_v45  ;;  %v4304_v52 = vpop.xlane.xlu1 %640  ;;  %v431_v45 = vmul.f32 %v4127_v48, %v232_v41 }
 0x183   :  { %v4306_v53 = vpop.xlane.xlu0 %638 }
 0x185   :  { %784 = vadd.xlane.f32.xlu1 %v417_v50 }
 0x186   :  { %782 = vadd.xlane.f32.xlu0 %v416_v51  ;;  %v4310_v58 = vpop.xlane.xlu1 %644  ;;  %v234_v51 = vld [vmem:[#allocation2 + $0x5f8] sm:$0xff] }
 0x187   :  { %v4312_v60 = vpop.xlane.xlu0 %642  ;;  %v1546_v61 = vrot.slane %v4310_v58, %v3974_v37 }
 0x188   :  { %v1542_v62 = vrot.slane %v4312_v60, %v3968_v35 }
 0x189   :  { %788 = vadd.xlane.f32.xlu1 %v419_v56  ;;  %v1503_v56 = vrot.slane %v4285_v27, %v3968_v35 }
 0x18a   :  { %786 = vadd.xlane.f32.xlu0 %v418_v57  ;;  %v4316_v3 = vpop.xlane.xlu1 %648  ;;  %v432_v57 = vmul.f32 %v4127_v48, %v233_v1 }
 0x18b   :  { %v4318_v4 = vpop.xlane.xlu0 %646  ;;  %v1508_v60 = vsel %vm1027_vm0, %v1507_v55, %v1503_v56 }
 0x18c   :  { %v1551_v26 = vrot.slane %v4318_v4, %v3977_v38  ;;  %v1547_v4 = vsel %vm1027_vm0, %v1546_v61, %v1542_v62 }
 0x18d   :  { %792 = vadd.xlane.f32.xlu1 %v421_v63  ;;  %v433_v63 = vmul.f32 %v4127_v48, %v234_v51  ;;  %v4363_v48 = vsel %vm821_vm14, -1e+30, %v4189_v33  ;;  %v1537_v51 = vrot.slane %v4304_v52, %v3996_v59 }
 0x18e   :  { %790 = vadd.xlane.f32.xlu0 %v420_v0  ;;  %v4322_v9 = vpop.xlane.xlu1 %652  ;;  %v1512_v0 = vrot.slane %v4294_v39, %v3977_v38  ;;  %5512 = vst [vmem:[#allocation12_spill] sm:$0xff] %v4363_v48  ;;  %v1517_v39 = vrot.slane %v4292_v34, %v3971_v36 }
 0x18f   :  { %v4324_v10 = vpop.xlane.xlu0 %650 }
 0x190   :  { %v1513_v12 = vsel %vm1034_vm1, %v1512_v0, %v1508_v60  ;;  %v1561_v33 = vrot.slane %v4324_v10, %v3985_v44  ;;  %v1527_v10 = vrot.slane %v4298_v46, %v3982_v43 }
 0x191   :  { %796 = vadd.xlane.f32.xlu1 %v423_v7 }
 0x192   :  { %794 = vadd.xlane.f32.xlu0 %v422_v8  ;;  %v4328_v15 = vpop.xlane.xlu1 %656  ;;  %v1556_v8 = vrot.slane %v4316_v3, %v3971_v36  ;;  %v2003_v3 = vsel %vm2002_vm15, %v4363_v48, -inf }
 0x193   :  { %v4330_v17 = vpop.xlane.xlu0 %654  ;;  %v1576_v55 = vrot.slane %v4328_v15, %v3996_v59 }
 0x194   :  { %v1571_v46 = vrot.slane %v4330_v17, %v4002_v2 }
 0x195   :  { %800 = vadd.xlane.f32.xlu1 %v425_v11  ;;  %v1552_v11 = vsel %vm1034_vm1, %v1551_v26, %v1547_v4  ;;  %v819_v4 = vld [vmem:[#allocation5 + $0x8] sm:$0xff] }
 0x196   :  { %798 = vadd.xlane.f32.xlu0 %v424_v14  ;;  %v661_v21 = vpop.xlane.xlu1 %660  ;;  %v1557_v24 = vsel %vm1041_vm2, %v1556_v8, %v1552_v11  ;;  %vm822_vm14 = vcmp.ne.s32.totalorder %v819_v4, 0 }
 0x197   :  { %v659_v22 = vpop.xlane.xlu0 %658  ;;  %v1585_v6 = vrot.slane %v661_v21, %v3974_v37 }
 0x198   :  { %v1581_v58 = vrot.slane %v659_v22, %v3968_v35  ;;  %v1518_v22 = vsel %vm1041_vm2, %v1517_v39, %v1513_v12 }
 0x199   :  { %804 = vadd.xlane.f32.xlu1 %v427_v19  ;;  %v1523_v25 = vsel %vm1048_vm3, %v1522_v13, %v1518_v22 }
 0x19a   :  { %802 = vadd.xlane.f32.xlu0 %v426_v20  ;;  %v4336_v31 = vpop.xlane.xlu1 %664  ;;  %v1586_v34 = vsel %vm1027_vm0, %v1585_v6, %v1581_v58  ;;  %v1528_v17 = vsel %vm1055_vm4, %v1527_v10, %v1523_v25 }
 0x19b   :  { %v663_v32 = vpop.xlane.xlu0 %662  ;;  %v1595_v18 = vrot.slane %v4336_v31, %v3971_v36  ;;  %v1562_v31 = vsel %vm1048_vm3, %v1561_v33, %v1557_v24 }
 0x19c   :  { %v1590_v7 = vrot.slane %v663_v32, %v3977_v38 }
 0x19d   :  { %808 = vadd.xlane.f32.xlu1 %v429_v29  ;;  %v1566_v29 = vrot.slane %v4322_v9, %v3982_v43 }
 0x19e   :  { %806 = vadd.xlane.f32.xlu0 %v428_v28  ;;  %v4340_v49 = vpop.xlane.xlu1 %668  ;;  %v1591_v19 = vsel %vm1034_vm1, %v1590_v7, %v1586_v34  ;;  %v1532_v28 = vrot.slane %v4306_v53, %v4002_v2 }
 0x19f   :  { %v667_v50 = vpop.xlane.xlu0 %666  ;;  %v1605_v41 = vrot.slane %v4340_v49, %v3982_v43  ;;  %v1567_v56 = vsel %vm1055_vm4, %v1566_v29, %v1562_v31 }
 0x1a0   :  { %v1600_v20 = vrot.slane %v667_v50, %v3985_v44  ;;  %v1533_v49 = vsel %vm1062_vm5, %v1532_v28, %v1528_v17  ;;  %v1572_v62 = vsel %vm1062_vm5, %v1571_v46, %v1567_v56 }
 0x1a1   :  { %812 = vadd.xlane.f32.xlu1 %v431_v45  ;;  %v1538_v15 = vsel %vm1069_vm6, %v1537_v51, %v1533_v49  ;;  %v1577_v60 = vsel %vm1069_vm6, %v1576_v55, %v1572_v62 }
 0x1a2   :  { %810 = vadd.xlane.f32.xlu0 %v430_v42  ;;  %v4356_v27 = vpop.xlane.xlu1 %672  ;;  %v1596_v42 = vsel %vm1041_vm2, %v1595_v18, %v1591_v19  ;;  %v1985_v11 = vsel %vm1974_vm10, %v1538_v15, %v4288_v30 }
 0x1a3   :  { %v671_v5 = vpop.xlane.xlu0 %670  ;;  %v1601_v1 = vsel %vm1048_vm3, %v1600_v20, %v1596_v42 }
 0x1a4   :  { %v1610_v53 = vrot.slane %v671_v5, %v4002_v2  ;;  %v1606_v52 = vsel %vm1055_vm4, %v1605_v41, %v1601_v1 }
 0x1a5   :  { %816 = vadd.xlane.f32.xlu1 %v433_v63  ;;  %v1615_v63 = vrot.slane %v4356_v27, %v3996_v59 }
 0x1a6   :  { %814 = vadd.xlane.f32.xlu0 %v432_v57  ;;  %v677_v14 = vpop.xlane.xlu1 %676  ;;  %v1611_v26 = vsel %vm1062_vm5, %v1610_v53, %v1606_v52 }
 0x1a7   :  { %v675_v16 = vpop.xlane.xlu0 %674  ;;  %v1624_v47 = vrot.slane %v677_v14, %v3974_v37  ;;  %v1616_v12 = vsel %vm1069_vm6, %v1615_v63, %v1611_v26  ;;  %v1986_v14 = vsel %vm1976_vm11, %v1577_v60, %v1985_v11 }
 0x1a8   :  { %v1620_v21 = vrot.slane %v675_v16, %v3968_v35 }
 0x1aa   :  { %2004 = vmax.xlane.f32.xlu0 %v2003_v3  ;;  %v681_v32 = vpop.xlane.xlu1 %680  ;;  %v1625_v9 = vsel %vm1027_vm0, %v1624_v47, %v1620_v21  ;;  %v1987_v3 = vsel %vm1978_vm12, %v1616_v12, %v1986_v14 }
 0x1ab   :  { %v679_v40 = vpop.xlane.xlu0 %678  ;;  %v1634_v50 = vrot.slane %v681_v32, %v3971_v36 }
 0x1ac   :  { %v1629_v45 = vrot.slane %v679_v40, %v3977_v38 }
 0x1ae   :  { %v1630_v54 = vsel %vm1034_vm1, %v1629_v45, %v1625_v9  ;;  %v685_v57 = vpop.xlane.xlu1 %684 }
 0x1af   :  { %v683_v61 = vpop.xlane.xlu0 %682  ;;  %v1644_v5 = vrot.slane %v685_v57, %v3982_v43  ;;  %v1635_v6 = vsel %vm1041_vm2, %v1634_v50, %v1630_v54 }
 0x1b0   :  { %v1639_v0 = vrot.slane %v683_v61, %v3985_v44 }
 0x1b2   :  { %v1640_v58 = vsel %vm1048_vm3, %v1639_v0, %v1635_v6  ;;  %v689_v7 = vpop.xlane.xlu1 %688 }
 0x1b3   :  { %v687_v39 = vpop.xlane.xlu0 %686  ;;  %v1654_v27 = vrot.slane %v689_v7, %v3996_v59  ;;  %v1645_v13 = vsel %vm1055_vm4, %v1644_v5, %v1640_v58 }
 0x1b4   :  { %v1649_v8 = vrot.slane %v687_v39, %v4002_v2 }
 0x1b6   :  { %v1650_v33 = vsel %vm1062_vm5, %v1649_v8, %v1645_v13  ;;  %v693_v16 = vpop.xlane.xlu1 %692 }
 0x1b7   :  { %v691_v34 = vpop.xlane.xlu0 %690  ;;  %v1655_v18 = vsel %vm1069_vm6, %v1654_v27, %v1650_v33  ;;  %v1663_v11 = vrot.slane %v693_v16, %v3974_v37 }
 0x1b8   :  { %v1988_v19 = vsel %vm1980_vm13, %v1655_v18, %v1987_v3  ;;  %v1659_v33 = vrot.slane %v691_v34, %v3968_v35 }
 0x1b9   :  { %v4435_v20 = vsel %vm822_vm14, -1e+30, %v1988_v19 }
 0x1ba   :  { %5513 = vst [vmem:[#allocation13_spill] sm:$0xff] %v4435_v20  ;;  %v2006_v47 = vsel %vm2002_vm15, %v4435_v20, -inf  ;;  %v4439_v21 = vpop.xlane.xlu1 %696  ;;  %v1664_v20 = vsel %vm1027_vm0, %v1663_v11, %v1659_v33 }
 0x1bb   :  { %2007 = vmax.xlane.f32.xlu1 %v2006_v47  ;;  %v695_v30 = vpop.xlane.xlu0 %694  ;;  %v1673_v48 = vrot.slane %v4439_v21, %v3971_v36 }
 0x1bc   :  { %v1668_v14 = vrot.slane %v695_v30, %v3977_v38 }
 0x1be   :  { %v4441_v10 = vpop.xlane.xlu1 %700  ;;  %v1669_v16 = vsel %vm1034_vm1, %v1668_v14, %v1664_v20 }
 0x1bf   :  { %v4443_v22 = vpop.xlane.xlu0 %698  ;;  %v1674_v14 = vsel %vm1041_vm2, %v1673_v48, %v1669_v16 }
 0x1c0   :  { %v1678_v34 = vrot.slane %v4443_v22, %v3985_v44  ;;  %v1683_v22 = vrot.slane %v4441_v10, %v3982_v43 }
 0x1c2   :  { %v4445_v24 = vpop.xlane.xlu1 %704 }
 0x1c3   :  { %v4447_v25 = vpop.xlane.xlu0 %702 }
 0x1c6   :  { %v709_v28 = vpop.xlane.xlu1 %708 }
 0x1c7   :  { %v707_v29 = vpop.xlane.xlu0 %706  ;;  %v1702_v18 = vrot.slane %v709_v28, %v3974_v37 }
 0x1c8   :  { %v1698_v3 = vrot.slane %v707_v29, %v3968_v35 }
 0x1ca   :  { %v4449_v31 = vpop.xlane.xlu1 %712  ;;  %v1703_v30 = vsel %vm1027_vm0, %v1702_v18, %v1698_v3 }
 0x1cb   :  { %v711_v32 = vpop.xlane.xlu0 %710  ;;  %v1712_v28 = vrot.slane %v4449_v31, %v3971_v36  ;;  %v1679_v31 = vsel %vm1048_vm3, %v1678_v34, %v1674_v14 }
 0x1cc   :  { %v1707_v19 = vrot.slane %v711_v32, %v3977_v38 }
 0x1ce   :  { %v4451_v40 = vpop.xlane.xlu1 %716  ;;  %v1708_v29 = vsel %vm1034_vm1, %v1707_v19, %v1703_v30 }
 0x1cf   :  { %v715_v46 = vpop.xlane.xlu0 %714 }
 0x1d0   :  { %v1717_v32 = vrot.slane %v715_v46, %v3985_v44  ;;  %v1688_v46 = vrot.slane %v4447_v25, %v4002_v2 }
 0x1d2   :  { %v4453_v41 = vpop.xlane.xlu1 %720 }
 0x1d3   :  { %v4455_v42 = vpop.xlane.xlu0 %718 }
 0x1d6   :  { %v725_v45 = vpop.xlane.xlu1 %724 }
 0x1d7   :  { %v723_v1 = vpop.xlane.xlu0 %722 }
 0x1d8   :  { %v1737_v11 = vrot.slane %v723_v1, %v3968_v35  ;;  %v1713_v1 = vsel %vm1041_vm2, %v1712_v28, %v1708_v29  ;;  %v1732_v28 = vrot.slane %v4453_v41, %v3996_v59 }
 0x1d9   :  { %v1718_v18 = vsel %vm1048_vm3, %v1717_v32, %v1713_v1 }
 0x1da   :  { %v4457_v53 = vpop.xlane.xlu1 %728 }
 0x1db   :  { %v727_v9 = vpop.xlane.xlu0 %726  ;;  %v1751_v48 = vrot.slane %v4457_v53, %v3971_v36 }
 0x1dc   :  { %v1746_v20 = vrot.slane %v727_v9, %v3977_v38  ;;  %v1727_v9 = vrot.slane %v4455_v42, %v4002_v2  ;;  %v1693_v42 = vrot.slane %v4445_v24, %v3996_v59 }
 0x1de   :  { %v4459_v50 = vpop.xlane.xlu1 %732 }
 0x1df   :  { %v4461_v51 = vpop.xlane.xlu0 %730 }
 0x1e2   :  { %v4463_v17 = vpop.xlane.xlu1 %736 }
 0x1e3   :  { %v4465_v54 = vpop.xlane.xlu0 %734 }
 0x1e6   :  { %v4467_v49 = vpop.xlane.xlu1 %740 }
 0x1e7   :  { %v4469_v55 = vpop.xlane.xlu0 %738  ;;  %v1780_v16 = vrot.slane %v4467_v49, %v3974_v37  ;;  %v1761_v49 = vrot.slane %v4459_v50, %v3982_v43  ;;  %v1766_v50 = vrot.slane %v4465_v54, %v4002_v2 }
 0x1e8   :  { %v1776_v34 = vrot.slane %v4469_v55, %v3968_v35 }
 0x1ea   :  { %v4471_v56 = vpop.xlane.xlu1 %744 }
 0x1eb   :  { %v4473_v57 = vpop.xlane.xlu0 %742 }
 0x1ec   :  { %v1785_v53 = vrot.slane %v4473_v57, %v3977_v38  ;;  %v1781_v57 = vsel %vm1027_vm0, %v1780_v16, %v1776_v34 }
 0x1ee   :  { %v4475_v61 = vpop.xlane.xlu1 %748 }
 0x1ef   :  { %v4477_v62 = vpop.xlane.xlu0 %746 }
 0x1f0   :  { %v1795_v14 = vrot.slane %v4477_v62, %v3985_v44 }
 0x1f2   :  { %v4479_v63 = vpop.xlane.xlu1 %752 }
 0x1f3   :  { %v4481_v52 = vpop.xlane.xlu0 %750 }
 0x1f6   :  { %v4483_v0 = vpop.xlane.xlu1 %756 }
 0x1f7   :  { %v4485_v26 = vpop.xlane.xlu0 %754 }
 0x1fa   :  { %v4487_v5 = vpop.xlane.xlu1 %760 }
 0x1fb   :  { %v4489_v6 = vpop.xlane.xlu0 %758 }
 0x1fc   :  { %v1824_v62 = vrot.slane %v4489_v6, %v3977_v38  ;;  %v1771_v6 = vrot.slane %v4463_v17, %v3996_v59 }
 0x1fe   :  { %v4491_v15 = vpop.xlane.xlu1 %764 }
 0x1ff   :  { %v4493_v58 = vpop.xlane.xlu0 %762 }
 0x200   :  { %v1834_v17 = vrot.slane %v4493_v58, %v3985_v44 }
 0x202   :  { %v4495_v60 = vpop.xlane.xlu1 %768 }
 0x203   :  { %v4497_v7 = vpop.xlane.xlu0 %766 }
 0x206   :  { %v4499_v39 = vpop.xlane.xlu1 %772 }
 0x207   :  { %v4501_v4 = vpop.xlane.xlu0 %770 }
 0x20a   :  { %v4503_v27 = vpop.xlane.xlu1 %776 }
 0x20b   :  { %v4505_v8 = vpop.xlane.xlu0 %774 }
 0x20e   :  { %v4507_v12 = vpop.xlane.xlu1 %780 }
 0x20f   :  { %v4509_v13 = vpop.xlane.xlu0 %778 }
 0x212   :  { %v4517_v47 = vpop.xlane.xlu1 %784 }
 0x213   :  { %5514 = vst [vmem:[#allocation14_spill] sm:$0xff] %v4517_v47  ;;  %v4519_v23 = vpop.xlane.xlu0 %782  ;;  %v1741_v47 = vrot.slane %v725_v45, %v3974_v37  ;;  %v1722_v45 = vrot.slane %v4451_v40, %v3982_v43  ;;  %v1756_v40 = vrot.slane %v4461_v51, %v3985_v44 }
 0x215   :  { %v1742_v3 = vsel %vm1027_vm0, %v1741_v47, %v1737_v11  ;;  %v1684_v47 = vsel %vm1055_vm4, %v1683_v22, %v1679_v31  ;;  %v1723_v51 = vsel %vm1055_vm4, %v1722_v45, %v1718_v18  ;;  %v1786_v22 = vsel %vm1034_vm1, %v1785_v53, %v1781_v57 }
 0x216   :  { %v4534_v33 = vpop.xlane.xlu1 %788  ;;  %v1747_v25 = vsel %vm1034_vm1, %v1746_v20, %v1742_v3  ;;  %v1689_v30 = vsel %vm1062_vm5, %v1688_v46, %v1684_v47  ;;  %v1728_v32 = vsel %vm1062_vm5, %v1727_v9, %v1723_v51  ;;  %v1790_v20 = vrot.slane %v4471_v56, %v3971_v36 }
 0x217   :  { %v4536_v21 = vpop.xlane.xlu0 %786  ;;  %v1752_v55 = vsel %vm1041_vm2, %v1751_v48, %v1747_v25  ;;  %v4583_v41 = vsel %vm1069_vm6, %v1693_v42, %v1689_v30  ;;  %v1819_v31 = vrot.slane %v4483_v0, %v3974_v37  ;;  %v1815_v46 = vrot.slane %v4485_v26, %v3968_v35 }
 0x218   :  { %v1757_v11 = vsel %vm1048_vm3, %v1756_v40, %v1752_v55  ;;  %v1858_v56 = vrot.slane %v4499_v39, %v3974_v37  ;;  %v1854_v45 = vrot.slane %v4501_v4, %v3968_v35  ;;  %v4599_v1 = vsel %vm1069_vm6, %v1732_v28, %v1728_v32 }
 0x219   :  { %v1762_v54 = vsel %vm1055_vm4, %v1761_v49, %v1757_v11  ;;  %v1863_v0 = vrot.slane %v4505_v8, %v3977_v38  ;;  %v1800_v39 = vrot.slane %v4475_v61, %v3982_v43  ;;  %v1791_v9 = vsel %vm1041_vm2, %v1790_v20, %v1786_v22 }
 0x21a   :  { %v4554_v10 = vpop.xlane.xlu1 %792  ;;  %v1897_v4 = vrot.slane %v4534_v33, %v3974_v37  ;;  %v1893_v3 = vrot.slane %v4536_v21, %v3968_v35  ;;  %v1767_v48 = vsel %vm1062_vm5, %v1766_v50, %v1762_v54  ;;  %v1796_v8 = vsel %vm1048_vm3, %v1795_v14, %v1791_v9 }
 0x21b   :  { %v791_v19 = vpop.xlane.xlu0 %790  ;;  %v1820_v40 = vsel %vm1027_vm0, %v1819_v31, %v1815_v46  ;;  %v1829_v61 = vrot.slane %v4487_v5, %v3971_v36  ;;  %v1859_v16 = vsel %vm1027_vm0, %v1858_v56, %v1854_v45  ;;  %v1868_v33 = vrot.slane %v4503_v27, %v3971_v36  ;;  %v5515_v45 = vld [vmem:[#allocation14_spill] sm:$0xff] }
 0x21c   :  { %v1902_v25 = vrot.slane %v791_v19, %v3977_v38  ;;  %v1825_v21 = vsel %vm1034_vm1, %v1824_v62, %v1820_v40  ;;  %v1864_v34 = vsel %vm1034_vm1, %v1863_v0, %v1859_v16  ;;  %v1873_v19 = vrot.slane %v4509_v13, %v3985_v44 }
 0x21d   :  { %v1810_v5 = vrot.slane %v4479_v63, %v3996_v59  ;;  %v1801_v53 = vsel %vm1055_vm4, %v1800_v39, %v1796_v8  ;;  %v1898_v30 = vsel %vm1027_vm0, %v1897_v4, %v1893_v3  ;;  %v1907_v27 = vrot.slane %v4554_v10, %v3971_v36 }
 0x21e   :  { %v4575_v29 = vpop.xlane.xlu1 %796  ;;  %v1903_v28 = vsel %vm1034_vm1, %v1902_v25, %v1898_v30  ;;  %v1805_v49 = vrot.slane %v4481_v52, %v4002_v2  ;;  %v1839_v63 = vrot.slane %v4491_v15, %v3982_v43  ;;  %v1830_v55 = vsel %vm1041_vm2, %v1829_v61, %v1825_v21  ;;  %v5516_v30 = vld [vmem:[#allocation12_spill] sm:$0xff] }
 0x21f   :  { %v795_v24 = vpop.xlane.xlu0 %794  ;;  %v1869_v32 = vsel %vm1041_vm2, %v1868_v33, %v1864_v34  ;;  %v1835_v10 = vsel %vm1048_vm3, %v1834_v17, %v1830_v55  ;;  %v1844_v11 = vrot.slane %v4497_v7, %v4002_v2  ;;  %v1883_v52 = vrot.slane %v4519_v23, %v4002_v2  ;;  %v820_v33 = vld [vmem:[#allocation5 + $0x10] sm:$0xff] }
 0x220   :  { %v1912_v58 = vrot.slane %v795_v24, %v3985_v44  ;;  %v1917_v15 = vrot.slane %v4575_v29, %v3982_v43  ;;  %v1908_v20 = vsel %vm1041_vm2, %v1907_v27, %v1903_v28  ;;  %v1806_v31 = vsel %vm1062_vm5, %v1805_v49, %v1801_v53 }
 0x221   :  { %v1849_v23 = vrot.slane %v4495_v60, %v3996_v59  ;;  %v1840_v46 = vsel %vm1055_vm4, %v1839_v63, %v1835_v10  ;;  %v1772_v56 = vsel %vm1069_vm6, %v1771_v6, %v1767_v48  ;;  %v1888_v54 = vrot.slane %v5515_v45, %v3996_v59  ;;  %v5517_v63 = vld [vmem:[#allocation13_spill] sm:$0xff] }
 0x222   :  { %v4606_v18 = vpop.xlane.xlu1 %800  ;;  %v1913_v22 = vsel %vm1048_vm3, %v1912_v58, %v1908_v20  ;;  %v1811_v4 = vsel %vm1069_vm6, %v1810_v5, %v1806_v31  ;;  %v1989_v8 = vsel %vm1968_vm7, %v4599_v1, %v4583_v41 }
 0x223   :  { %v799_v26 = vpop.xlane.xlu0 %798  ;;  %v1927_v60 = vrot.slane %v4606_v18, %v3996_v59  ;;  %v1918_v39 = vsel %vm1055_vm4, %v1917_v15, %v1913_v22  ;;  %v1990_v40 = vsel %vm1970_vm8, %v1772_v56, %v1989_v8 }
 0x224   :  { %v1922_v7 = vrot.slane %v799_v26, %v4002_v2  ;;  %v1991_v21 = vsel %vm1972_vm9, %v1811_v4, %v1990_v40 }
 0x226   :  { %v805_v42 = vpop.xlane.xlu1 %804  ;;  %v1923_v3 = vsel %vm1062_vm5, %v1922_v7, %v1918_v39 }
 0x227   :  { %v803_v47 = vpop.xlane.xlu0 %802  ;;  %v1936_v51 = vrot.slane %v805_v42, %v3974_v37  ;;  %v1878_v37 = vrot.slane %v4507_v12, %v3982_v43  ;;  %v1928_v34 = vsel %vm1069_vm6, %v1927_v60, %v1923_v3 }
 0x228   :  { %v1932_v13 = vrot.slane %v803_v47, %v3968_v35  ;;  %v1874_v35 = vsel %vm1048_vm3, %v1873_v19, %v1869_v32 }
 0x229   :  { %v1879_v62 = vsel %vm1055_vm4, %v1878_v37, %v1874_v35  ;;  %v5518_v37 = vld [vmem:[#allocation11_spill] sm:$0xff] }
 0x22a   :  { %v809_v57 = vpop.xlane.xlu1 %808  ;;  %v1937_v12 = vsel %vm1027_vm0, %v1936_v51, %v1932_v13  ;;  %v1884_v26 = vsel %vm1062_vm5, %v1883_v52, %v1879_v62  ;;  %vm823_vm0 = vcmp.ne.s32.totalorder %v820_v33, 0  ;;  %v4710_v35 = vsub.s32 0, %v5518_v37 }
 0x22b   :  { %v807_v24 = vpop.xlane.xlu0 %806  ;;  %v1946_v14 = vrot.slane %v809_v57, %v3971_v36  ;;  %v4718_v57 = vsub.s32 1, %v5518_v37  ;;  %v4728_v15 = vsub.s32 2, %v5518_v37  ;;  %v4748_v7 = vsub.s32 4, %v5518_v37 }
 0x22c   :  { %v1941_v50 = vrot.slane %v807_v24, %v3977_v38  ;;  %v1845_v38 = vsel %vm1062_vm5, %v1844_v11, %v1840_v46  ;;  %v4778_v45 = vsub.s32 7, %v5518_v37 }
 0x22d   :  { %v1850_v25 = vsel %vm1069_vm6, %v1849_v23, %v1845_v38  ;;  %v4768_v23 = vsub.s32 6, %v5518_v37 }
 0x22e   :  { %v1942_v29 = vsel %vm1034_vm1, %v1941_v50, %v1937_v12  ;;  %v813_v36 = vpop.xlane.xlu1 %812  ;;  %v1992_v1 = vsel %vm1974_vm10, %v1850_v25, %v1991_v21  ;;  %v4738_v50 = vsub.s32 3, %v5518_v37 }
 0x22f   :  { %v811_v0 = vpop.xlane.xlu0 %810  ;;  %v1947_v6 = vsel %vm1041_vm2, %v1946_v14, %v1942_v29  ;;  %v1956_v48 = vrot.slane %v813_v36, %v3982_v43  ;;  %v4758_v14 = vsub.s32 5, %v5518_v37 }
 0x230   :  { %v1951_v9 = vrot.slane %v811_v0, %v3985_v44  ;;  %v1889_v44 = vsel %vm1069_vm6, %v1888_v54, %v1884_v26 }
 0x231   :  { %v1993_v42 = vsel %vm1976_vm11, %v1889_v44, %v1992_v1 }
 0x232   :  { %v1952_v18 = vsel %vm1048_vm3, %v1951_v9, %v1947_v6  ;;  %v817_v16 = vpop.xlane.xlu1 %816  ;;  %v1994_v53 = vsel %vm1978_vm12, %v1928_v34, %v1993_v42 }
 0x233   :  { %v815_v61 = vpop.xlane.xlu0 %814  ;;  %v1966_v43 = vrot.slane %v817_v16, %v3996_v59  ;;  %v1957_v41 = vsel %vm1055_vm4, %v1956_v48, %v1952_v18 }
 0x234   :  { %v1961_v17 = vrot.slane %v815_v61, %v4002_v2 }
 0x236   :  { %v1962_v19 = vsel %vm1062_vm5, %v1961_v17, %v1957_v41 }
 0x237   :  { %v2005_v47 = vpop.xlane.xlu0 %2004  ;;  %v1967_v5 = vsel %vm1069_vm6, %v1966_v43, %v1962_v19 }
 0x238   :  { %v2012_v2 = vsub.f32 %v5516_v30, %v2005_v47  ;;  %v1995_v59 = vsel %vm1980_vm13, %v1967_v5, %v1994_v53 }
 0x239   :  { %v2001_v27 = vsel %vm823_vm0, -1e+30, %v1995_v59 }
 0x23a   :  { %v2015_v28 = vmul.f32 1.442695, %v2012_v2  ;;  %v2009_v58 = vsel %vm2002_vm15, %v2001_v27, -inf }
 0x23b   :  { %2010 = vmax.xlane.f32.xlu0 %v2009_v58 }
 0x23c   :  { %3554 = vpow2.f32 %v2015_v28 }
 0x246   :  { %v3555_v51 = vpop.eup %3554 }
 0x247   :  { %v2021_v13 = vsel %vm2002_vm15, %v3555_v51, 0.0  ;;  %v4713_v24 = vrot.slane %v3555_v51, %v4710_v35  ;;  %v4722_v52 = vrot.slane %v3555_v51, %v4718_v57  ;;  %v4732_v20 = vrot.slane %v3555_v51, %v4728_v15 }
 0x248   :  { %v2008_v49 = vpop.xlane.xlu1 %2007  ;;  %2022 = vadd.xlane.f32.xlu1 %v2021_v13  ;;  %v4742_v22 = vrot.slane %v3555_v51, %v4738_v50  ;;  %v4752_v12 = vrot.slane %v3555_v51, %v4748_v7  ;;  %v4762_v31 = vrot.slane %v3555_v51, %v4758_v14  ;;  %v4772_v56 = vrot.slane %v3555_v51, %v4768_v23 }
 0x249   :  { %v2013_v55 = vsub.f32 %v5517_v63, %v2008_v49  ;;  %v4786_v0 = vrot.slane %v3555_v51, %v4778_v45 }
 0x24b   :  { %v2017_v32 = vmul.f32 1.442695, %v2013_v55 }
 0x24d   :  { %3556 = vpow2.f32 %v2017_v32 }
 0x257   :  { %v4705_v10 = vpop.eup %3556 }
 0x258   :  { %v2024_v11 = vsel %vm2002_vm15, %v4705_v10, 0.0  ;;  %v4796_v26 = vrot.slane %v4705_v10, %v4710_v35  ;;  %v4816_v3 = vrot.slane %v4705_v10, %v4718_v57  ;;  %v4836_v18 = vrot.slane %v4705_v10, %v4728_v15 }
 0x259   :  { %2025 = vadd.xlane.f32.xlu0 %v2024_v11  ;;  %v4856_v33 = vrot.slane %v4705_v10, %v4738_v50  ;;  %v4876_v41 = vrot.slane %v4705_v10, %v4748_v7  ;;  %v4896_v5 = vrot.slane %v4705_v10, %v4758_v14  ;;  %v4936_v49 = vrot.slane %v4705_v10, %v4778_v45 }
 0x25b   :  { %5524 = vst [vmem:[#allocation16_spill] sm:$0xff] %v4936_v49 }
 0x26f   :  { %2047 = vbcast.lane.b32.xlu0 %v4713_v24, 256 }
 0x273   :  { %2063 = vbcast.lane.b32.xlu0 %v4713_v24, 288 }
 0x277   :  { %2071 = vbcast.lane.b32.xlu0 %v4713_v24, 304 }
 0x27b   :  { %2082 = vbcast.lane.b32.xlu0 %v4722_v52, 256 }
 0x27f   :  { %2090 = vbcast.lane.b32.xlu0 %v4722_v52, 272 }
 0x283   :  { %2098 = vbcast.lane.b32.xlu0 %v4722_v52, 288 }
 0x287   :  { %2106 = vbcast.lane.b32.xlu0 %v4722_v52, 304 }
 0x28b   :  { %2117 = vbcast.lane.b32.xlu0 %v4732_v20, 256 }
 0x28f   :  { %2125 = vbcast.lane.b32.xlu0 %v4732_v20, 272 }
 0x293   :  { %2133 = vbcast.lane.b32.xlu0 %v4732_v20, 288 }
 0x297   :  { %2141 = vbcast.lane.b32.xlu0 %v4732_v20, 304 }
 0x29b   :  { %2152 = vbcast.lane.b32.xlu0 %v4742_v22, 256 }
 0x29f   :  { %2160 = vbcast.lane.b32.xlu0 %v4742_v22, 272 }
 0x2a3   :  { %2168 = vbcast.lane.b32.xlu0 %v4742_v22, 288 }
 0x2a7   :  { %2176 = vbcast.lane.b32.xlu0 %v4742_v22, 304 }
 0x2ab   :  { %2187 = vbcast.lane.b32.xlu0 %v4752_v12, 256 }
 0x2af   :  { %2195 = vbcast.lane.b32.xlu0 %v4752_v12, 272 }
 0x2b3   :  { %2203 = vbcast.lane.b32.xlu0 %v4752_v12, 288 }
 0x2b7   :  { %2211 = vbcast.lane.b32.xlu0 %v4752_v12, 304 }
 0x2bb   :  { %2222 = vbcast.lane.b32.xlu0 %v4762_v31, 256 }
 0x2bf   :  { %2230 = vbcast.lane.b32.xlu0 %v4762_v31, 272 }
 0x2c3   :  { %2238 = vbcast.lane.b32.xlu0 %v4762_v31, 288 }
 0x2c7   :  { %2246 = vbcast.lane.b32.xlu0 %v4762_v31, 304 }
 0x2c8   :  { %v2011_v46 = vpop.xlane.xlu0 %2010 }
 0x2c9   :  { %v2014_v29 = vsub.f32 %v2001_v27, %v2011_v46  ;;  %v4916_v27 = vrot.slane %v4705_v10, %v4768_v23 }
 0x2cb   :  { %v2019_v38 = vmul.f32 1.442695, %v2014_v29  ;;  %2257 = vbcast.lane.b32.xlu0 %v4772_v56, 256 }
 0x2cd   :  { %3558 = vpow2.f32 %v2019_v38 }
 0x2cf   :  { %2265 = vbcast.lane.b32.xlu0 %v4772_v56, 272 }
 0x2d3   :  { %2273 = vbcast.lane.b32.xlu0 %v4772_v56, 288 }
 0x2d5   :  { %v4946_v32 = vpop.xlane.xlu1 %2022 }
 0x2d6   :  { %3560 = vrcp.f32 %v4946_v32 }
 0x2d7   :  { %v4780_v54 = vpop.eup %3558  ;;  %2281 = vbcast.lane.b32.xlu0 %v4772_v56, 304 }
 0x2d8   :  { %v2027_v62 = vsel %vm2002_vm15, %v4780_v54, 0.0 }
 0x2d9   :  { %2028 = vadd.xlane.f32.xlu1 %v2027_v62 }
 0x2db   :  { %2292 = vbcast.lane.b32.xlu0 %v4786_v0, 256 }
 0x2df   :  { %2300 = vbcast.lane.b32.xlu0 %v4786_v0, 272 }
 0x2e3   :  { %2308 = vbcast.lane.b32.xlu0 %v4786_v0, 288 }
 0x2e6   :  { %v4791_v36 = vpop.xlane.xlu0 %2025 }
 0x2e7   :  { %5519 = vst [vmem:[#allocation14_spill] sm:$0xff] %v4791_v36  ;;  %2316 = vbcast.lane.b32.xlu0 %v4786_v0, 304 }
 0x2ea   :  { %2051 = vbcast.lane.b32.xlu1 %v4713_v24, 264  ;;  %v4799_v60 = vpop.permute.xlu0 %2047 }
 0x2eb   :  { %2327 = vbcast.lane.b32.xlu0 %v4796_v26, 256 }
 0x2ee   :  { %2055 = vbcast.lane.b32.xlu1 %v4713_v24, 272  ;;  %v4803_v39 = vpop.permute.xlu0 %2063 }
 0x2ef   :  { %2335 = vbcast.lane.b32.xlu0 %v4796_v26, 272 }
 0x2f2   :  { %2059 = vbcast.lane.b32.xlu1 %v4713_v24, 280  ;;  %v4807_v9 = vpop.permute.xlu0 %2071 }
 0x2f3   :  { %5520 = vst [vmem:[#allocation12_spill] sm:$0xff] %v4807_v9  ;;  %2343 = vbcast.lane.b32.xlu0 %v4796_v26, 288 }
 0x2f6   :  { %2067 = vbcast.lane.b32.xlu1 %v4713_v24, 296  ;;  %v4811_v4 = vpop.permute.xlu0 %2082 }
 0x2f7   :  { %2351 = vbcast.lane.b32.xlu0 %v4796_v26, 304 }
 0x2fa   :  { %2075 = vbcast.lane.b32.xlu1 %v4713_v24, 312  ;;  %v4819_v6 = vpop.permute.xlu0 %2090  ;;  %v4960_v24 = vrot.slane %v4780_v54, %v4710_v35 }
 0x2fb   :  { %2362 = vbcast.lane.b32.xlu0 %v4816_v3, 256 }
 0x2fc   :  { %5530 = vst [vmem:[#allocation22_spill] sm:$0xff] %v4960_v24 }
 0x2fe   :  { %2086 = vbcast.lane.b32.xlu1 %v4722_v52, 264  ;;  %v4823_v48 = vpop.permute.xlu0 %2098 }
 0x2ff   :  { %2370 = vbcast.lane.b32.xlu0 %v4816_v3, 272 }
 0x302   :  { %2094 = vbcast.lane.b32.xlu1 %v4722_v52, 280  ;;  %v4827_v8 = vpop.permute.xlu0 %2106 }
 0x303   :  { %2378 = vbcast.lane.b32.xlu0 %v4816_v3, 288 }
 0x306   :  { %2102 = vbcast.lane.b32.xlu1 %v4722_v52, 296  ;;  %v4831_v25 = vpop.permute.xlu0 %2117 }
 0x307   :  { %2386 = vbcast.lane.b32.xlu0 %v4816_v3, 304 }
 0x30a   :  { %2110 = vbcast.lane.b32.xlu1 %v4722_v52, 312  ;;  %v4839_v40 = vpop.permute.xlu0 %2125 }
 0x30b   :  { %2397 = vbcast.lane.b32.xlu0 %v4836_v18, 256 }
 0x30e   :  { %2121 = vbcast.lane.b32.xlu1 %v4732_v20, 264  ;;  %v4843_v44 = vpop.permute.xlu0 %2133 }
 0x30f   :  { %2405 = vbcast.lane.b32.xlu0 %v4836_v18, 272 }
 0x312   :  { %2129 = vbcast.lane.b32.xlu1 %v4732_v20, 280  ;;  %v4847_v61 = vpop.permute.xlu0 %2141 }
 0x313   :  { %2413 = vbcast.lane.b32.xlu0 %v4836_v18, 288 }
 0x316   :  { %2137 = vbcast.lane.b32.xlu1 %v4732_v20, 296  ;;  %v4851_v16 = vpop.permute.xlu0 %2152 }
 0x317   :  { %2421 = vbcast.lane.b32.xlu0 %v4836_v18, 304 }
 0x31a   :  { %2145 = vbcast.lane.b32.xlu1 %v4732_v20, 312  ;;  %v4859_v21 = vpop.permute.xlu0 %2160 }
 0x31b   :  { %2432 = vbcast.lane.b32.xlu0 %v4856_v33, 256 }
 0x31e   :  { %2156 = vbcast.lane.b32.xlu1 %v4742_v22, 264  ;;  %v4863_v17 = vpop.permute.xlu0 %2168 }
 0x31f   :  { %2440 = vbcast.lane.b32.xlu0 %v4856_v33, 272 }
 0x322   :  { %2164 = vbcast.lane.b32.xlu1 %v4742_v22, 280  ;;  %v4867_v43 = vpop.permute.xlu0 %2176 }
 0x323   :  { %2448 = vbcast.lane.b32.xlu0 %v4856_v33, 288 }
 0x326   :  { %2172 = vbcast.lane.b32.xlu1 %v4742_v22, 296  ;;  %v4871_v34 = vpop.permute.xlu0 %2187 }
 0x327   :  { %2456 = vbcast.lane.b32.xlu0 %v4856_v33, 304 }
 0x32a   :  { %2180 = vbcast.lane.b32.xlu1 %v4742_v22, 312  ;;  %v4879_v1 = vpop.permute.xlu0 %2195 }
 0x32b   :  { %2467 = vbcast.lane.b32.xlu0 %v4876_v41, 256 }
 0x32e   :  { %2191 = vbcast.lane.b32.xlu1 %v4752_v12, 264  ;;  %v4883_v19 = vpop.permute.xlu0 %2203 }
 0x32f   :  { %2475 = vbcast.lane.b32.xlu0 %v4876_v41, 272 }
 0x332   :  { %2199 = vbcast.lane.b32.xlu1 %v4752_v12, 280  ;;  %v4887_v42 = vpop.permute.xlu0 %2211 }
 0x333   :  { %2483 = vbcast.lane.b32.xlu0 %v4876_v41, 288 }
 0x336   :  { %2207 = vbcast.lane.b32.xlu1 %v4752_v12, 296  ;;  %v4891_v47 = vpop.permute.xlu0 %2222 }
 0x337   :  { %2491 = vbcast.lane.b32.xlu0 %v4876_v41, 304 }
 0x33a   :  { %2215 = vbcast.lane.b32.xlu1 %v4752_v12, 312  ;;  %v4899_v53 = vpop.permute.xlu0 %2230 }
 0x33b   :  { %2502 = vbcast.lane.b32.xlu0 %v4896_v5, 256 }
 0x33e   :  { %2226 = vbcast.lane.b32.xlu1 %v4762_v31, 264  ;;  %v4903_v30 = vpop.permute.xlu0 %2238 }
 0x33f   :  { %2510 = vbcast.lane.b32.xlu0 %v4896_v5, 272 }
 0x342   :  { %2234 = vbcast.lane.b32.xlu1 %v4762_v31, 280  ;;  %v4907_v2 = vpop.permute.xlu0 %2246 }
 0x343   :  { %2518 = vbcast.lane.b32.xlu0 %v4896_v5, 288 }
 0x346   :  { %2242 = vbcast.lane.b32.xlu1 %v4762_v31, 296  ;;  %v4911_v59 = vpop.permute.xlu0 %2257 }
 0x347   :  { %2526 = vbcast.lane.b32.xlu0 %v4896_v5, 304 }
 0x34a   :  { %2250 = vbcast.lane.b32.xlu1 %v4762_v31, 312  ;;  %v4919_v28 = vpop.permute.xlu0 %2265 }
 0x34b   :  { %2537 = vbcast.lane.b32.xlu0 %v4916_v27, 256 }
 0x34e   :  { %2261 = vbcast.lane.b32.xlu1 %v4772_v56, 264  ;;  %v4923_v58 = vpop.permute.xlu0 %2273 }
 0x34f   :  { %5521 = vst [vmem:[#allocation13_spill] sm:$0xff] %v4923_v58  ;;  %2545 = vbcast.lane.b32.xlu0 %v4916_v27, 272  ;;  %v3572_v58 = vld [vmem:[#allocation2 + $0x108] sm:$0xff] }
 0x352   :  { %2269 = vbcast.lane.b32.xlu1 %v4772_v56, 280  ;;  %v4927_v51 = vpop.permute.xlu0 %2281 }
 0x353   :  { %5522 = vst [vmem:[#allocation11_spill] sm:$0xff] %v4927_v51  ;;  %2553 = vbcast.lane.b32.xlu0 %v4916_v27, 288 }
 0x356   :  { %2277 = vbcast.lane.b32.xlu1 %v4772_v56, 296  ;;  %v4931_v13 = vpop.permute.xlu0 %2292 }
 0x357   :  { %5523 = vst [vmem:[#allocation15_spill] sm:$0xff] %v4931_v13  ;;  %2561 = vbcast.lane.b32.xlu0 %v4916_v27, 304  ;;  %v3570_v13 = vld [vmem:[#allocation2 + $0xc8] sm:$0xff] }
 0x35a   :  { %2285 = vbcast.lane.b32.xlu1 %v4772_v56, 312  ;;  %v4939_v63 = vpop.permute.xlu0 %2300  ;;  %v4988_v56 = vrot.slane %v4780_v54, %v4718_v57 }
 0x35b   :  { %5525 = vst [vmem:[#allocation17_spill] sm:$0xff] %v4939_v63  ;;  %2572 = vbcast.lane.b32.xlu0 %v4936_v49, 256 }
 0x35c   :  { %5535 = vst [vmem:[#allocation27_spill] sm:$0xff] %v4988_v56 }
 0x35e   :  { %2296 = vbcast.lane.b32.xlu1 %v4786_v0, 264  ;;  %v4943_v55 = vpop.permute.xlu0 %2308 }
 0x35f   :  { %5526 = vst [vmem:[#allocation18_spill] sm:$0xff] %v4943_v55  ;;  %2580 = vbcast.lane.b32.xlu0 %v4936_v49, 272 }
 0x362   :  { %2304 = vbcast.lane.b32.xlu1 %v4786_v0, 280  ;;  %v4949_v11 = vpop.permute.xlu0 %2316 }
 0x363   :  { %5527 = vst [vmem:[#allocation19_spill] sm:$0xff] %v4949_v11  ;;  %2588 = vbcast.lane.b32.xlu0 %v4936_v49, 288 }
 0x366   :  { %2312 = vbcast.lane.b32.xlu1 %v4786_v0, 296  ;;  %v4953_v10 = vpop.xlane.xlu1 %2028  ;;  %v4955_v37 = vpop.permute.xlu0 %2327 }
 0x367   :  { %5528 = vst [vmem:[#allocation20_spill] sm:$0xff] %v4953_v10  ;;  %5529 = vst [vmem:[#allocation21_spill] sm:$0xff] %v4955_v37  ;;  %2596 = vbcast.lane.b32.xlu0 %v4936_v49, 304 }
 0x36a   :  { %2320 = vbcast.lane.b32.xlu1 %v4786_v0, 312  ;;  %v4963_v52 = vpop.permute.xlu1 %2051  ;;  %v4965_v20 = vpop.permute.xlu0 %2335 }
 0x36b   :  { %5531 = vst [vmem:[#allocation23_spill] sm:$0xff] %v4965_v20  ;;  %2607 = vbcast.lane.b32.xlu0 %v4960_v24, 256 }
 0x36e   :  { %2331 = vbcast.lane.b32.xlu1 %v4796_v26, 264  ;;  %v4969_v22 = vpop.permute.xlu1 %2055  ;;  %v4971_v12 = vpop.permute.xlu0 %2343 }
 0x36f   :  { %5532 = vst [vmem:[#allocation24_spill] sm:$0xff] %v4971_v12  ;;  %2615 = vbcast.lane.b32.xlu0 %v4960_v24, 272  ;;  %v5016_v12 = vrot.slane %v4780_v54, %v4728_v15 }
 0x372   :  { %2339 = vbcast.lane.b32.xlu1 %v4796_v26, 280  ;;  %v4975_v35 = vpop.permute.xlu1 %2059  ;;  %v4977_v31 = vpop.permute.xlu0 %2351 }
 0x373   :  { %5533 = vst [vmem:[#allocation25_spill] sm:$0xff] %v4977_v31  ;;  %2623 = vbcast.lane.b32.xlu0 %v4960_v24, 288 }
 0x376   :  { %2347 = vbcast.lane.b32.xlu1 %v4796_v26, 296  ;;  %v4981_v46 = vpop.permute.xlu1 %2067  ;;  %v4983_v29 = vpop.permute.xlu0 %2362 }
 0x377   :  { %5534 = vst [vmem:[#allocation26_spill] sm:$0xff] %v4983_v29  ;;  %2631 = vbcast.lane.b32.xlu0 %v4960_v24, 304 }
 0x37a   :  { %2355 = vbcast.lane.b32.xlu1 %v4796_v26, 312  ;;  %v4991_v38 = vpop.permute.xlu1 %2075  ;;  %v4993_v62 = vpop.permute.xlu0 %2370 }
 0x37b   :  { %5536 = vst [vmem:[#allocation28_spill] sm:$0xff] %v4991_v38  ;;  %5537 = vst [vmem:[#allocation29_spill] sm:$0xff] %v4993_v62  ;;  %2642 = vbcast.lane.b32.xlu0 %v4988_v56, 256 }
 0x37e   :  { %2366 = vbcast.lane.b32.xlu1 %v4816_v3, 264  ;;  %v4997_v0 = vpop.permute.xlu1 %2086  ;;  %v4999_v10 = vpop.permute.xlu0 %2378 }
 0x37f   :  { %5538 = vst [vmem:[#allocation30_spill] sm:$0xff] %v4999_v10  ;;  %2650 = vbcast.lane.b32.xlu0 %v4988_v56, 272 }
 0x382   :  { %2374 = vbcast.lane.b32.xlu1 %v4816_v3, 280  ;;  %v5003_v57 = vpop.permute.xlu1 %2094  ;;  %v5005_v31 = vpop.permute.xlu0 %2386 }
 0x383   :  { %5539 = vst [vmem:[#allocation31_spill] sm:$0xff] %v5005_v31  ;;  %2658 = vbcast.lane.b32.xlu0 %v4988_v56, 288  ;;  %v5026_v31 = vrot.slane %v4780_v54, %v4738_v50 }
 0x385   :  { %5542 = vst [vmem:[#allocation34_spill] sm:$0xff] %v5026_v31 }
 0x386   :  { %2382 = vbcast.lane.b32.xlu1 %v4816_v3, 296  ;;  %v5009_v26 = vpop.permute.xlu1 %2102  ;;  %v5011_v36 = vpop.permute.xlu0 %2397 }
 0x387   :  { %5540 = vst [vmem:[#allocation32_spill] sm:$0xff] %v5011_v36  ;;  %2666 = vbcast.lane.b32.xlu0 %v4988_v56, 304 }
 0x38a   :  { %2390 = vbcast.lane.b32.xlu1 %v4816_v3, 312  ;;  %v5019_v10 = vpop.permute.xlu1 %2110  ;;  %v5021_v20 = vpop.permute.xlu0 %2405 }
 0x38b   :  { %5541 = vst [vmem:[#allocation33_spill] sm:$0xff] %v5021_v20  ;;  %2677 = vbcast.lane.b32.xlu0 %v5016_v12, 256  ;;  %v5040_v20 = vrot.slane %v4780_v54, %v4748_v7 }
 0x38d   :  { %5545 = vst [vmem:[#allocation37_spill] sm:$0xff] %v5040_v20 }
 0x38e   :  { %2401 = vbcast.lane.b32.xlu1 %v4836_v18, 264  ;;  %v2122_v37 = vpop.permute.xlu1 %2121  ;;  %v5029_v62 = vpop.permute.xlu0 %2413 }
 0x38f   :  { %5543 = vst [vmem:[#allocation35_spill] sm:$0xff] %v5029_v62  ;;  %2712 = vbcast.lane.b32.xlu0 %v5026_v31, 256  ;;  %v5050_v62 = vrot.slane %v4780_v54, %v4758_v14 }
 0x392   :  { %2409 = vbcast.lane.b32.xlu1 %v4836_v18, 280  ;;  %v5033_v15 = vpop.permute.xlu1 %2129  ;;  %v5035_v3 = vpop.permute.xlu0 %2421 }
 0x393   :  { %5544 = vst [vmem:[#allocation36_spill] sm:$0xff] %v5035_v3  ;;  %2685 = vbcast.lane.b32.xlu0 %v5016_v12, 272 }
 0x396   :  { %2417 = vbcast.lane.b32.xlu1 %v4836_v18, 296  ;;  %v5043_v50 = vpop.permute.xlu1 %2137  ;;  %v5045_v36 = vpop.permute.xlu0 %2432 }
 0x397   :  { %5546 = vst [vmem:[#allocation38_spill] sm:$0xff] %v5045_v36  ;;  %2751 = vbcast.lane.b32.xlu0 %v5040_v20, 264  ;;  %v5064_v36 = vrot.slane %v4780_v54, %v4768_v23  ;;  %v5080_v23 = vrot.slane %v4780_v54, %v4778_v45  ;;  %v3569_v20 = vld [vmem:[#allocation2 + $0x40] sm:$0xff] }
 0x398   :  { %v2890_v49 = vmul.f32 %v3569_v20, %v4811_v4  ;;  %v3575_v20 = vld [vmem:[#allocation2 + $0x50] sm:$0xff] }
 0x399   :  { %5551 = vst [vmem:[#allocation43_spill] sm:$0xff] %v5080_v23 }
 0x39a   :  { %2425 = vbcast.lane.b32.xlu1 %v4836_v18, 312  ;;  %v5053_v3 = vpop.permute.xlu1 %2145  ;;  %v5055_v29 = vpop.permute.xlu0 %2440 }
 0x39b   :  { %5547 = vst [vmem:[#allocation39_spill] sm:$0xff] %v5055_v29  ;;  %2782 = vbcast.lane.b32.xlu0 %v5050_v62, 256 }
 0x39e   :  { %2436 = vbcast.lane.b32.xlu1 %v4856_v33, 264  ;;  %v2157_v7 = vpop.permute.xlu1 %2156  ;;  %v5059_v56 = vpop.permute.xlu0 %2448 }
 0x39f   :  { %5548 = vst [vmem:[#allocation40_spill] sm:$0xff] %v5059_v56  ;;  %2689 = vbcast.lane.b32.xlu0 %v5016_v12, 280  ;;  %v2907_v51 = vmul.f32 %v3570_v13, %v2157_v7  ;;  %v2892_v13 = vmul.f32 %v3575_v20, %v4819_v6  ;;  %v3576_v7 = vld [vmem:[#allocation2 + $0x140] sm:$0xff]  ;;  %v3583_v20 = vld [vmem:[#allocation2 + $0x98] sm:$0xff] }
 0x3a0   :  { %v2922_v9 = vmul.f32 %v3576_v7, %v4891_v47  ;;  %v3581_v47 = vld [vmem:[#allocation2 + $0x110] sm:$0xff] }
 0x3a1   :  { %v3584_v7 = vld [vmem:[#allocation2 + $0x150] sm:$0xff] }
 0x3a2   :  { %2444 = vbcast.lane.b32.xlu1 %v4856_v33, 280  ;;  %v5067_v14 = vpop.permute.xlu1 %2164  ;;  %v5069_v18 = vpop.permute.xlu0 %2456 }
 0x3a3   :  { %5549 = vst [vmem:[#allocation41_spill] sm:$0xff] %v5069_v18  ;;  %2817 = vbcast.lane.b32.xlu0 %v5064_v36, 256 }
 0x3a6   :  { %2452 = vbcast.lane.b32.xlu1 %v4856_v33, 296  ;;  %v5073_v29 = vpop.permute.xlu1 %2172  ;;  %v5075_v24 = vpop.permute.xlu0 %2467 }
 0x3a7   :  { %5550 = vst [vmem:[#allocation42_spill] sm:$0xff] %v5075_v24  ;;  %2724 = vbcast.lane.b32.xlu0 %v5026_v31, 280 }
 0x3aa   :  { %2460 = vbcast.lane.b32.xlu1 %v4856_v33, 312  ;;  %v5083_v56 = vpop.permute.xlu1 %2180  ;;  %v5085_v11 = vpop.permute.xlu0 %2475 }
 0x3ab   :  { %5552 = vst [vmem:[#allocation44_spill] sm:$0xff] %v5085_v11  ;;  %2852 = vbcast.lane.b32.xlu0 %v5080_v23, 256  ;;  %v3567_v11 = vld [vmem:[#allocation2 + $0x48] sm:$0xff] }
 0x3ac   :  { %v3568_v23 = vld [vmem:[#allocation2 + $0x88] sm:$0xff] }
 0x3ad   :  { %v2899_v31 = vmul.f32 %v3568_v23, %v2122_v37  ;;  %v3574_v23 = vld [vmem:[#allocation2 + $0x100] sm:$0xff] }
 0x3ae   :  { %2471 = vbcast.lane.b32.xlu1 %v4876_v41, 264  ;;  %v2192_v18 = vpop.permute.xlu1 %2191  ;;  %v5089_v55 = vpop.permute.xlu0 %2483 }
 0x3af   :  { %5553 = vst [vmem:[#allocation45_spill] sm:$0xff] %v5089_v55  ;;  %2693 = vbcast.lane.b32.xlu0 %v5016_v12, 288  ;;  %v2891_v55 = vmul.f32 %v3567_v11, %v4997_v0  ;;  %v2915_v11 = vmul.f32 %v3572_v58, %v2192_v18  ;;  %v3573_v0 = vld [vmem:[#allocation2 + $0xc0] sm:$0xff]  ;;  %v3580_v18 = vld [vmem:[#allocation2 + $0x58] sm:$0xff] }
 0x3b0   :  { %v2906_v37 = vmul.f32 %v3573_v0, %v4851_v16  ;;  %v3578_v16 = vld [vmem:[#allocation2 + $0x90] sm:$0xff]  ;;  %v2893_v6 = vmul.f32 %v3580_v18, %v5003_v57 }
 0x3b2   :  { %2479 = vbcast.lane.b32.xlu1 %v4876_v41, 280  ;;  %v5093_v24 = vpop.permute.xlu1 %2199  ;;  %v5095_v45 = vpop.permute.xlu0 %2491 }
 0x3b3   :  { %5554 = vst [vmem:[#allocation46_spill] sm:$0xff] %v5095_v45  ;;  %2825 = vbcast.lane.b32.xlu0 %v5064_v36, 272 }
 0x3b6   :  { %2487 = vbcast.lane.b32.xlu1 %v4876_v41, 296  ;;  %v5099_v54 = vpop.permute.xlu1 %2207  ;;  %v5101_v33 = vpop.permute.xlu0 %2502 }
 0x3b7   :  { %5555 = vst [vmem:[#allocation47_spill] sm:$0xff] %v5101_v33  ;;  %2794 = vbcast.lane.b32.xlu0 %v5050_v62, 280  ;;  %v3571_v33 = vld [vmem:[#allocation2 + $0x80] sm:$0xff] }
 0x3b8   :  { %v2898_v38 = vmul.f32 %v3571_v33, %v4831_v25  ;;  %v3113_v25 = vadd.f32 %v2907_v51, %v2906_v37  ;;  %v3577_v33 = vld [vmem:[#allocation2 + $0x148] sm:$0xff]  ;;  %v2916_v51 = vmul.f32 %v3581_v47, %v4879_v1  ;;  %v3586_v1 = vld [vmem:[#allocation2] sm:$0xff]  ;;  %v3590_v47 = vld [vmem:[#allocation2 + $0x18] sm:$0xff] }
 0x3b9   :  { %v3582_v37 = vld [vmem:[#allocation2 + $0x8] sm:$0xff] }
 0x3ba   :  { %2495 = vbcast.lane.b32.xlu1 %v4876_v41, 312  ;;  %v5106_v63 = vpop.permute.xlu1 %2215  ;;  %v5108_v45 = vpop.permute.xlu0 %2510  ;;  %v3087_v41 = vadd.f32 %v2891_v55, %v2890_v49  ;;  %v2900_v49 = vmul.f32 %v3578_v16, %v4839_v40  ;;  %v2901_v40 = vmul.f32 %v3583_v20, %v5033_v15  ;;  %v3588_v15 = vld [vmem:[#allocation2 + $0x118] sm:$0xff] }
 0x3bb   :  { %5556 = vst [vmem:[#allocation48_spill] sm:$0xff] %v5106_v63  ;;  %5557 = vst [vmem:[#allocation49_spill] sm:$0xff] %v5108_v45  ;;  %2697 = vbcast.lane.b32.xlu0 %v5016_v12, 296  ;;  %v2914_v63 = vmul.f32 %v3574_v23, %v4871_v34  ;;  %v3100_v45 = vadd.f32 %v2899_v31, %v2898_v38  ;;  %v3579_v31 = vld [vmem:[#allocation2 + $0xd0] sm:$0xff] }
 0x3bc   :  { %v2908_v38 = vmul.f32 %v3579_v31, %v4859_v21  ;;  %v3088_v0 = vadd.f32 %v3087_v41, %v2892_v13  ;;  %v2924_v21 = vmul.f32 %v3584_v7, %v4899_v53  ;;  %v2882_v41 = vmul.f32 %v3586_v1, %v4799_v60  ;;  %v3598_v1 = vld [vmem:[#allocation2 + $0xe8] sm:$0xff] }
 0x3bd   :  { %v3126_v55 = vadd.f32 %v2915_v11, %v2914_v63  ;;  %v3101_v63 = vadd.f32 %v3100_v45, %v2900_v49  ;;  %v2917_v45 = vmul.f32 %v3588_v15, %v5093_v24  ;;  %v3589_v49 = vld [vmem:[#allocation2 + $0x158] sm:$0xff]  ;;  %v3592_v24 = vld [vmem:[#allocation2 + $0xa0] sm:$0xff] }
 0x3be   :  { %2506 = vbcast.lane.b32.xlu1 %v4896_v5, 264  ;;  %v2227_v4 = vpop.permute.xlu1 %2226  ;;  %v5120_v34 = vpop.permute.xlu0 %2518  ;;  %v3089_v16 = vadd.f32 %v3088_v0, %v2893_v6 }
 0x3bf   :  { %v2923_v58 = vmul.f32 %v3577_v33, %v2227_v4  ;;  %2829 = vbcast.lane.b32.xlu0 %v5064_v36, 280  ;;  %v2883_v4 = vmul.f32 %v3582_v37, %v4963_v52  ;;  %v3585_v33 = vld [vmem:[#allocation2 + $0xd8] sm:$0xff]  ;;  %v3587_v52 = vld [vmem:[#allocation2 + $0x10] sm:$0xff]  ;;  %v3591_v37 = vld [vmem:[#allocation2 + $0x60] sm:$0xff] }
 0x3c0   :  { %v2909_v57 = vmul.f32 %v3585_v33, %v5067_v14  ;;  %v2884_v13 = vmul.f32 %v3587_v52, %v4969_v22  ;;  %v2885_v14 = vmul.f32 %v3590_v47, %v4975_v35  ;;  %v2894_v22 = vmul.f32 %v3591_v37, %v4823_v48  ;;  %v3599_v52 = vld [vmem:[#allocation2 + $0x20] sm:$0xff]  ;;  %v3604_v47 = vld [vmem:[#allocation2 + $0xb0] sm:$0xff] }
 0x3c1   :  { %v3139_v23 = vadd.f32 %v2923_v58, %v2922_v9  ;;  %v3114_v9 = vadd.f32 %v3113_v25, %v2908_v38  ;;  %v3127_v58 = vadd.f32 %v3126_v55, %v2916_v51  ;;  %v3074_v18 = vadd.f32 %v2883_v4, %v2882_v41  ;;  %v3594_v51 = vld [vmem:[#allocation2 + $0x68] sm:$0xff] }
 0x3c2   :  { %2514 = vbcast.lane.b32.xlu1 %v4896_v5, 280  ;;  %v2235_v11 = vpop.permute.xlu1 %2234  ;;  %v3102_v25 = vadd.f32 %v3101_v63, %v2901_v40  ;;  %v5135_v38 = vpop.permute.xlu0 %2526  ;;  %v2902_v55 = vmul.f32 %v3592_v24, %v4843_v44  ;;  %v2895_v4 = vmul.f32 %v3594_v51, %v5009_v26  ;;  %v3090_v40 = vadd.f32 %v3089_v16, %v2894_v22 }
 0x3c3   :  { %2798 = vbcast.lane.b32.xlu0 %v5050_v62, 288  ;;  %v2925_v31 = vmul.f32 %v3589_v49, %v2235_v11  ;;  %v3140_v53 = vadd.f32 %v3139_v23, %v2924_v21  ;;  %v3115_v20 = vadd.f32 %v3114_v9, %v2909_v57  ;;  %v3075_v6 = vadd.f32 %v3074_v18, %v2884_v13  ;;  %v3593_v23 = vld [vmem:[#allocation2 + $0xe0] sm:$0xff]  ;;  %v3596_v21 = vld [vmem:[#allocation2 + $0xa8] sm:$0xff]  ;;  %v3602_v49 = vld [vmem:[#allocation2 + $0x70] sm:$0xff] }
 0x3c4   :  { %v3128_v0 = vadd.f32 %v3127_v58, %v2917_v45  ;;  %v2910_v35 = vmul.f32 %v3593_v23, %v4863_v17  ;;  %v3595_v11 = vld [vmem:[#allocation2 + $0x120] sm:$0xff]  ;;  %v2903_v33 = vmul.f32 %v3596_v21, %v5043_v50  ;;  %v3103_v57 = vadd.f32 %v3102_v25, %v2902_v55  ;;  %v3600_v13 = vld [vmem:[#allocation2 + $0x128] sm:$0xff] }
 0x3c5   :  { %v3141_v63 = vadd.f32 %v3140_v53, %v2925_v31  ;;  %v2918_v7 = vmul.f32 %v3595_v11, %v4883_v19  ;;  %v3076_v48 = vadd.f32 %v3075_v6, %v2885_v14  ;;  %v3597_v9 = vld [vmem:[#allocation2 + $0x160] sm:$0xff]  ;;  %v2911_v26 = vmul.f32 %v3598_v1, %v5073_v29  ;;  %v3601_v58 = vld [vmem:[#allocation2 + $0x168] sm:$0xff]  ;;  %v3609_v6 = vld [vmem:[#allocation2 + $0x190] sm:$0xff] }
 0x3c6   :  { %2522 = vbcast.lane.b32.xlu1 %v4896_v5, 296  ;;  %v2243_v60 = vpop.permute.xlu1 %2242  ;;  %v2926_v17 = vmul.f32 %v3597_v9, %v4903_v30  ;;  %v3116_v41 = vadd.f32 %v3115_v20, %v2910_v35  ;;  %v2886_v19 = vmul.f32 %v3599_v52, %v4803_v39  ;;  %v2919_v50 = vmul.f32 %v3600_v13, %v5099_v54  ;;  %v5153_v45 = vpop.permute.xlu0 %2537  ;;  %v3603_v31 = vld [vmem:[#allocation2 + $0x28] sm:$0xff]  ;;  %v3605_v25 = vld [vmem:[#allocation2 + $0x180] sm:$0xff]  ;;  %v3610_v35 = vld [vmem:[#allocation2 + $0x78] sm:$0xff] }
 0x3c7   :  { %2701 = vbcast.lane.b32.xlu0 %v5016_v12, 304  ;;  %v3129_v15 = vadd.f32 %v3128_v0, %v2918_v7  ;;  %v2927_v30 = vmul.f32 %v3601_v58, %v2243_v60  ;;  %v2896_v29 = vmul.f32 %v3602_v49, %v4827_v8  ;;  %v2887_v53 = vmul.f32 %v3603_v31, %v4981_v46  ;;  %v3606_v60 = vld [vmem:[#allocation2 + $0x188] sm:$0xff]  ;;  %v3607_v8 = vld [vmem:[#allocation2 + $0xf0] sm:$0xff]  ;;  %v3612_v7 = vld [vmem:[#allocation2 + $0xb8] sm:$0xff] }
 0x3c8   :  { %v3142_v16 = vadd.f32 %v3141_v63, %v2926_v17  ;;  %v3077_v18 = vadd.f32 %v3076_v48, %v2886_v19  ;;  %v3104_v39 = vadd.f32 %v3103_v57, %v2903_v33  ;;  %v2904_v14 = vmul.f32 %v3604_v47, %v4847_v61  ;;  %v3608_v46 = vld [vmem:[#allocation2 + $0x130] sm:$0xff]  ;;  %v3614_v57 = vld [vmem:[#allocation2 + $0x198] sm:$0xff] }
 0x3c9   :  { %v2930_v37 = vmul.f32 %v3605_v25, %v4911_v59  ;;  %v3117_v22 = vadd.f32 %v3116_v41, %v2911_v26  ;;  %v2912_v24 = vmul.f32 %v3607_v8, %v4867_v43  ;;  %v2920_v55 = vmul.f32 %v3608_v46, %v4887_v42  ;;  %v5558_v1 = vld [vmem:[#allocation12_spill] sm:$0xff]  ;;  %v3616_v41 = vld [vmem:[#allocation2 + $0x1a0] sm:$0xff] }
 0x3ca   :  { %2530 = vbcast.lane.b32.xlu1 %v4896_v5, 312  ;;  %v5146_v44 = vpop.permute.xlu1 %2250  ;;  %v3091_v5 = vadd.f32 %v3090_v40, %v2895_v4  ;;  %v2932_v0 = vmul.f32 %v3609_v6, %v4919_v28  ;;  %v3130_v23 = vadd.f32 %v3129_v15, %v2919_v50  ;;  %v2897_v61 = vmul.f32 %v3610_v35, %v5019_v10  ;;  %v3611_v40 = vld [vmem:[#allocation2 + $0x170] sm:$0xff]  ;;  %v5168_v21 = vpop.permute.xlu0 %2545  ;;  %v3613_v28 = vld [vmem:[#allocation2 + $0xf8] sm:$0xff] }
 0x3cb   :  { %2833 = vbcast.lane.b32.xlu0 %v5064_v36, 288  ;;  %v3143_v59 = vadd.f32 %v3142_v16, %v2927_v30  ;;  %v2928_v63 = vmul.f32 %v3611_v40, %v4907_v2  ;;  %v3078_v11 = vadd.f32 %v3077_v18, %v2887_v53  ;;  %v2905_v43 = vmul.f32 %v3612_v7, %v5053_v3  ;;  %v3615_v2 = vld [vmem:[#allocation2 + $0x30] sm:$0xff]  ;;  %v5559_v3 = vld [vmem:[#allocation13_spill] sm:$0xff]  ;;  %v3617_v19 = vld [vmem:[#allocation2 + $0x138] sm:$0xff] }
 0x3cc   :  { %v3092_v51 = vadd.f32 %v3091_v5, %v2896_v29  ;;  %v3105_v48 = vadd.f32 %v3104_v39, %v2904_v14  ;;  %v2913_v33 = vmul.f32 %v3613_v28, %v5083_v56  ;;  %v3118_v10 = vadd.f32 %v3117_v22, %v2912_v24  ;;  %v5560_v13 = vld [vmem:[#allocation48_spill] sm:$0xff]  ;;  %v5179_v39 = vpop.eup %3560  ;;  %v3620_v14 = vld [vmem:[#allocation2 + $0x1a8] sm:$0xff]  ;;  %v3623_v7 = vld [vmem:[#allocation2 + $0x1c0] sm:$0xff] }
 0x3cd   :  { %v2888_v26 = vmul.f32 %v3615_v2, %v5558_v1  ;;  %v2934_v52 = vmul.f32 %v3616_v41, %v5559_v3  ;;  %v2921_v50 = vmul.f32 %v3617_v19, %v5560_v13  ;;  %v3131_v15 = vadd.f32 %v3130_v23, %v2920_v55  ;;  %v3618_v58 = vld [vmem:[#allocation2 + $0x178] sm:$0xff]  ;;  %v5565_v1 = vld [vmem:[#allocation37_spill] sm:$0xff]  ;;  %v3625_v41 = vld [vmem:[#allocation2 + $0x1d0] sm:$0xff] }
 0x3ce   :  { %2541 = vbcast.lane.b32.xlu1 %v4916_v27, 264  ;;  %v2262_v54 = vpop.permute.xlu1 %2261  ;;  %v3093_v5 = vadd.f32 %v3092_v51, %v2897_v61  ;;  %v2929_v56 = vmul.f32 %v3618_v58, %v5146_v44  ;;  %v3144_v30 = vadd.f32 %v3143_v59, %v2928_v63  ;;  %v3619_v49 = vld [vmem:[#allocation2 + $0x38] sm:$0xff]  ;;  %v3106_v53 = vadd.f32 %v3105_v48, %v2905_v43  ;;  %v5182_v44 = vpop.permute.xlu0 %2553  ;;  %v5563_v43 = vld [vmem:[#allocation15_spill] sm:$0xff]  ;;  %v5566_v3 = vld [vmem:[#allocation17_spill] sm:$0xff] }
 0x3cf   :  { %v2931_v20 = vmul.f32 %v3606_v60, %v2262_v54  ;;  %2802 = vbcast.lane.b32.xlu0 %v5050_v62, 296  ;;  %v5561_v29 = vld [vmem:[#allocation28_spill] sm:$0xff]  ;;  %v3079_v54 = vadd.f32 %v3078_v11, %v2888_v26  ;;  %v3119_v47 = vadd.f32 %v3118_v10, %v2913_v33  ;;  %v3132_v22 = vadd.f32 %v3131_v15, %v2921_v50  ;;  %v3621_v60 = vld [vmem:[#allocation2 + $0x1b0] sm:$0xff] }
 0x3d0   :  { %v2889_v31 = vmul.f32 %v3619_v49, %v5561_v29  ;;  %v3094_v24 = vrot.slane %v3093_v5, 4  ;;  %v3145_v46 = vadd.f32 %v3144_v30, %v2929_v56  ;;  %v3107_v6 = vrot.slane %v3106_v53, 4  ;;  %v3622_v61 = vld [vmem:[#allocation2 + $0x1b8] sm:$0xff] }
 0x3d1   :  { %v3152_v4 = vadd.f32 %v2931_v20, %v2930_v37  ;;  %v5562_v20 = vld [vmem:[#allocation11_spill] sm:$0xff]  ;;  %v3120_v35 = vrot.slane %v3119_v47, 4  ;;  %v2938_v48 = vmul.f32 %v3623_v7, %v5563_v43  ;;  %v5564_v33 = vld [vmem:[#allocation16_spill] sm:$0xff]  ;;  %v2033_v15 = vmul.f32 %v5179_v39, %v4946_v32 }
 0x3d2   :  { %2549 = vbcast.lane.b32.xlu1 %v4916_v27, 280  ;;  %v2270_v42 = vpop.permute.xlu1 %2269  ;;  %v2936_v8 = vmul.f32 %v3621_v60, %v5562_v20  ;;  %v3080_v23 = vadd.f32 %v3079_v54, %v2889_v31  ;;  %v3095_v40 = vadd.f32 %v3094_v24, %v3093_v5  ;;  %v3146_v63 = vrot.slane %v3145_v46, 4  ;;  %v5188_v28 = vpop.permute.xlu0 %2561  ;;  %v3626_v49 = vld [vmem:[#allocation2 + $0x1d8] sm:$0xff]  ;;  %v3627_v54 = vld [vmem:[#allocation2 + $0x1e0] sm:$0xff] }
 0x3d3   :  { %v2933_v9 = vmul.f32 %v3614_v57, %v2270_v42  ;;  %v3153_v17 = vadd.f32 %v3152_v4, %v2932_v0  ;;  %2705 = vbcast.lane.b32.xlu0 %v5016_v12, 312  ;;  %v3133_v4 = vrot.slane %v3132_v22, 4  ;;  %v3108_v42 = vadd.f32 %v3107_v6, %v3106_v53 }
 0x3d4   :  { %v3081_v10 = vrot.slane %v3080_v23, 4  ;;  %v3121_v57 = vadd.f32 %v3120_v35, %v3119_v47  ;;  %v3096_v19 = vrot.slane %v3095_v40, 2  ;;  %v3147_v13 = vadd.f32 %v3146_v63, %v3145_v46  ;;  %v5567_v47 = vld [vmem:[#allocation18_spill] sm:$0xff]  ;;  %v3629_v35 = vld [vmem:[#allocation2 + $0x1f0] sm:$0xff] }
 0x3d5   :  { %v3154_v16 = vadd.f32 %v3153_v17, %v2933_v9  ;;  %v3624_v17 = vld [vmem:[#allocation2 + $0x1c8] sm:$0xff]  ;;  %v3134_v26 = vadd.f32 %v3133_v4, %v3132_v22  ;;  %v3109_v5 = vrot.slane %v3108_v42, 2  ;;  %v2036_v22 = vsub.f32 2.0, %v2033_v15 }
 0x3d6   :  { %2557 = vbcast.lane.b32.xlu1 %v4916_v27, 296  ;;  %v2278_v18 = vpop.permute.xlu1 %2277  ;;  %v3082_v30 = vadd.f32 %v3081_v10, %v3080_v23  ;;  %v3148_v32 = vrot.slane %v3147_v13, 2  ;;  %v3630_v10 = vld [vmem:[#allocation2 + $0x1f8] sm:$0xff] }
 0x3d7   :  { %v2935_v25 = vmul.f32 %v3620_v14, %v2278_v18  ;;  %v3155_v37 = vadd.f32 %v3154_v16, %v2934_v52  ;;  %2837 = vbcast.lane.b32.xlu0 %v5064_v36, 296  ;;  %v2940_v52 = vmul.f32 %v3625_v41, %v5566_v3  ;;  %v3122_v16 = vrot.slane %v3121_v57, 2  ;;  %v5197_v18 = vpop.permute.xlu0 %2572 }
 0x3d8   :  { %v3135_v53 = vrot.slane %v3134_v26, 2  ;;  %v2942_v14 = vmul.f32 %v3627_v54, %v5567_v47  ;;  %v3110_v60 = vadd.f32 %v3109_v5, %v3108_v42  ;;  %v3083_v24 = vrot.slane %v3082_v30, 2 }
 0x3d9   :  { %v3156_v55 = vadd.f32 %v3155_v37, %v2935_v25  ;;  %v3097_v25 = vadd.f32 %v3096_v19, %v3095_v40  ;;  %v3123_v46 = vadd.f32 %v3122_v16, %v3121_v57  ;;  %v3149_v4 = vadd.f32 %v3148_v32, %v3147_v13  ;;  %v5569_v19 = vld [vmem:[#allocation22_spill] sm:$0xff] }
 0x3da   :  { %2565 = vbcast.lane.b32.xlu1 %v4916_v27, 312  ;;  %v2286_v0 = vpop.permute.xlu1 %2285  ;;  %v3136_v23 = vadd.f32 %v3135_v53, %v3134_v26  ;;  %v2039_v63 = vmul.f32 %v5179_v39, %v2036_v22  ;;  %v3084_v42 = vadd.f32 %v3083_v24, %v3082_v30 }
 0x3db   :  { %v2937_v51 = vmul.f32 %v3622_v61, %v2286_v0  ;;  %v3157_v59 = vadd.f32 %v3156_v55, %v2936_v8  ;;  %2806 = vbcast.lane.b32.xlu0 %v5050_v62, 304  ;;  %v3628_v55 = vld [vmem:[#allocation2 + $0x1e8] sm:$0xff]  ;;  %v5568_v61 = vld [vmem:[#allocation19_spill] sm:$0xff]  ;;  %v5204_v43 = vpop.permute.xlu0 %2580  ;;  %v3150_v26 = vrot.slane %v3149_v4, 1 }
 0x3dc   :  { %v3085_v13 = vrot.slane %v3084_v42, 1  ;;  %v3390_v5 = vrot.slane %v2039_v63, 2  ;;  %v3391_v16 = vrot.slane %v2039_v63, 3  ;;  %v3392_v53 = vrot.slane %v2039_v63, 4 }
 0x3dd   :  { %v3158_v11 = vadd.f32 %v3157_v59, %v2937_v51  ;;  %v2944_v51 = vmul.f32 %v3629_v35, %v5568_v61  ;;  %v3098_v59 = vrot.slane %v3097_v25, 1  ;;  %v3393_v32 = vrot.slane %v2039_v63, 5 }
 0x3de   :  { %2576 = vbcast.lane.b32.xlu1 %v5564_v33, 264  ;;  %v2297_v27 = vpop.permute.xlu1 %2296 }
 0x3df   :  { %v3159_v9 = vrot.slane %v3158_v11, 4  ;;  %v2939_v2 = vmul.f32 %v3624_v17, %v2297_v27  ;;  %2775 = vbcast.lane.b32.xlu0 %v5565_v1, 312  ;;  %v3124_v27 = vrot.slane %v3123_v46, 1  ;;  %v3137_v17 = vrot.slane %v3136_v23, 1 }
 0x3e1   :  { %v3165_v50 = vadd.f32 %v2939_v2, %v2938_v48  ;;  %v3160_v58 = vadd.f32 %v3159_v9, %v3158_v11  ;;  %v3111_v11 = vrot.slane %v3110_v60, 1  ;;  %v3099_v2 = vadd.f32 %v3098_v59, %v3097_v25 }
 0x3e2   :  { %2584 = vbcast.lane.b32.xlu1 %v5564_v33, 280  ;;  %v2305_v56 = vpop.permute.xlu1 %2304  ;;  %v3125_v15 = vadd.f32 %v3124_v27, %v3123_v46 }
 0x3e3   :  { %v2941_v29 = vmul.f32 %v3626_v49, %v2305_v56  ;;  %v3166_v31 = vadd.f32 %v3165_v50, %v2940_v52  ;;  %2810 = vbcast.lane.b32.xlu0 %v5050_v62, 312  ;;  %v3161_v20 = vrot.slane %v3160_v58, 2  ;;  %v3112_v3 = vadd.f32 %v3111_v11, %v3110_v60  ;;  %v5210_v56 = vpop.permute.xlu0 %2588 }
 0x3e4   :  { %v3389_v50 = vrot.slane %v2039_v63, 1  ;;  %v3151_v49 = vadd.f32 %v3150_v26, %v3149_v4  ;;  %v3437_v25 = vmul.f32 %v3391_v16, %v3125_v15  ;;  %v3394_v60 = vrot.slane %v2039_v63, 6  ;;  %v5570_v26 = vld [vmem:[#allocation27_spill] sm:$0xff] }
 0x3e5   :  { %v3167_v37 = vadd.f32 %v3166_v31, %v2941_v29  ;;  %v3162_v7 = vadd.f32 %v3161_v20, %v3160_v58  ;;  %v3138_v58 = vadd.f32 %v3137_v17, %v3136_v23  ;;  %v3436_v31 = vmul.f32 %v3390_v5, %v3112_v3 }
 0x3e6   :  { %2592 = vbcast.lane.b32.xlu1 %v5564_v33, 296  ;;  %v2313_v8 = vpop.permute.xlu1 %2312  ;;  %v3435_v30 = vmul.f32 %v3389_v50, %v3099_v2  ;;  %v3486_v35 = vrot.slane %v3437_v25, 5  ;;  %v3395_v11 = vrot.slane %v2039_v63, 7 }
 0x3e7   :  { %v2943_v6 = vmul.f32 %v3628_v55, %v2313_v8  ;;  %v3168_v0 = vadd.f32 %v3167_v37, %v2942_v14  ;;  %2845 = vbcast.lane.b32.xlu0 %v5064_v36, 312  ;;  %v3163_v52 = vrot.slane %v3162_v7, 1  ;;  %v3086_v14 = vadd.f32 %v3085_v13, %v3084_v42 }
 0x3e8   :  { %v3438_v22 = vmul.f32 %v3392_v53, %v3138_v58  ;;  %v3482_v20 = vrot.slane %v3435_v30, 7  ;;  %v3439_v8 = vmul.f32 %v3393_v32, %v3151_v49  ;;  %v3484_v46 = vrot.slane %v3436_v31, 6  ;;  %v5571_v58 = vld [vmem:[#allocation34_spill] sm:$0xff] }
 0x3e9   :  { %v3169_v40 = vadd.f32 %v3168_v0, %v2943_v6  ;;  %v3164_v54 = vadd.f32 %v3163_v52, %v3162_v7  ;;  %v5215_v6 = vpop.permute.xlu0 %2596  ;;  %v3434_v23 = vmul.f32 %v3086_v14, %v2039_v63 }
 0x3ea   :  { %2600 = vbcast.lane.b32.xlu1 %v5564_v33, 312  ;;  %v2321_v48 = vpop.permute.xlu1 %2320  ;;  %v3490_v4 = vrot.slane %v3439_v8, 3 }
 0x3eb   :  { %v2945_v57 = vmul.f32 %v3630_v10, %v2321_v48  ;;  %v3170_v9 = vadd.f32 %v3169_v40, %v2944_v51  ;;  %v3440_v55 = vmul.f32 %v3394_v60, %v3164_v54  ;;  %v3488_v51 = vrot.slane %v3438_v22, 4  ;;  %v5576_v22 = vld [vmem:[#allocation43_spill] sm:$0xff] }
 0x3ec   :  { %v3483_v59 = vsel %vm1968_vm7, %v3482_v20, %v3434_v23  ;;  %v3632_v23 = vld [vmem:[#allocation2 + $0x288] sm:$0xff] }
 0x3ed   :  { %v3171_v41 = vadd.f32 %v3170_v9, %v2945_v57  ;;  %v3485_v7 = vsel %vm1970_vm8, %v3484_v46, %v3483_v59  ;;  %v3492_v48 = vrot.slane %v3440_v55, 2  ;;  %v5226_v57 = vpop.permute.xlu0 %2607  ;;  %v5579_v59 = vld [vmem:[#allocation26_spill] sm:$0xff] }
 0x3ee   :  { %2611 = vbcast.lane.b32.xlu1 %v5569_v19, 264  ;;  %v5208_v39 = vpop.permute.xlu1 %2331  ;;  %v3487_v10 = vsel %vm1972_vm9, %v3486_v35, %v3485_v7  ;;  %v3635_v7 = vld [vmem:[#allocation2 + $0x280] sm:$0xff] }
 0x3ef   :  { %v3172_v33 = vrot.slane %v3171_v41, 4  ;;  %v3489_v9 = vsel %vm1974_vm10, %v3488_v51, %v3487_v10  ;;  %v3633_v51 = vld [vmem:[#allocation2 + $0x240] sm:$0xff]  ;;  %v3636_v10 = vld [vmem:[#allocation2 + $0x308] sm:$0xff] }
 0x3f0   :  { %v3491_v17 = vsel %vm1976_vm11, %v3490_v4, %v3489_v9  ;;  %v2954_v4 = vmul.f32 %v3633_v51, %v5579_v59  ;;  %v3640_v51 = vld [vmem:[#allocation2 + $0x250] sm:$0xff]  ;;  %v5584_v59 = vld [vmem:[#allocation29_spill] sm:$0xff] }
 0x3f1   :  { %v3173_v29 = vadd.f32 %v3172_v33, %v3171_v41  ;;  %v3493_v41 = vsel %vm1978_vm12, %v3492_v48, %v3491_v17  ;;  %v5233_v52 = vpop.permute.xlu0 %2615  ;;  %v5580_v48 = vld [vmem:[#allocation32_spill] sm:$0xff]  ;;  %v3637_v17 = vld [vmem:[#allocation2 + $0x2c0] sm:$0xff] }
 0x3f2   :  { %2619 = vbcast.lane.b32.xlu1 %v5569_v19, 280  ;;  %v5213_v47 = vpop.permute.xlu1 %2339 }
 0x3f3   :  { %v3174_v37 = vrot.slane %v3173_v29, 2 }
 0x3f5   :  { %v3175_v24 = vadd.f32 %v3174_v37, %v3173_v29  ;;  %v5241_v50 = vpop.permute.xlu0 %2623 }
 0x3f6   :  { %2627 = vbcast.lane.b32.xlu1 %v5569_v19, 296  ;;  %v5218_v0 = vpop.permute.xlu1 %2347 }
 0x3f7   :  { %v3176_v61 = vrot.slane %v3175_v24, 1 }
 0x3f9   :  { %v3177_v40 = vadd.f32 %v3176_v61, %v3175_v24  ;;  %v5246_v33 = vpop.permute.xlu0 %2631 }
 0x3fa   :  { %2635 = vbcast.lane.b32.xlu1 %v5569_v19, 312  ;;  %v5223_v42 = vpop.permute.xlu1 %2355 }
 0x3fb   :  { %v3441_v27 = vmul.f32 %v3395_v11, %v3177_v40  ;;  %v3634_v40 = vld [vmem:[#allocation2 + $0x2c8] sm:$0xff] }
 0x3fd   :  { %v3494_v2 = vrot.slane %v3441_v27, 1  ;;  %v5252_v16 = vpop.permute.xlu0 %2642  ;;  %v2962_v27 = vmul.f32 %v3635_v7, %v5580_v48  ;;  %v5585_v7 = vld [vmem:[#allocation47_spill] sm:$0xff] }
 0x3fe   :  { %2646 = vbcast.lane.b32.xlu1 %v5570_v26, 264  ;;  %v2367_v63 = vpop.permute.xlu1 %2366 }
 0x3ff   :  { %v3495_v3 = vsel %vm1980_vm13, %v3494_v2, %v3493_v41  ;;  %v5581_v2 = vld [vmem:[#allocation38_spill] sm:$0xff]  ;;  %v3638_v41 = vld [vmem:[#allocation2 + $0x300] sm:$0xff] }
 0x400   :  { %3527 = vst [vmem:[#allocation7] sm:$0xff] %v3495_v3  ;;  %v5582_v3 = vld [vmem:[#allocation42_spill] sm:$0xff] }
 0x401   :  { %v5257_v29 = vpop.permute.xlu0 %2650 }
 0x402   :  { %2654 = vbcast.lane.b32.xlu1 %v5570_v26, 280  ;;  %v5236_v19 = vpop.permute.xlu1 %2374  ;;  %5572 = vst [vmem:[#allocation12_spill] sm:$0xff] %v5257_v29  ;;  %v3647_v29 = vld [vmem:[#allocation2 + $0x310] sm:$0xff] }
 0x405   :  { %v5263_v53 = vpop.permute.xlu0 %2658 }
 0x406   :  { %2662 = vbcast.lane.b32.xlu1 %v5570_v26, 296  ;;  %v5239_v13 = vpop.permute.xlu1 %2382  ;;  %5573 = vst [vmem:[#allocation13_spill] sm:$0xff] %v5263_v53 }
 0x409   :  { %v5268_v14 = vpop.permute.xlu0 %2666 }
 0x40a   :  { %2670 = vbcast.lane.b32.xlu1 %v5570_v26, 312  ;;  %v5244_v15 = vpop.permute.xlu1 %2390  ;;  %5574 = vst [vmem:[#allocation48_spill] sm:$0xff] %v5268_v14  ;;  %v2970_v26 = vmul.f32 %v3637_v17, %v5581_v2  ;;  %v3643_v17 = vld [vmem:[#allocation2 + $0x200] sm:$0xff]  ;;  %v3646_v14 = vld [vmem:[#allocation2 + $0x258] sm:$0xff] }
 0x40b   :  { %v5586_v2 = vld [vmem:[#allocation21_spill] sm:$0xff]  ;;  %v2957_v53 = vmul.f32 %v3646_v14, %v5236_v19  ;;  %v3651_v14 = vld [vmem:[#allocation2 + $0x210] sm:$0xff] }
 0x40d   :  { %v5276_v37 = vpop.permute.xlu0 %2677 }
 0x40e   :  { %2681 = vbcast.lane.b32.xlu1 %v5016_v12, 264  ;;  %v2402_v5 = vpop.permute.xlu1 %2401  ;;  %5575 = vst [vmem:[#allocation28_spill] sm:$0xff] %v5276_v37 }
 0x40f   :  { %v2963_v35 = vmul.f32 %v3632_v23, %v2402_v5  ;;  %v2978_v5 = vmul.f32 %v3638_v41, %v5582_v3  ;;  %v2946_v41 = vmul.f32 %v3643_v17, %v5586_v2  ;;  %v3644_v3 = vld [vmem:[#allocation2 + $0x290] sm:$0xff] }
 0x411   :  { %v5279_v20 = vpop.permute.xlu0 %2712 }
 0x412   :  { %2716 = vbcast.lane.b32.xlu1 %v5571_v58, 264  ;;  %v5250_v30 = vpop.permute.xlu1 %2409  ;;  %5577 = vst [vmem:[#allocation11_spill] sm:$0xff] %v5279_v20  ;;  %v3204_v20 = vadd.f32 %v2963_v35, %v2962_v27 }
 0x415   :  { %v5287_v46 = vpop.permute.xlu0 %2685 }
 0x416   :  { %2747 = vbcast.lane.b32.xlu1 %v5565_v1, 256  ;;  %v5255_v49 = vpop.permute.xlu1 %2417  ;;  %5578 = vst [vmem:[#allocation15_spill] sm:$0xff] %v5287_v46 }
 0x419   :  { %v5297_v46 = vpop.permute.xlu0 %2751 }
 0x41a   :  { %2720 = vbcast.lane.b32.xlu1 %v5571_v58, 272  ;;  %v5260_v31 = vpop.permute.xlu1 %2425  ;;  %5583 = vst [vmem:[#allocation16_spill] sm:$0xff] %v5297_v46  ;;  %v5588_v46 = vld [vmem:[#allocation39_spill] sm:$0xff] }
 0x41e   :  { %2786 = vbcast.lane.b32.xlu1 %v5050_v62, 264  ;;  %v2437_v12 = vpop.permute.xlu1 %2436 }
 0x41f   :  { %v2971_v11 = vmul.f32 %v3634_v40, %v2437_v12  ;;  %v2956_v40 = vmul.f32 %v3640_v51, %v5584_v59 }
 0x422   :  { %2755 = vbcast.lane.b32.xlu1 %v5565_v1, 272  ;;  %v5266_v54 = vpop.permute.xlu1 %2444 }
 0x426   :  { %2821 = vbcast.lane.b32.xlu1 %v5064_v36, 264  ;;  %v5271_v25 = vpop.permute.xlu1 %2452 }
 0x42a   :  { %2790 = vbcast.lane.b32.xlu1 %v5050_v62, 272  ;;  %v5274_v32 = vpop.permute.xlu1 %2460  ;;  %v3631_v62 = vld [vmem:[#allocation2 + $0x248] sm:$0xff] }
 0x42b   :  { %v2955_v55 = vmul.f32 %v3631_v62, %v2367_v63  ;;  %v3639_v62 = vld [vmem:[#allocation2 + $0x208] sm:$0xff] }
 0x42c   :  { %v2947_v23 = vmul.f32 %v3639_v62, %v5208_v39  ;;  %v5587_v39 = vld [vmem:[#allocation33_spill] sm:$0xff]  ;;  %v3645_v62 = vld [vmem:[#allocation2 + $0x2d0] sm:$0xff] }
 0x42d   :  { %v3191_v63 = vadd.f32 %v2955_v55, %v2954_v4  ;;  %v3642_v55 = vld [vmem:[#allocation2 + $0x348] sm:$0xff]  ;;  %v2964_v35 = vmul.f32 %v3644_v3, %v5587_v39  ;;  %v2972_v37 = vmul.f32 %v3645_v62, %v5588_v46  ;;  %v3650_v46 = vld [vmem:[#allocation2 + $0x2d8] sm:$0xff] }
 0x42e   :  { %2856 = vbcast.lane.b32.xlu1 %v5576_v22, 264  ;;  %v2472_v60 = vpop.permute.xlu1 %2471  ;;  %v2973_v3 = vmul.f32 %v3650_v46, %v5266_v54  ;;  %v3656_v46 = vld [vmem:[#allocation2 + $0x2a0] sm:$0xff] }
 0x42f   :  { %v2979_v9 = vmul.f32 %v3636_v10, %v2472_v60  ;;  %v3641_v60 = vld [vmem:[#allocation2 + $0x340] sm:$0xff]  ;;  %v3217_v10 = vadd.f32 %v2971_v11, %v2970_v26  ;;  %v3192_v51 = vadd.f32 %v3191_v63, %v2956_v40  ;;  %v3178_v26 = vadd.f32 %v2947_v23, %v2946_v41  ;;  %v5591_v63 = vld [vmem:[#allocation23_spill] sm:$0xff] }
 0x430   :  { %v2986_v48 = vmul.f32 %v3641_v60, %v5585_v7  ;;  %v5589_v60 = vld [vmem:[#allocation44_spill] sm:$0xff]  ;;  %v2948_v40 = vmul.f32 %v3651_v14, %v5591_v63  ;;  %v5593_v14 = vld [vmem:[#allocation35_spill] sm:$0xff] }
 0x431   :  { %v3230_v27 = vadd.f32 %v2979_v9, %v2978_v5  ;;  %v2980_v11 = vmul.f32 %v3647_v29, %v5589_v60  ;;  %v3649_v9 = vld [vmem:[#allocation2 + $0x350] sm:$0xff]  ;;  %v5590_v5 = vld [vmem:[#allocation49_spill] sm:$0xff]  ;;  %v3218_v19 = vadd.f32 %v3217_v10, %v2972_v37  ;;  %v3652_v29 = vld [vmem:[#allocation2 + $0x318] sm:$0xff] }
 0x432   :  { %2759 = vbcast.lane.b32.xlu1 %v5565_v1, 280  ;;  %v5282_v8 = vpop.permute.xlu1 %2479  ;;  %v2988_v2 = vmul.f32 %v3649_v9, %v5590_v5  ;;  %v3179_v60 = vadd.f32 %v3178_v26, %v2948_v40  ;;  %v3655_v37 = vld [vmem:[#allocation2 + $0x260] sm:$0xff]  ;;  %v5592_v10 = vld [vmem:[#allocation30_spill] sm:$0xff] }
 0x433   :  { %v2981_v23 = vmul.f32 %v3652_v29, %v5282_v8  ;;  %v2958_v9 = vmul.f32 %v3655_v37, %v5592_v10  ;;  %v3219_v5 = vadd.f32 %v3218_v19, %v2973_v3  ;;  %v2966_v8 = vmul.f32 %v3656_v46, %v5593_v14  ;;  %v3660_v40 = vld [vmem:[#allocation2 + $0x2a8] sm:$0xff] }
 0x434   :  { %v2967_v29 = vmul.f32 %v3660_v40, %v5255_v49  ;;  %v5597_v37 = vld [vmem:[#allocation14_spill] sm:$0xff]  ;;  %v5600_v40 = vld [vmem:[#allocation41_spill] sm:$0xff] }
 0x435   :  { %3562 = vrcp.f32 %v5597_v37 }
 0x436   :  { %2728 = vbcast.lane.b32.xlu1 %v5571_v58, 288  ;;  %v5285_v24 = vpop.permute.xlu1 %2487 }
 0x43a   :  { %2860 = vbcast.lane.b32.xlu1 %v5576_v22, 272  ;;  %v5290_v61 = vpop.permute.xlu1 %2495 }
 0x43e   :  { %2763 = vbcast.lane.b32.xlu1 %v5565_v1, 288  ;;  %v2507_v12 = vpop.permute.xlu1 %2506 }
 0x43f   :  { %v2987_v4 = vmul.f32 %v3642_v55, %v2507_v12  ;;  %v3648_v12 = vld [vmem:[#allocation2 + $0x298] sm:$0xff]  ;;  %v3205_v55 = vadd.f32 %v3204_v20, %v2964_v35  ;;  %v3193_v20 = vadd.f32 %v3192_v51, %v2957_v53  ;;  %v3657_v53 = vld [vmem:[#allocation2 + $0x2e0] sm:$0xff] }
 0x440   :  { %v2965_v7 = vmul.f32 %v3648_v12, %v5250_v30  ;;  %v3231_v30 = vadd.f32 %v3230_v27, %v2980_v11  ;;  %v3654_v35 = vld [vmem:[#allocation2 + $0x218] sm:$0xff] }
 0x441   :  { %v3243_v59 = vadd.f32 %v2987_v4, %v2986_v48  ;;  %v5312_v48 = vpop.permute.xlu0 %2782  ;;  %v3653_v4 = vld [vmem:[#allocation2 + $0x358] sm:$0xff]  ;;  %v2949_v62 = vmul.f32 %v3654_v35, %v5213_v47  ;;  %v3194_v47 = vadd.f32 %v3193_v20, %v2958_v9  ;;  %v3665_v9 = vld [vmem:[#allocation2 + $0x368] sm:$0xff] }
 0x442   :  { %2732 = vbcast.lane.b32.xlu1 %v5571_v58, 296  ;;  %v2515_v17 = vpop.permute.xlu1 %2514  ;;  %v3206_v12 = vadd.f32 %v3205_v55, %v2965_v7  ;;  %v3232_v27 = vadd.f32 %v3231_v30, %v2981_v23  ;;  %v5594_v51 = vld [vmem:[#allocation40_spill] sm:$0xff]  ;;  %v3659_v7 = vld [vmem:[#allocation2 + $0x320] sm:$0xff] }
 0x443   :  { %v2989_v41 = vmul.f32 %v3653_v4, %v2515_v17  ;;  %v3244_v39 = vadd.f32 %v3243_v59, %v2988_v2  ;;  %v2974_v11 = vmul.f32 %v3657_v53, %v5594_v51  ;;  %v3658_v59 = vld [vmem:[#allocation2 + $0x268] sm:$0xff]  ;;  %v5595_v55 = vld [vmem:[#allocation45_spill] sm:$0xff]  ;;  %v3180_v63 = vadd.f32 %v3179_v60, %v2949_v62  ;;  %v5596_v35 = vld [vmem:[#allocation24_spill] sm:$0xff] }
 0x444   :  { %v2959_v17 = vmul.f32 %v3658_v59, %v5239_v13  ;;  %v2982_v2 = vmul.f32 %v3659_v7, %v5595_v55  ;;  %v3207_v3 = vadd.f32 %v3206_v12, %v2966_v8  ;;  %v3661_v30 = vld [vmem:[#allocation2 + $0x360] sm:$0xff]  ;;  %v3662_v13 = vld [vmem:[#allocation2 + $0x2e8] sm:$0xff]  ;;  %v3666_v8 = vld [vmem:[#allocation2 + $0x270] sm:$0xff] }
 0x445   :  { %v3245_v26 = vadd.f32 %v3244_v39, %v2989_v41  ;;  %v5323_v19 = vpop.permute.xlu0 %2689  ;;  %v2990_v4 = vmul.f32 %v3661_v30, %v5120_v34  ;;  %v2975_v20 = vmul.f32 %v3662_v13, %v5271_v25  ;;  %v3220_v41 = vadd.f32 %v3219_v5, %v2974_v11  ;;  %v3663_v39 = vld [vmem:[#allocation2 + $0x220] sm:$0xff]  ;;  %v3664_v60 = vld [vmem:[#allocation2 + $0x328] sm:$0xff]  ;;  %v5598_v53 = vld [vmem:[#allocation31_spill] sm:$0xff] }
 0x446   :  { %2864 = vbcast.lane.b32.xlu1 %v5576_v22, 280  ;;  %v2523_v54 = vpop.permute.xlu1 %2522  ;;  %v2950_v62 = vmul.f32 %v3663_v39, %v5596_v35  ;;  %v2983_v49 = vmul.f32 %v3664_v60, %v5285_v24  ;;  %v3233_v12 = vadd.f32 %v3232_v27, %v2982_v2  ;;  %v3195_v10 = vadd.f32 %v3194_v47, %v2959_v17  ;;  %v3667_v51 = vld [vmem:[#allocation2 + $0x228] sm:$0xff]  ;;  %v3668_v7 = vld [vmem:[#allocation2 + $0x2b0] sm:$0xff]  ;;  %v5599_v24 = vld [vmem:[#allocation36_spill] sm:$0xff] }
 0x447   :  { %v2991_v46 = vmul.f32 %v3665_v9, %v2523_v54  ;;  %v3246_v14 = vadd.f32 %v3245_v26, %v2990_v4  ;;  %v2960_v34 = vmul.f32 %v3666_v8, %v5598_v53  ;;  %v2951_v25 = vmul.f32 %v3667_v51, %v5218_v0  ;;  %v3669_v55 = vld [vmem:[#allocation2 + $0x380] sm:$0xff]  ;;  %v3670_v54 = vld [vmem:[#allocation2 + $0x388] sm:$0xff]  ;;  %v3671_v2 = vld [vmem:[#allocation2 + $0x2f0] sm:$0xff] }
 0x448   :  { %v3181_v5 = vadd.f32 %v3180_v63, %v2950_v62  ;;  %v3208_v11 = vadd.f32 %v3207_v3, %v2967_v29  ;;  %v2968_v27 = vmul.f32 %v3668_v7, %v5599_v24  ;;  %v2994_v17 = vmul.f32 %v3669_v55, %v5153_v45  ;;  %v3672_v4 = vld [vmem:[#allocation2 + $0x330] sm:$0xff]  ;;  %v5601_v13 = vld [vmem:[#allocation46_spill] sm:$0xff]  ;;  %v3674_v35 = vld [vmem:[#allocation2 + $0x278] sm:$0xff] }
 0x449   :  { %v3221_v47 = vadd.f32 %v3220_v41, %v2975_v20  ;;  %v2976_v30 = vmul.f32 %v3671_v2, %v5600_v40  ;;  %v2984_v0 = vmul.f32 %v3672_v4, %v5601_v13  ;;  %v3673_v63 = vld [vmem:[#allocation2 + $0x390] sm:$0xff]  ;;  %v5341_v3 = vpop.permute.xlu0 %2817  ;;  %v3234_v39 = vadd.f32 %v3233_v12, %v2983_v49  ;;  %v3676_v53 = vld [vmem:[#allocation2 + $0x2b8] sm:$0xff]  ;;  %v3680_v55 = vld [vmem:[#allocation2 + $0x3a0] sm:$0xff]  ;;  %v5356_v4 = vpop.eup %3562 }
 0x44a   :  { %2767 = vbcast.lane.b32.xlu1 %v5565_v1, 296  ;;  %v5326_v23 = vpop.permute.xlu1 %2530  ;;  %v2996_v29 = vmul.f32 %v3673_v63, %v5168_v21  ;;  %v2961_v62 = vmul.f32 %v3674_v35, %v5244_v15  ;;  %v3196_v60 = vadd.f32 %v3195_v10, %v2960_v34  ;;  %v3247_v45 = vadd.f32 %v3246_v14, %v2991_v46  ;;  %v3675_v41 = vld [vmem:[#allocation2 + $0x370] sm:$0xff]  ;;  %v3677_v7 = vld [vmem:[#allocation2 + $0x2f8] sm:$0xff]  ;;  %v5602_v14 = vld [vmem:[#allocation25_spill] sm:$0xff] }
 0x44b   :  { %v2992_v9 = vmul.f32 %v3675_v41, %v5135_v38  ;;  %v3182_v8 = vadd.f32 %v3181_v5, %v2951_v25  ;;  %v2969_v51 = vmul.f32 %v3676_v53, %v5260_v31  ;;  %v2977_v49 = vmul.f32 %v3677_v7, %v5274_v32  ;;  %v3678_v24 = vld [vmem:[#allocation2 + $0x398] sm:$0xff]  ;;  %v3679_v46 = vld [vmem:[#allocation2 + $0x230] sm:$0xff]  ;;  %v3684_v13 = vld [vmem:[#allocation2 + $0x3a8] sm:$0xff] }
 0x44c   :  { %v3222_v12 = vadd.f32 %v3221_v47, %v2976_v30  ;;  %v2952_v34 = vmul.f32 %v3679_v46, %v5602_v14  ;;  %v2998_v38 = vmul.f32 %v3680_v55, %v5182_v44  ;;  %v3681_v25 = vld [vmem:[#allocation2 + $0x338] sm:$0xff]  ;;  %v3235_v5 = vadd.f32 %v3234_v39, %v2984_v0  ;;  %v3688_v46 = vld [vmem:[#allocation2 + $0x3c8] sm:$0xff] }
 0x44d   :  { %v2985_v31 = vmul.f32 %v3681_v25, %v5290_v61  ;;  %v3683_v47 = vld [vmem:[#allocation2 + $0x238] sm:$0xff]  ;;  %v5353_v30 = vpop.permute.xlu0 %2724 }
 0x44e   :  { %2736 = vbcast.lane.b32.xlu1 %v5571_v58, 304  ;;  %v2542_v59 = vpop.permute.xlu1 %2541  ;;  %v3183_v2 = vadd.f32 %v3182_v8, %v2952_v34  ;;  %v3223_v61 = vadd.f32 %v3222_v12, %v2977_v49  ;;  %v3686_v41 = vld [vmem:[#allocation2 + $0x3b8] sm:$0xff]  ;;  %v2034_v34 = vmul.f32 %v5356_v4, %v5597_v37 }
 0x44f   :  { %v2995_v26 = vmul.f32 %v3670_v54, %v2542_v59  ;;  %v3209_v59 = vadd.f32 %v3208_v11, %v2968_v27  ;;  %v3197_v11 = vadd.f32 %v3196_v60, %v2961_v62  ;;  %v3682_v27 = vld [vmem:[#allocation2 + $0x378] sm:$0xff]  ;;  %v3248_v54 = vadd.f32 %v3247_v45, %v2992_v9 }
 0x450   :  { %v2037_v37 = vsub.f32 2.0, %v2034_v34 }
 0x451   :  { %v3256_v20 = vadd.f32 %v2995_v26, %v2994_v17  ;;  %v2993_v17 = vmul.f32 %v3682_v27, %v5326_v23  ;;  %v2953_v26 = vmul.f32 %v3683_v47, %v5223_v42  ;;  %v3210_v40 = vadd.f32 %v3209_v59, %v2969_v51  ;;  %v3685_v23 = vld [vmem:[#allocation2 + $0x3b0] sm:$0xff]  ;;  %v5360_v53 = vpop.permute.xlu0 %2852 }
 0x452   :  { %2868 = vbcast.lane.b32.xlu1 %v5576_v22, 288  ;;  %v2550_v21 = vpop.permute.xlu1 %2549  ;;  %v3000_v39 = vmul.f32 %v3685_v23, %v5188_v28  ;;  %v3198_v35 = vrot.slane %v3197_v11, 4 }
 0x453   :  { %v2997_v15 = vmul.f32 %v3678_v24, %v2550_v21  ;;  %v3257_v10 = vadd.f32 %v3256_v20, %v2996_v29  ;;  %v3236_v29 = vadd.f32 %v3235_v5, %v2985_v31  ;;  %v3249_v62 = vadd.f32 %v3248_v54, %v2993_v17  ;;  %v3687_v24 = vld [vmem:[#allocation2 + $0x3c0] sm:$0xff] }
 0x454   :  { %v3184_v60 = vadd.f32 %v3183_v2, %v2953_v26  ;;  %v3211_v45 = vrot.slane %v3210_v40, 4  ;;  %v3199_v59 = vadd.f32 %v3198_v35, %v3197_v11  ;;  %v3690_v26 = vld [vmem:[#allocation2 + $0x3d8] sm:$0xff] }
 0x455   :  { %v3258_v32 = vadd.f32 %v3257_v10, %v2997_v15  ;;  %v3237_v51 = vrot.slane %v3236_v29, 4  ;;  %v3250_v21 = vrot.slane %v3249_v62, 4  ;;  %v3002_v15 = vmul.f32 %v3687_v24, %v5197_v18  ;;  %v5367_v54 = vpop.permute.xlu0 %2693 }
 0x456   :  { %2771 = vbcast.lane.b32.xlu1 %v5565_v1, 304  ;;  %v2558_v44 = vpop.permute.xlu1 %2557  ;;  %v3224_v1 = vrot.slane %v3223_v61, 4  ;;  %v3185_v49 = vrot.slane %v3184_v60, 4  ;;  %v3212_v28 = vadd.f32 %v3211_v45, %v3210_v40  ;;  %v3200_v31 = vrot.slane %v3199_v59, 2 }
 0x457   :  { %v2999_v0 = vmul.f32 %v3684_v13, %v2558_v44  ;;  %v3259_v63 = vadd.f32 %v3258_v32, %v2998_v38  ;;  %v3238_v55 = vadd.f32 %v3237_v51, %v3236_v29  ;;  %v3689_v38 = vld [vmem:[#allocation2 + $0x3d0] sm:$0xff]  ;;  %v3251_v5 = vadd.f32 %v3250_v21, %v3249_v62  ;;  %v3692_v62 = vld [vmem:[#allocation2 + $0x3e8] sm:$0xff] }
 0x458   :  { %v3004_v25 = vmul.f32 %v3689_v38, %v5204_v43  ;;  %v3186_v27 = vadd.f32 %v3185_v49, %v3184_v60  ;;  %v3213_v17 = vrot.slane %v3212_v28, 2  ;;  %v3201_v13 = vadd.f32 %v3200_v31, %v3199_v59 }
 0x459   :  { %v3260_v42 = vadd.f32 %v3259_v63, %v2999_v0  ;;  %v3239_v44 = vrot.slane %v3238_v55, 2  ;;  %v3252_v0 = vrot.slane %v3251_v5, 2  ;;  %v5373_v45 = vmul.f32 %v5356_v4, %v2037_v37 }
 0x45a   :  { %2740 = vbcast.lane.b32.xlu1 %v5571_v58, 312  ;;  %v2566_v20 = vpop.permute.xlu1 %2565  ;;  %v3225_v58 = vadd.f32 %v3224_v1, %v3223_v61  ;;  %v3691_v61 = vld [vmem:[#allocation2 + $0x3e0] sm:$0xff]  ;;  %v3187_v29 = vrot.slane %v3186_v27, 2  ;;  %v3214_v23 = vadd.f32 %v3213_v17, %v3212_v28  ;;  %v3696_v17 = vld [vmem:[#allocation2 + $0x408] sm:$0xff] }
 0x45b   :  { %v3001_v9 = vmul.f32 %v3686_v41, %v2566_v20  ;;  %v3261_v8 = vadd.f32 %v3260_v42, %v3000_v39  ;;  %v3006_v43 = vmul.f32 %v3691_v61, %v5210_v56  ;;  %v5375_v20 = vpop.permute.xlu0 %2825  ;;  %v3240_v1 = vadd.f32 %v3239_v44, %v3238_v55  ;;  %v3693_v56 = vld [vmem:[#allocation2 + $0x3f0] sm:$0xff] }
 0x45c   :  { %v3226_v47 = vrot.slane %v3225_v58, 2  ;;  %v3008_v41 = vmul.f32 %v3693_v56, %v5215_v6  ;;  %v3188_v59 = vadd.f32 %v3187_v29, %v3186_v27  ;;  %v3215_v21 = vrot.slane %v3214_v23, 1 }
 0x45d   :  { %v3262_v7 = vadd.f32 %v3261_v8, %v3001_v9  ;;  %v3202_v9 = vrot.slane %v3201_v13, 1  ;;  %v3253_v8 = vadd.f32 %v3252_v0, %v3251_v5  ;;  %v3397_v55 = vrot.slane %v5373_v45, 2 }
 0x45e   :  { %2872 = vbcast.lane.b32.xlu1 %v5576_v22, 296  ;;  %v2577_v12 = vpop.permute.xlu1 %2576  ;;  %v3189_v6 = vrot.slane %v3188_v59, 1  ;;  %v3216_v34 = vadd.f32 %v3215_v21, %v3214_v23  ;;  %v3401_v56 = vrot.slane %v5373_v45, 6 }
 0x45f   :  { %v3263_v10 = vrot.slane %v3262_v7, 4  ;;  %v3003_v14 = vmul.f32 %v3688_v46, %v2577_v12  ;;  %v3694_v12 = vld [vmem:[#allocation2 + $0x3f8] sm:$0xff]  ;;  %v3254_v46 = vrot.slane %v3253_v8, 1  ;;  %v5381_v38 = vpop.permute.xlu0 %2794 }
 0x460   :  { %v3444_v0 = vmul.f32 %v3397_v55, %v3216_v34 }
 0x461   :  { %v3269_v11 = vadd.f32 %v3003_v14, %v3002_v15  ;;  %v3264_v32 = vadd.f32 %v3263_v10, %v3262_v7  ;;  %v3241_v15 = vrot.slane %v3240_v1, 1  ;;  %v3396_v10 = vrot.slane %v5373_v45, 1 }
 0x462   :  { %2841 = vbcast.lane.b32.xlu1 %v5064_v36, 304  ;;  %v2585_v18 = vpop.permute.xlu1 %2584  ;;  %v3227_v36 = vadd.f32 %v3226_v47, %v3225_v58  ;;  %v3203_v58 = vadd.f32 %v3202_v9, %v3201_v13  ;;  %v3255_v44 = vadd.f32 %v3254_v46, %v3253_v8  ;;  %v3190_v13 = vadd.f32 %v3189_v6, %v3188_v59 }
 0x463   :  { %v3005_v2 = vmul.f32 %v3690_v26, %v2585_v18  ;;  %v3270_v40 = vadd.f32 %v3269_v11, %v3004_v25  ;;  %v3265_v39 = vrot.slane %v3264_v32, 2  ;;  %v3697_v18 = vld [vmem:[#allocation2 + $0x410] sm:$0xff]  ;;  %v3398_v26 = vrot.slane %v5373_v45, 3 }
 0x464   :  { %v3228_v28 = vrot.slane %v3227_v36, 1  ;;  %v3012_v47 = vmul.f32 %v3697_v18, %v5233_v52  ;;  %v3443_v37 = vmul.f32 %v3396_v10, %v3203_v58  ;;  %v3442_v59 = vmul.f32 %v3190_v13, %v5373_v45 }
 0x465   :  { %v3271_v63 = vadd.f32 %v3270_v40, %v3005_v2  ;;  %v3266_v7 = vadd.f32 %v3265_v39, %v3264_v32  ;;  %v3242_v2 = vadd.f32 %v3241_v15, %v3240_v1  ;;  %v3399_v40 = vrot.slane %v5373_v45, 4 }
 0x466   :  { %2876 = vbcast.lane.b32.xlu1 %v5576_v22, 304  ;;  %v2593_v35 = vpop.permute.xlu1 %2592  ;;  %v3229_v11 = vadd.f32 %v3228_v28, %v3227_v36  ;;  %v3498_v21 = vrot.slane %v3444_v0, 6  ;;  %v3402_v46 = vrot.slane %v5373_v45, 7 }
 0x467   :  { %v3007_v42 = vmul.f32 %v3692_v62, %v2593_v35  ;;  %v3272_v60 = vadd.f32 %v3271_v63, %v3006_v43  ;;  %v3267_v25 = vrot.slane %v3266_v7, 1  ;;  %v3698_v35 = vld [vmem:[#allocation2 + $0x418] sm:$0xff]  ;;  %v3699_v62 = vld [vmem:[#allocation2 + $0x420] sm:$0xff]  ;;  %v3446_v1 = vmul.f32 %v3399_v40, %v3242_v2 }
 0x468   :  { %v3445_v23 = vmul.f32 %v3398_v26, %v3229_v11 }
 0x469   :  { %v3273_v51 = vadd.f32 %v3272_v60, %v3007_v42  ;;  %v3268_v63 = vadd.f32 %v3267_v25, %v3266_v7  ;;  %v3014_v42 = vmul.f32 %v3699_v62, %v5241_v50  ;;  %v5389_v60 = vpop.permute.xlu0 %2697  ;;  %v3701_v50 = vld [vmem:[#allocation2 + $0x430] sm:$0xff]  ;;  %v3502_v10 = vrot.slane %v3446_v1, 4  ;;  %v5605_v1 = vld [vmem:[#allocation13_spill] sm:$0xff] }
 0x46a   :  { %2880 = vbcast.lane.b32.xlu1 %v5576_v22, 312  ;;  %v2601_v49 = vpop.permute.xlu1 %2600  ;;  %v3695_v22 = vld [vmem:[#allocation2 + $0x400] sm:$0xff]  ;;  %v3500_v28 = vrot.slane %v3445_v23, 5  ;;  %v3016_v58 = vmul.f32 %v3701_v50, %v5246_v33  ;;  %v3710_v50 = vld [vmem:[#allocation2 + $0x478] sm:$0xff] }
 0x46b   :  { %v3009_v24 = vmul.f32 %v3694_v12, %v2601_v49  ;;  %v3274_v4 = vadd.f32 %v3273_v51, %v3008_v41  ;;  %v3010_v5 = vmul.f32 %v3695_v22, %v5226_v57  ;;  %v3400_v57 = vrot.slane %v5373_v45, 5 }
 0x46c   :  { %v3496_v41 = vrot.slane %v3443_v37, 7  ;;  %v3448_v7 = vmul.f32 %v3401_v56, %v3268_v63  ;;  %v5603_v37 = vld [vmem:[#allocation20_spill] sm:$0xff]  ;;  %v3705_v63 = vld [vmem:[#allocation2 + $0x450] sm:$0xff] }
 0x46d   :  { %v3275_v14 = vadd.f32 %v3274_v4, %v3009_v24  ;;  %v3447_v9 = vmul.f32 %v3400_v57, %v3255_v44  ;;  %v3700_v24 = vld [vmem:[#allocation2 + $0x428] sm:$0xff]  ;;  %3564 = vrcp.f32 %v5603_v37  ;;  %v3703_v44 = vld [vmem:[#allocation2 + $0x440] sm:$0xff] }
 0x46e   :  { %v2612_v31 = vpop.permute.xlu1 %2611  ;;  %v3506_v22 = vrot.slane %v3448_v7, 2 }
 0x46f   :  { %v3276_v27 = vrot.slane %v3275_v14, 4  ;;  %v3011_v32 = vmul.f32 %v3696_v17, %v2612_v31  ;;  %v3504_v6 = vrot.slane %v3447_v9, 3  ;;  %v5397_v31 = vpop.permute.xlu0 %2829  ;;  %v3702_v17 = vld [vmem:[#allocation2 + $0x438] sm:$0xff] }
 0x471   :  { %v3277_v61 = vadd.f32 %v3276_v27, %v3275_v14  ;;  %v3282_v43 = vadd.f32 %v3011_v32, %v3010_v5  ;;  %v3497_v14 = vsel %vm1968_vm7, %v3496_v41, %v3442_v59 }
 0x472   :  { %v2620_v29 = vpop.permute.xlu1 %2619  ;;  %v3499_v25 = vsel %vm1970_vm8, %v3498_v21, %v3497_v14 }
 0x473   :  { %v3278_v39 = vrot.slane %v3277_v61, 2  ;;  %v3013_v36 = vmul.f32 %v3698_v35, %v2620_v29  ;;  %v3283_v52 = vadd.f32 %v3282_v43, %v3012_v47  ;;  %v3501_v11 = vsel %vm1972_vm9, %v3500_v28, %v3499_v25  ;;  %v3704_v43 = vld [vmem:[#allocation2 + $0x448] sm:$0xff]  ;;  %v5406_v57 = vpop.permute.xlu0 %2798  ;;  %v5604_v29 = vld [vmem:[#allocation12_spill] sm:$0xff]  ;;  %v3711_v25 = vld [vmem:[#allocation2 + $0x480] sm:$0xff] }
 0x474   :  { %v3503_v18 = vsel %vm1974_vm10, %v3502_v10, %v3501_v11  ;;  %v3020_v23 = vmul.f32 %v3705_v63, %v5604_v29  ;;  %v5606_v28 = vld [vmem:[#allocation48_spill] sm:$0xff] }
 0x475   :  { %v3279_v8 = vadd.f32 %v3278_v39, %v3277_v61  ;;  %v3284_v51 = vadd.f32 %v3283_v52, %v3013_v36  ;;  %v3505_v26 = vsel %vm1976_vm11, %v3504_v6, %v3503_v18  ;;  %v3018_v61 = vmul.f32 %v3703_v44, %v5252_v16  ;;  %v3706_v36 = vld [vmem:[#allocation2 + $0x458] sm:$0xff]  ;;  %v5608_v18 = vld [vmem:[#allocation15_spill] sm:$0xff] }
 0x476   :  { %v2628_v49 = vpop.permute.xlu1 %2627  ;;  %v3507_v40 = vsel %vm1978_vm12, %v3506_v22, %v3505_v26  ;;  %v5607_v22 = vld [vmem:[#allocation28_spill] sm:$0xff] }
 0x477   :  { %v3280_v12 = vrot.slane %v3279_v8, 1  ;;  %v3015_v4 = vmul.f32 %v3700_v24, %v2628_v49  ;;  %v3285_v15 = vadd.f32 %v3284_v51, %v3014_v42  ;;  %v3707_v42 = vld [vmem:[#allocation2 + $0x460] sm:$0xff]  ;;  %v2702_v9 = vpop.permute.xlu0 %2701  ;;  %v3708_v51 = vld [vmem:[#allocation2 + $0x468] sm:$0xff]  ;;  %v3565_v7 = vpop.eup %3564  ;;  %v3709_v49 = vld [vmem:[#allocation2 + $0x470] sm:$0xff] }
 0x478   :  { %v3022_v56 = vmul.f32 %v3707_v42, %v5605_v1 }
 0x479   :  { %v3281_v34 = vadd.f32 %v3280_v12, %v3279_v8  ;;  %v3286_v55 = vadd.f32 %v3285_v15, %v3015_v4  ;;  %v3024_v12 = vmul.f32 %v3709_v49, %v5606_v28  ;;  %v3720_v28 = vld [vmem:[#allocation2 + $0x500] sm:$0xff] }
 0x47a   :  { %v2636_v5 = vpop.permute.xlu1 %2635 }
 0x47b   :  { %v3449_v27 = vmul.f32 %v3402_v46, %v3281_v34  ;;  %v3017_v32 = vmul.f32 %v3702_v17, %v2636_v5  ;;  %v3287_v33 = vadd.f32 %v3286_v55, %v3016_v58  ;;  %v2035_v46 = vmul.f32 %v3565_v7, %v5603_v37  ;;  %v5412_v14 = vpop.permute.xlu0 %2833  ;;  %v5609_v37 = vld [vmem:[#allocation11_spill] sm:$0xff] }
 0x47c   :  { %v3026_v5 = vmul.f32 %v3711_v25, %v5607_v22 }
 0x47d   :  { %v3508_v45 = vrot.slane %v3449_v27, 1  ;;  %v3288_v47 = vadd.f32 %v3287_v33, %v3017_v32  ;;  %v3712_v27 = vld [vmem:[#allocation2 + $0x488] sm:$0xff]  ;;  %v2038_v32 = vsub.f32 2.0, %v2035_v46  ;;  %v3713_v33 = vld [vmem:[#allocation2 + $0x490] sm:$0xff] }
 0x47e   :  { %v2647_v2 = vpop.permute.xlu1 %2646 }
 0x47f   :  { %v3019_v13 = vmul.f32 %v3704_v43, %v2647_v2  ;;  %v3509_v0 = vsel %vm1980_vm13, %v3508_v45, %v3507_v40  ;;  %v3289_v41 = vrot.slane %v3288_v47, 4  ;;  %v3028_v45 = vmul.f32 %v3713_v33, %v5608_v18  ;;  %v3714_v40 = vld [vmem:[#allocation2 + $0x4c0] sm:$0xff] }
 0x480   :  { %3528 = vst [vmem:[#allocation7 + $0x8] sm:$0xff] %v3509_v0  ;;  %v3034_v44 = vmul.f32 %v3714_v40, %v5609_v37 }
 0x481   :  { %v3295_v39 = vadd.f32 %v3019_v13, %v3018_v61  ;;  %v3290_v24 = vadd.f32 %v3289_v41, %v3288_v47  ;;  %v5417_v61 = vpop.permute.xlu0 %2802  ;;  %v3715_v13 = vld [vmem:[#allocation2 + $0x498] sm:$0xff]  ;;  %v3718_v41 = vld [vmem:[#allocation2 + $0x508] sm:$0xff] }
 0x482   :  { %v2655_v35 = vpop.permute.xlu1 %2654  ;;  %v3029_v0 = vmul.f32 %v3715_v13, %v5323_v19 }
 0x483   :  { %v3021_v52 = vmul.f32 %v3706_v36, %v2655_v35  ;;  %v3296_v62 = vadd.f32 %v3295_v39, %v3020_v23  ;;  %v3291_v6 = vrot.slane %v3290_v24, 2  ;;  %v3716_v23 = vld [vmem:[#allocation2 + $0x4c8] sm:$0xff]  ;;  %v5420_v35 = vmul.f32 %v3565_v7, %v2038_v32  ;;  %v3717_v36 = vld [vmem:[#allocation2 + $0x4a0] sm:$0xff]  ;;  %v3721_v7 = vld [vmem:[#allocation2 + $0x4b0] sm:$0xff] }
 0x485   :  { %v3297_v16 = vadd.f32 %v3296_v62, %v3021_v52  ;;  %v3292_v47 = vadd.f32 %v3291_v6, %v3290_v24  ;;  %v3030_v52 = vmul.f32 %v3717_v36, %v5367_v54  ;;  %v3032_v24 = vmul.f32 %v3721_v7, %v2702_v9  ;;  %v3722_v6 = vld [vmem:[#allocation2 + $0x4b8] sm:$0xff] }
 0x486   :  { %v2663_v8 = vpop.permute.xlu1 %2662  ;;  %v3403_v54 = vrot.slane %v5420_v35, 1  ;;  %v3404_v37 = vrot.slane %v5420_v35, 2 }
 0x487   :  { %v3023_v59 = vmul.f32 %v3708_v51, %v2663_v8  ;;  %v3298_v21 = vadd.f32 %v3297_v16, %v3022_v56  ;;  %v3293_v62 = vrot.slane %v3292_v47, 1  ;;  %v5610_v16 = vld [vmem:[#allocation16_spill] sm:$0xff] }
 0x488   :  { %v3043_v8 = vmul.f32 %v3718_v41, %v5610_v16  ;;  %v3726_v41 = vld [vmem:[#allocation2 + $0x550] sm:$0xff] }
 0x489   :  { %v3299_v4 = vadd.f32 %v3298_v21, %v3023_v59  ;;  %v3719_v59 = vld [vmem:[#allocation2 + $0x4a8] sm:$0xff] }
 0x48a   :  { %v2671_v15 = vpop.permute.xlu1 %2670  ;;  %v3031_v19 = vmul.f32 %v3719_v59, %v5389_v60  ;;  %v3723_v60 = vld [vmem:[#allocation2 + $0x4d0] sm:$0xff] }
 0x48b   :  { %v3025_v58 = vmul.f32 %v3710_v50, %v2671_v15  ;;  %v3300_v10 = vadd.f32 %v3299_v4, %v3024_v12  ;;  %v2706_v4 = vpop.permute.xlu0 %2705  ;;  %v3294_v15 = vadd.f32 %v3293_v62, %v3292_v47  ;;  %v3724_v62 = vld [vmem:[#allocation2 + $0x548] sm:$0xff] }
 0x48d   :  { %v3301_v34 = vadd.f32 %v3300_v10, %v3025_v58 }
 0x48e   :  { %v2682_v55 = vpop.permute.xlu1 %2681 }
 0x48f   :  { %v3302_v11 = vrot.slane %v3301_v34, 4  ;;  %v3027_v17 = vmul.f32 %v3712_v27, %v2682_v55 }
 0x491   :  { %v3303_v26 = vadd.f32 %v3302_v11, %v3301_v34  ;;  %v3308_v2 = vadd.f32 %v3027_v17, %v3026_v5  ;;  %v3033_v34 = vmul.f32 %v3722_v6, %v2706_v4  ;;  %v3450_v5 = vmul.f32 %v3294_v15, %v5420_v35  ;;  %v3728_v4 = vld [vmem:[#allocation2 + $0x560] sm:$0xff]  ;;  %v3729_v15 = vld [vmem:[#allocation2 + $0x510] sm:$0xff] }
 0x492   :  { %v2717_v43 = vpop.permute.xlu1 %2716 }
 0x493   :  { %v3304_v63 = vrot.slane %v3303_v26, 2  ;;  %v3309_v29 = vadd.f32 %v3308_v2, %v3028_v45  ;;  %v3035_v39 = vmul.f32 %v3716_v23, %v2717_v43 }
 0x495   :  { %v3305_v42 = vadd.f32 %v3304_v63, %v3303_v26  ;;  %v3310_v1 = vadd.f32 %v3309_v29, %v3029_v0  ;;  %v3321_v56 = vadd.f32 %v3035_v39, %v3034_v44 }
 0x496   :  { %v2748_v51 = vpop.permute.xlu1 %2747 }
 0x497   :  { %v3306_v21 = vrot.slane %v3305_v42, 1  ;;  %v3311_v49 = vadd.f32 %v3310_v1, %v3030_v52  ;;  %v3042_v12 = vmul.f32 %v3720_v28, %v2748_v51  ;;  %v3725_v1 = vld [vmem:[#allocation2 + $0x540] sm:$0xff]  ;;  %v5441_v51 = vpop.permute.xlu0 %2837 }
 0x499   :  { %v3307_v50 = vadd.f32 %v3306_v21, %v3305_v42  ;;  %v3312_v58 = vadd.f32 %v3311_v49, %v3031_v19  ;;  %v5426_v10 = vadd.f32 %v3043_v8, %v3042_v12  ;;  %v3727_v49 = vld [vmem:[#allocation2 + $0x558] sm:$0xff] }
 0x49a   :  { %v2721_v46 = vpop.permute.xlu1 %2720  ;;  %v3053_v28 = vmul.f32 %v3727_v49, %v5381_v38 }
 0x49b   :  { %v3451_v55 = vmul.f32 %v3403_v54, %v3307_v50  ;;  %v3313_v25 = vadd.f32 %v3312_v58, %v3032_v24  ;;  %v3036_v22 = vmul.f32 %v3723_v60, %v2721_v46  ;;  %v2807_v12 = vpop.permute.xlu0 %2806  ;;  %v3054_v54 = vmul.f32 %v3728_v4, %v5406_v57  ;;  %v3730_v50 = vld [vmem:[#allocation2 + $0x588] sm:$0xff]  ;;  %v3732_v60 = vld [vmem:[#allocation2 + $0x580] sm:$0xff] }
 0x49d   :  { %v3510_v11 = vrot.slane %v3451_v55, 7  ;;  %v3314_v27 = vadd.f32 %v3313_v25, %v3033_v34  ;;  %v5429_v9 = vadd.f32 %v3321_v56, %v3036_v22  ;;  %v3050_v56 = vmul.f32 %v3725_v1, %v5312_v48  ;;  %v3731_v55 = vld [vmem:[#allocation2 + $0x518] sm:$0xff] }
 0x49e   :  { %v2787_v17 = vpop.permute.xlu1 %2786  ;;  %v3058_v22 = vmul.f32 %v3732_v60, %v5341_v3  ;;  %v3738_v3 = vld [vmem:[#allocation2 + $0x590] sm:$0xff] }
 0x49f   :  { %v3511_v32 = vsel %vm1968_vm7, %v3510_v11, %v3450_v5  ;;  %v3315_v33 = vrot.slane %v3314_v27, 4  ;;  %v3051_v42 = vmul.f32 %v3724_v62, %v2787_v17  ;;  %v2776_v34 = vpop.permute.xlu0 %2775  ;;  %v3733_v5 = vld [vmem:[#allocation2 + $0x568] sm:$0xff] }
 0x4a0   :  { %v3055_v38 = vmul.f32 %v3733_v5, %v5417_v61  ;;  %v3739_v61 = vld [vmem:[#allocation2 + $0x570] sm:$0xff] }
 0x4a1   :  { %v3316_v18 = vadd.f32 %v3315_v33, %v3314_v27  ;;  %v3347_v59 = vadd.f32 %v3051_v42, %v3050_v56  ;;  %v3734_v27 = vld [vmem:[#allocation2 + $0x520] sm:$0xff] }
 0x4a2   :  { %v2756_v45 = vpop.permute.xlu1 %2755 }
 0x4a3   :  { %v3317_v47 = vrot.slane %v3316_v18, 2  ;;  %v3044_v48 = vmul.f32 %v3729_v15, %v2756_v45 }
 0x4a5   :  { %v3318_v26 = vadd.f32 %v3317_v47, %v3316_v18  ;;  %v3335_v11 = vadd.f32 %v5426_v10, %v3044_v48  ;;  %v3735_v18 = vld [vmem:[#allocation2 + $0x4d8] sm:$0xff]  ;;  %v2811_v10 = vpop.permute.xlu0 %2810 }
 0x4a6   :  { %v2822_v2 = vpop.permute.xlu1 %2821  ;;  %v3037_v45 = vmul.f32 %v3735_v18, %v5353_v30 }
 0x4a7   :  { %v3319_v40 = vrot.slane %v3318_v26, 1  ;;  %v3059_v58 = vmul.f32 %v3730_v50, %v2822_v2  ;;  %v3746_v50 = vld [vmem:[#allocation2 + $0x4f8] sm:$0xff] }
 0x4a9   :  { %v3320_v44 = vadd.f32 %v3319_v40, %v3318_v26  ;;  %v3360_v57 = vadd.f32 %v3059_v58, %v3058_v22  ;;  %v3736_v26 = vld [vmem:[#allocation2 + $0x4e0] sm:$0xff]  ;;  %v3737_v40 = vld [vmem:[#allocation2 + $0x528] sm:$0xff] }
 0x4aa   :  { %v2791_v43 = vpop.permute.xlu1 %2790 }
 0x4ab   :  { %v3452_v13 = vmul.f32 %v3404_v37, %v3320_v44  ;;  %v3052_v16 = vmul.f32 %v3726_v41, %v2791_v43  ;;  %v3060_v44 = vmul.f32 %v3738_v3, %v5375_v20  ;;  %v3056_v43 = vmul.f32 %v3739_v61, %v2807_v12  ;;  %v3741_v41 = vld [vmem:[#allocation2 + $0x4f0] sm:$0xff]  ;;  %v3744_v20 = vld [vmem:[#allocation2 + $0x598] sm:$0xff]  ;;  %v3753_v3 = vld [vmem:[#allocation2 + $0x5e0] sm:$0xff] }
 0x4ac   :  { %v3745_v12 = vld [vmem:[#allocation2 + $0x538] sm:$0xff] }
 0x4ad   :  { %v3512_v0 = vrot.slane %v3452_v13, 6  ;;  %v3348_v19 = vadd.f32 %v3347_v59, %v3052_v16  ;;  %v3323_v13 = vadd.f32 %v5429_v9, %v3037_v45  ;;  %v3361_v62 = vadd.f32 %v3360_v57, %v3060_v44  ;;  %v3742_v16 = vld [vmem:[#allocation2 + $0x530] sm:$0xff]  ;;  %v3751_v45 = vld [vmem:[#allocation2 + $0x5d8] sm:$0xff] }
 0x4ae   :  { %v5433_v63 = vpop.permute.xlu1 %2856 }
 0x4af   :  { %v5436_v29 = vsel %vm1970_vm8, %v3512_v0, %v3511_v32  ;;  %v3349_v7 = vadd.f32 %v3348_v19, %v3053_v28  ;;  %v3743_v19 = vld [vmem:[#allocation2 + $0x578] sm:$0xff]  ;;  %v3061_v28 = vmul.f32 %v3744_v20, %v5397_v31  ;;  %v3749_v31 = vld [vmem:[#allocation2 + $0x5c0] sm:$0xff]  ;;  %v3406_v20 = vrot.slane %v5420_v35, 4 }
 0x4b0   :  { %v3057_v49 = vmul.f32 %v3743_v19, %v2811_v10  ;;  %v3754_v10 = vld [vmem:[#allocation2 + $0x5b0] sm:$0xff] }
 0x4b1   :  { %v3350_v46 = vadd.f32 %v3349_v7, %v3054_v54  ;;  %v3049_v7 = vmul.f32 %v3745_v12, %v2776_v34  ;;  %v3362_v54 = vadd.f32 %v3361_v62, %v3061_v28  ;;  %v3066_v34 = vmul.f32 %v3749_v31, %v5360_v53  ;;  %v3757_v19 = vld [vmem:[#allocation2 + $0x5f0] sm:$0xff] }
 0x4b2   :  { %v2760_v23 = vpop.permute.xlu1 %2759  ;;  %v3405_v28 = vrot.slane %v5420_v35, 3 }
 0x4b3   :  { %v3045_v25 = vmul.f32 %v3731_v55, %v2760_v23  ;;  %v3351_v32 = vadd.f32 %v3350_v46, %v3055_v38  ;;  %v3740_v23 = vld [vmem:[#allocation2 + $0x4e8] sm:$0xff]  ;;  %v3748_v55 = vld [vmem:[#allocation2 + $0x5a0] sm:$0xff]  ;;  %v3750_v38 = vld [vmem:[#allocation2 + $0x5d0] sm:$0xff] }
 0x4b4   :  { %v3747_v46 = vld [vmem:[#allocation2 + $0x5c8] sm:$0xff] }
 0x4b5   :  { %v3336_v47 = vadd.f32 %v3335_v11, %v3045_v25  ;;  %v3352_v42 = vadd.f32 %v3351_v32, %v3056_v43  ;;  %v3062_v25 = vmul.f32 %v3748_v55, %v5412_v14 }
 0x4b6   :  { %v2729_v39 = vpop.permute.xlu1 %2728 }
 0x4b7   :  { %v3038_v2 = vmul.f32 %v3736_v26, %v2729_v39  ;;  %v3353_v4 = vadd.f32 %v3352_v42, %v3057_v49  ;;  %v3363_v32 = vadd.f32 %v3362_v54, %v3062_v25  ;;  %v2846_v26 = vpop.permute.xlu0 %2845 }
 0x4b9   :  { %v3324_v30 = vadd.f32 %v3323_v13, %v3038_v2  ;;  %v3354_v5 = vrot.slane %v3353_v4, 4 }
 0x4ba   :  { %v5438_v36 = vpop.permute.xlu1 %2860 }
 0x4bb   :  { %v3068_v11 = vmul.f32 %v3750_v38, %v5438_v36 }
 0x4be   :  { %v2764_v52 = vpop.permute.xlu1 %2763 }
 0x4bf   :  { %v3046_v17 = vmul.f32 %v3734_v27, %v2764_v52 }
 0x4c1   :  { %v3337_v0 = vadd.f32 %v3336_v47, %v3046_v17  ;;  %v3752_v47 = vld [vmem:[#allocation2 + $0x5a8] sm:$0xff] }
 0x4c2   :  { %v2733_v8 = vpop.permute.xlu1 %2732  ;;  %v3063_v14 = vmul.f32 %v3752_v47, %v5441_v51  ;;  %v3756_v51 = vld [vmem:[#allocation2 + $0x5e8] sm:$0xff] }
 0x4c3   :  { %v3039_v52 = vmul.f32 %v3740_v23, %v2733_v8  ;;  %v3755_v23 = vld [vmem:[#allocation2 + $0x5b8] sm:$0xff] }
 0x4c5   :  { %v3325_v9 = vadd.f32 %v3324_v30, %v3039_v52  ;;  %v3065_v52 = vmul.f32 %v3755_v23, %v2846_v26  ;;  %v3409_v26 = vrot.slane %v5420_v35, 7 }
 0x4c6   :  { %v5443_v21 = vpop.permute.xlu1 %2864 }
 0x4ca   :  { %v2768_v24 = vpop.permute.xlu1 %2767 }
 0x4cb   :  { %v3047_v37 = vmul.f32 %v3737_v40, %v2768_v24 }
 0x4cd   :  { %v3338_v56 = vadd.f32 %v3337_v0, %v3047_v37  ;;  %v3355_v37 = vadd.f32 %v3354_v5, %v3353_v4  ;;  %v3364_v0 = vadd.f32 %v3363_v32, %v3063_v14  ;;  %v3408_v32 = vrot.slane %v5420_v35, 6 }
 0x4ce   :  { %v2737_v6 = vpop.permute.xlu1 %2736 }
 0x4cf   :  { %v3040_v39 = vmul.f32 %v3741_v41, %v2737_v6  ;;  %v3067_v6 = vmul.f32 %v3747_v46, %v5433_v63  ;;  %v3069_v63 = vmul.f32 %v3751_v45, %v5443_v21  ;;  %v3407_v45 = vrot.slane %v5420_v35, 5 }
 0x4d1   :  { %v3326_v15 = vadd.f32 %v3325_v9, %v3040_v39  ;;  %v3373_v18 = vadd.f32 %v3067_v6, %v3066_v34 }
 0x4d2   :  { %v5450_v33 = vpop.permute.xlu1 %2868 }
 0x4d3   :  { %v3374_v53 = vadd.f32 %v3373_v18, %v3068_v11  ;;  %v3070_v44 = vmul.f32 %v3753_v3, %v5450_v33 }
 0x4d5   :  { %v3375_v21 = vadd.f32 %v3374_v53, %v3069_v63 }
 0x4d6   :  { %v2772_v1 = vpop.permute.xlu1 %2771 }
 0x4d7   :  { %v3048_v59 = vmul.f32 %v3742_v16, %v2772_v1  ;;  %v3376_v41 = vadd.f32 %v3375_v21, %v3070_v44 }
 0x4d9   :  { %v3339_v24 = vadd.f32 %v3338_v56, %v3048_v59  ;;  %v3356_v56 = vrot.slane %v3355_v37, 2 }
 0x4da   :  { %v2741_v8 = vpop.permute.xlu1 %2740 }
 0x4db   :  { %v3340_v48 = vadd.f32 %v3339_v24, %v3049_v7  ;;  %v3041_v58 = vmul.f32 %v3746_v50, %v2741_v8  ;;  %v3357_v24 = vadd.f32 %v3356_v56, %v3355_v37  ;;  %v3758_v50 = vld [vmem:[#allocation2 + $0x5f8] sm:$0xff] }
 0x4dd   :  { %v3341_v60 = vrot.slane %v3340_v48, 4  ;;  %v3327_v22 = vadd.f32 %v3326_v15, %v3041_v58 }
 0x4de   :  { %v2873_v27 = vpop.permute.xlu1 %2872 }
 0x4df   :  { %v3342_v17 = vadd.f32 %v3341_v60, %v3340_v48  ;;  %v3328_v57 = vrot.slane %v3327_v22, 4  ;;  %v3071_v1 = vmul.f32 %v3756_v51, %v2873_v27  ;;  %v3358_v60 = vrot.slane %v3357_v24, 1 }
 0x4e1   :  { %v3343_v2 = vrot.slane %v3342_v17, 2  ;;  %v3329_v40 = vadd.f32 %v3328_v57, %v3327_v22  ;;  %v3377_v7 = vadd.f32 %v3376_v41, %v3071_v1  ;;  %v3359_v57 = vadd.f32 %v3358_v60, %v3357_v24 }
 0x4e2   :  { %v2842_v36 = vpop.permute.xlu1 %2841 }
 0x4e3   :  { %v3344_v61 = vadd.f32 %v3343_v2, %v3342_v17  ;;  %v3330_v43 = vrot.slane %v3329_v40, 2  ;;  %v3064_v13 = vmul.f32 %v3754_v10, %v2842_v36  ;;  %v3455_v14 = vmul.f32 %v3407_v45, %v3359_v57 }
 0x4e5   :  { %v3345_v62 = vrot.slane %v3344_v61, 1  ;;  %v3331_v42 = vadd.f32 %v3330_v43, %v3329_v40  ;;  %v3365_v30 = vadd.f32 %v3364_v0, %v3064_v13  ;;  %v3518_v37 = vrot.slane %v3455_v14, 3 }
 0x4e6   :  { %v2877_v39 = vpop.permute.xlu1 %2876 }
 0x4e7   :  { %v3346_v16 = vadd.f32 %v3345_v62, %v3344_v61  ;;  %v3332_v59 = vrot.slane %v3331_v42, 1  ;;  %v3366_v33 = vadd.f32 %v3365_v30, %v3065_v52  ;;  %v3072_v49 = vmul.f32 %v3757_v19, %v2877_v39 }
 0x4e9   :  { %v3333_v12 = vadd.f32 %v3332_v59, %v3331_v42  ;;  %v3367_v9 = vrot.slane %v3366_v33, 4  ;;  %v3454_v4 = vmul.f32 %v3406_v20, %v3346_v16  ;;  %v3378_v48 = vadd.f32 %v3377_v7, %v3072_v49 }
 0x4ea   :  { %v2881_v8 = vpop.permute.xlu1 %2880 }
 0x4eb   :  { %v3453_v54 = vmul.f32 %v3405_v28, %v3333_v12  ;;  %v3368_v15 = vadd.f32 %v3367_v9, %v3366_v33  ;;  %v3073_v58 = vmul.f32 %v3758_v50, %v2881_v8  ;;  %v3516_v25 = vrot.slane %v3454_v4, 4 }
 0x4ed   :  { %v3514_v46 = vrot.slane %v3453_v54, 5  ;;  %v3369_v6 = vrot.slane %v3368_v15, 2  ;;  %v3379_v55 = vadd.f32 %v3378_v48, %v3073_v58 }
 0x4ef   :  { %v3515_v22 = vsel %vm1972_vm9, %v3514_v46, %v5436_v29  ;;  %v3370_v31 = vadd.f32 %v3369_v6, %v3368_v15  ;;  %v3380_v34 = vrot.slane %v3379_v55, 4 }
 0x4f0   :  { %v3517_v5 = vsel %vm1974_vm10, %v3516_v25, %v3515_v22 }
 0x4f1   :  { %v3371_v38 = vrot.slane %v3370_v31, 1  ;;  %v3381_v11 = vadd.f32 %v3380_v34, %v3379_v55  ;;  %v3519_v3 = vsel %vm1976_vm11, %v3518_v37, %v3517_v5 }
 0x4f3   :  { %v3372_v27 = vadd.f32 %v3371_v38, %v3370_v31  ;;  %v3382_v17 = vrot.slane %v3381_v11, 2 }
 0x4f5   :  { %v3383_v18 = vadd.f32 %v3382_v17, %v3381_v11  ;;  %v3456_v63 = vmul.f32 %v3408_v32, %v3372_v27 }
 0x4f7   :  { %v3384_v47 = vrot.slane %v3383_v18, 1  ;;  %v3520_v2 = vrot.slane %v3456_v63, 2 }
 0x4f9   :  { %v3385_v29 = vadd.f32 %v3384_v47, %v3383_v18  ;;  %v3521_v44 = vsel %vm1978_vm12, %v3520_v2, %v3519_v3 }
 0x4fb   :  { %v3457_v40 = vmul.f32 %v3409_v26, %v3385_v29 }
 0x4fd   :  { %v3522_v53 = vrot.slane %v3457_v40, 1 }
 0x4ff   :  { %v3523_v36 = vsel %vm1980_vm13, %v3522_v53, %v3521_v44 }
 0x500   :  { %3529 = vst [vmem:[#allocation7 + $0x10] sm:$0xff] %v3523_v36 }
 0x501   :  { %3814 = shalt.err (!%p3811_p6)
}
 0x502   :  { %s3815_s17 = scalar_lea.hbm %s5492_s3, 384 }
 0x503   :  { %p3816_p7 = scmp.ne.s32.totalorder %s5492_s3, %s3815_s17  ;;  %p3819_p8 = scmp.lt.u32.totalorder %s3815_s17, %s5492_s3 }
 0x505   :  { %p3821_p9 = pnand %p3819_p8, %p3816_p7 }
 0x507   :  { %3824 = shalt.err (!%p3821_p9)
}
 0x508   :  { %3541 = dma.vmem_to_hbm [thread:$0]  %s3536_s13, 384, %s5492_s3, [#allocation4], %s3832_s22, %s3832_s22, %s3833_s23  }
 0x509   :  { %3829 = dma.done.wait [#allocation4], 384  }
 0x50a   :  { %3830 = vsyncadd [#allocation4], 4294966912 }
 0x50b   :  { %3545 = vsyncpa [#allocation3], 1 }
 0x50c   :  { %3546 = vsyncpa [#allocation6], 1 }
 0x50d   :  { %3547 = vsyncpa [#allocation4], 1 }

</bundles_post_ra>
